<compile_context>
chip_gen: v6e
topology: v6e:2x2x1
jax: 0.10.0
libtpu: 0.0.40
codegen_flags: <defaults>
</compile_context>

<pallas_src>
import jax
import jax.numpy as jnp
from jax import lax
from jax.experimental import pallas as pl
from jax.experimental.pallas import tpu as pltpu

BN_EPS = 1e-5


def _conv_fused_kernel(x_ref, w_ref, y_ref, stats_ref, xp_scr):
    """One batch element: fused square/vertical/horizontal conv branches.

    x_ref    : (1, H, W, Cin)     bf16 activations
    w_ref    : (9, Cin, 3*Cout)   bf16 fused per-tap weights
    y_ref    : (1, H, W, 3*Cout)  bf16 fused branch outputs
    stats_ref: (1, 2, 3*Cout)     f32  per-batch [sum, sum_of_squares]
    xp_scr   : (H+2, W+2, Cin)    f32  zero-padded input slab (VMEM scratch)
    """
    H = x_ref.shape[1]
    W = x_ref.shape[2]
    Cin = x_ref.shape[3]
    C3 = y_ref.shape[3]

    # Build the zero halo in VMEM (avoids a wrapper-side jnp.pad HBM pass).
    xp_scr[...] = jnp.zeros_like(xp_scr)
    xp_scr[1:H + 1, 1:W + 1, :] = x_ref[0].astype(jnp.float32)

    acc = jnp.zeros((H * W, C3), jnp.float32)
    for k in range(9):
        kh, kw = divmod(k, 3)
        patch = xp_scr[kh:kh + H, kw:kw + W, :].reshape(H * W, Cin)
        acc = acc + jnp.dot(patch.astype(jnp.bfloat16), w_ref[k],
                            preferred_element_type=jnp.float32)

    y_ref[0] = acc.reshape(H, W, C3).astype(y_ref.dtype)

    s1 = jnp.sum(acc, axis=0, keepdims=True)          # (1, 3*Cout)
    s2 = jnp.sum(acc * acc, axis=0, keepdims=True)    # (1, 3*Cout)
    stats_ref[0] = jnp.concatenate([s1, s2], axis=0)  # (2, 3*Cout)


def _bn_norm_sum_kernel(y_ref, mean_ref, inv_ref, out_ref):
    """Row tile: standardize per channel (per branch) and sum the branches.

    y_ref   : (TR, 3*Cout)  bf16
    mean_ref: (1, 3*Cout)   f32
    inv_ref : (1, 3*Cout)   f32   (1 / sqrt(var + eps))
    out_ref : (TR, Cout)    f32
    """
    cout = out_ref.shape[1]
    z = (y_ref[...].astype(jnp.float32) - mean_ref[...]) * inv_ref[...]
    out_ref[...] = z[:, :cout] + z[:, cout:2 * cout] + z[:, 2 * cout:3 * cout]


@jax.jit
def asy_conv_forward(x_nchw, wsq, wver, whor):
    N, Cin, H, W = x_nchw.shape
    Cout = wsq.shape[-1]
    C3 = 3 * Cout

    # NCHW -> NHWC, bf16 activations for the MXU.
    x = jnp.transpose(x_nchw, (0, 2, 3, 1)).astype(jnp.bfloat16)

    # Fused per-tap weights: [ square | vertical(kw==1) | horizontal(kh==1) ].
    wf = jnp.zeros((3, 3, Cin, C3), jnp.float32)
    wf = wf.at[:, :, :, 0:Cout].set(wsq)
    wf = wf.at[:, 1, :, Cout:2 * Cout].set(wver)
    wf = wf.at[1, :, :, 2 * Cout:3 * Cout].set(whor)
    wf = wf.reshape(9, Cin, C3).astype(jnp.bfloat16)

    y, stats = pl.pallas_call(
        _conv_fused_kernel,
        out_shape=(
            jax.ShapeDtypeStruct((N, H, W, C3), jnp.bfloat16),
            jax.ShapeDtypeStruct((N, 2, C3), jnp.float32),
        ),
        grid=(N,),
        in_specs=[
            pl.BlockSpec((1, H, W, Cin), lambda n: (n, 0, 0, 0)),
            pl.BlockSpec((9, Cin, C3), lambda n: (0, 0, 0)),
        ],
        out_specs=(
            pl.BlockSpec((1, H, W, C3), lambda n: (n, 0, 0, 0)),
            pl.BlockSpec((1, 2, C3), lambda n: (n, 0, 0)),
        ),
        scratch_shapes=[pltpu.VMEM((H + 2, W + 2, Cin), jnp.float32)],
        compiler_params=pltpu.CompilerParams(
            dimension_semantics=("parallel",)),
    )(x, wf)

    # Tiny (N, 2, 3*Cout) partial-stat reduction -> batch statistics.
    cnt = jnp.float32(N * H * W)
    s = jnp.sum(stats, axis=0)                         # (2, 3*Cout)
    mean = s[0] / cnt
    var = jnp.maximum(s[1] / cnt - mean * mean, 0.0)   # single-pass, clamped
    inv = lax.rsqrt(var + BN_EPS)
    mean = mean.reshape(1, C3)
    inv = inv.reshape(1, C3)

    # Row-tiled normalize + branch sum (HBM-roofline pass, bounded VMEM).
    rows = N * H * W
    TR = rows if rows <= 2048 else 2048
    y2 = y.reshape(rows, C3)
    out2 = pl.pallas_call(
        _bn_norm_sum_kernel,
        out_shape=jax.ShapeDtypeStruct((rows, Cout), jnp.float32),
        grid=(pl.cdiv(rows, TR),),
        in_specs=[
            pl.BlockSpec((TR, C3), lambda r: (r, 0)),
            pl.BlockSpec((1, C3), lambda r: (0, 0)),
            pl.BlockSpec((1, C3), lambda r: (0, 0)),
        ],
        out_specs=pl.BlockSpec((TR, Cout), lambda r: (r, 0)),
        compiler_params=pltpu.CompilerParams(
            dimension_semantics=("parallel",)),
    )(y2, mean, inv)

    out = out2.reshape(N, H, W, Cout)
    return jnp.transpose(out, (0, 3, 1, 2))            # back to NCHW


def init_weights(key, cin, cout):
    """Deterministic kaiming_normal(fan_in, relu) conv init; BN weight=1,
    bias=0 (weight_init), which makes BN a plain per-channel standardization."""
    k1, k2, k3 = jax.random.split(key, 3)
    std_sq = (2.0 / (cin * 3 * 3)) ** 0.5
    std_asym = (2.0 / (cin * 3 * 1)) ** 0.5
    wsq = std_sq * jax.random.normal(k1, (3, 3, cin, cout), jnp.float32)
    wver = std_asym * jax.random.normal(k2, (3, cin, cout), jnp.float32)
    whor = std_asym * jax.random.normal(k3, (3, cin, cout), jnp.float32)
    return wsq, wver, whor


def reference_forward(x_nchw, wsq, wver, whor):
    """Pure-JAX reference (lax conv + training-mode BN) for validation."""
    cin, cout = wsq.shape[2], wsq.shape[3]
    x = jnp.transpose(x_nchw, (0, 2, 3, 1)).astype(jnp.float32)
    dn = ("NHWC", "HWIO", "NHWC")
    sq = lax.conv_general_dilated(x, wsq, (1, 1), ((1, 1), (1, 1)),
                                  dimension_numbers=dn)
    ver = lax.conv_general_dilated(x, wver.reshape(3, 1, cin, cout), (1, 1),
                                   ((1, 1), (0, 0)), dimension_numbers=dn)
    hor = lax.conv_general_dilated(x, whor.reshape(1, 3, cin, cout), (1, 1),
                                   ((0, 0), (1, 1)), dimension_numbers=dn)

    def bn(t):
        m = jnp.mean(t, axis=(0, 1, 2), keepdims=True)
        v = jnp.mean((t - m) ** 2, axis=(0, 1, 2), keepdims=True)
        return (t - m) / jnp.sqrt(v + BN_EPS)

    out = bn(sq) + bn(ver) + bn(hor)
    return jnp.transpose(out, (0, 3, 1, 2))


if __name__ == "__main__":
    key = jax.random.PRNGKey(0)
    kx, kw = jax.random.split(key)

    N, Cin, H, W = 2, 4, 16, 16
    Cout = 8

    x = jax.random.normal(kx, (N, Cin, H, W), jnp.float32)   # NCHW like PyTorch
    wsq, wver, whor = init_weights(kw, Cin, Cout)

    out = jax.block_until_ready(asy_conv_forward(x, wsq, wver, whor))
    assert out.shape == (N, Cout, H, W), out.shape

    # Compare against a reference fed with the same bf16-rounded conv inputs
    # (the kernel computes the matmuls in bf16 with f32 accumulation and stores
    # the intermediate branch buffer in bf16, hence the relaxed tolerance).
    def _r(a):
        return a.astype(jnp.bfloat16).astype(jnp.float32)

    ref = reference_forward(_r(x), _r(wsq), _r(wver), _r(whor))
    max_err = float(jnp.max(jnp.abs(out - ref)))
    assert jnp.allclose(out, ref, rtol=2e-2, atol=5e-2), max_err

    print("KERNEL_OK")
</pallas_src>

<mosaic_0001>
module attributes {stable_mosaic.version = 11 : i64} {
  func.func @_conv_fused_kernel(%arg0: i32, %arg1: memref<1x16x16x4xbf16, #tpu.memory_space<vmem>>, %arg2: memref<9x4x24xbf16, #tpu.memory_space<vmem>>, %arg3: memref<1x16x16x24xbf16, #tpu.memory_space<vmem>>, %arg4: memref<1x2x24xf32, #tpu.memory_space<vmem>>, %arg5: memref<18x18x4xf32, #tpu.memory_space<vmem>>) attributes {dimension_semantics = [#tpu.dimension_semantics<parallel>], iteration_bounds = array<i64: 2>, scalar_prefetch = 0 : i64, scratch_operands = 1 : i64, tpu.core_type = #tpu.core_type<tc>, window_params = [{transform_indices = @transform_0, window_bounds = array<i64: 1, 16, 16, 4>}, {pipeline_mode = #tpu.pipeline_mode<synchronous>, transform_indices = @transform_1, window_bounds = array<i64: 9, 4, 24>}, {transform_indices = @transform_2, window_bounds = array<i64: 1, 16, 16, 24>}, {transform_indices = @transform_3, window_bounds = array<i64: 1, 2, 24>}]} {
    %cst = arith.constant 0.000000e+00 : f32
    %0 = vector.broadcast %cst : f32 to vector<18x18x4xf32>
    %c0 = arith.constant 0 : index
    %c0_0 = arith.constant 0 : index
    %c0_1 = arith.constant 0 : index
    %1 = vector.load %arg5[%c0, %c0_0, %c0_1] : memref<18x18x4xf32, #tpu.memory_space<vmem>>, vector<18x18x4xf32>
    tpu.vector_store %arg5[%c0, %c0_0, %c0_1], %0 {strides = array<i32>} : memref<18x18x4xf32, #tpu.memory_space<vmem>>, vector<18x18x4xf32>,
    %c0_2 = arith.constant 0 : index
    %c0_3 = arith.constant 0 : index
    %c0_4 = arith.constant 0 : index
    %c0_5 = arith.constant 0 : index
    %2 = vector.load %arg1[%c0_2, %c0_3, %c0_4, %c0_5] : memref<1x16x16x4xbf16, #tpu.memory_space<vmem>>, vector<1x16x16x4xbf16>
    %3 = vector.shape_cast %2 : vector<1x16x16x4xbf16> to vector<16x16x4xbf16>
    %4 = arith.extf %3 : vector<16x16x4xbf16> to vector<16x16x4xf32>
    %c1 = arith.constant 1 : index
    %c1_6 = arith.constant 1 : index
    %c0_7 = arith.constant 0 : index
    %5 = vector.load %arg5[%c1, %c1_6, %c0_7] : memref<18x18x4xf32, #tpu.memory_space<vmem>>, vector<16x16x4xf32>
    tpu.vector_store %arg5[%c1, %c1_6, %c0_7], %4 {strides = array<i32>} : memref<18x18x4xf32, #tpu.memory_space<vmem>>, vector<16x16x4xf32>,
    %cst_8 = arith.constant 0.000000e+00 : f32
    %6 = vector.broadcast %cst_8 : f32 to vector<256x24xf32>
    %c0_9 = arith.constant 0 : index
    %c0_10 = arith.constant 0 : index
    %c0_11 = arith.constant 0 : index
    %7 = vector.load %arg5[%c0_9, %c0_10, %c0_11] : memref<18x18x4xf32, #tpu.memory_space<vmem>>, vector<16x16x4xf32>
    %8 = vector.shape_cast %7 : vector<16x16x4xf32> to vector<256x4xf32>
    %9 = arith.truncf %8 : vector<256x4xf32> to vector<256x4xbf16>
    %c0_12 = arith.constant 0 : index
    %c0_13 = arith.constant 0 : index
    %c0_14 = arith.constant 0 : index
    %10 = vector.load %arg2[%c0_12, %c0_13, %c0_14] : memref<9x4x24xbf16, #tpu.memory_space<vmem>>, vector<1x4x24xbf16>
    %11 = vector.shape_cast %10 : vector<1x4x24xbf16> to vector<4x24xbf16>
    %cst_15 = arith.constant dense<0.000000e+00> : vector<256x24xf32>
    %12 = tpu.matmul %9, %11, %cst_15 {dimension_numbers = #tpu.dot_dimension_numbers<[1], [0], [0], [1], [0, 0, 1, 1], [], []>} : vector<256x4xbf16>, vector<4x24xbf16>, vector<256x24xf32> -> vector<256x24xf32>
    %13 = arith.addf %6, %12 : vector<256x24xf32>
    %c0_16 = arith.constant 0 : index
    %c1_17 = arith.constant 1 : index
    %c0_18 = arith.constant 0 : index
    %14 = vector.load %arg5[%c0_16, %c1_17, %c0_18] : memref<18x18x4xf32, #tpu.memory_space<vmem>>, vector<16x16x4xf32>
    %15 = vector.shape_cast %14 : vector<16x16x4xf32> to vector<256x4xf32>
    %16 = arith.truncf %15 : vector<256x4xf32> to vector<256x4xbf16>
    %c1_19 = arith.constant 1 : index
    %c0_20 = arith.constant 0 : index
    %c0_21 = arith.constant 0 : index
    %17 = vector.load %arg2[%c1_19, %c0_20, %c0_21] : memref<9x4x24xbf16, #tpu.memory_space<vmem>>, vector<1x4x24xbf16>
    %18 = vector.shape_cast %17 : vector<1x4x24xbf16> to vector<4x24xbf16>
    %cst_22 = arith.constant dense<0.000000e+00> : vector<256x24xf32>
    %19 = tpu.matmul %16, %18, %cst_22 {dimension_numbers = #tpu.dot_dimension_numbers<[1], [0], [0], [1], [0, 0, 1, 1], [], []>} : vector<256x4xbf16>, vector<4x24xbf16>, vector<256x24xf32> -> vector<256x24xf32>
    %20 = arith.addf %13, %19 : vector<256x24xf32>
    %c0_23 = arith.constant 0 : index
    %c2 = arith.constant 2 : index
    %c0_24 = arith.constant 0 : index
    %21 = vector.load %arg5[%c0_23, %c2, %c0_24] : memref<18x18x4xf32, #tpu.memory_space<vmem>>, vector<16x16x4xf32>
    %22 = vector.shape_cast %21 : vector<16x16x4xf32> to vector<256x4xf32>
    %23 = arith.truncf %22 : vector<256x4xf32> to vector<256x4xbf16>
    %c2_25 = arith.constant 2 : index
    %c0_26 = arith.constant 0 : index
    %c0_27 = arith.constant 0 : index
    %24 = vector.load %arg2[%c2_25, %c0_26, %c0_27] : memref<9x4x24xbf16, #tpu.memory_space<vmem>>, vector<1x4x24xbf16>
    %25 = vector.shape_cast %24 : vector<1x4x24xbf16> to vector<4x24xbf16>
    %cst_28 = arith.constant dense<0.000000e+00> : vector<256x24xf32>
    %26 = tpu.matmul %23, %25, %cst_28 {dimension_numbers = #tpu.dot_dimension_numbers<[1], [0], [0], [1], [0, 0, 1, 1], [], []>} : vector<256x4xbf16>, vector<4x24xbf16>, vector<256x24xf32> -> vector<256x24xf32>
    %27 = arith.addf %20, %26 : vector<256x24xf32>
    %c1_29 = arith.constant 1 : index
    %c0_30 = arith.constant 0 : index
    %c0_31 = arith.constant 0 : index
    %28 = vector.load %arg5[%c1_29, %c0_30, %c0_31] : memref<18x18x4xf32, #tpu.memory_space<vmem>>, vector<16x16x4xf32>
    %29 = vector.shape_cast %28 : vector<16x16x4xf32> to vector<256x4xf32>
    %30 = arith.truncf %29 : vector<256x4xf32> to vector<256x4xbf16>
    %c3 = arith.constant 3 : index
    %c0_32 = arith.constant 0 : index
    %c0_33 = arith.constant 0 : index
    %31 = vector.load %arg2[%c3, %c0_32, %c0_33] : memref<9x4x24xbf16, #tpu.memory_space<vmem>>, vector<1x4x24xbf16>
    %32 = vector.shape_cast %31 : vector<1x4x24xbf16> to vector<4x24xbf16>
    %cst_34 = arith.constant dense<0.000000e+00> : vector<256x24xf32>
    %33 = tpu.matmul %30, %32, %cst_34 {dimension_numbers = #tpu.dot_dimension_numbers<[1], [0], [0], [1], [0, 0, 1, 1], [], []>} : vector<256x4xbf16>, vector<4x24xbf16>, vector<256x24xf32> -> vector<256x24xf32>
    %34 = arith.addf %27, %33 : vector<256x24xf32>
    %c1_35 = arith.constant 1 : index
    %c1_36 = arith.constant 1 : index
    %c0_37 = arith.constant 0 : index
    %35 = vector.load %arg5[%c1_35, %c1_36, %c0_37] : memref<18x18x4xf32, #tpu.memory_space<vmem>>, vector<16x16x4xf32>
    %36 = vector.shape_cast %35 : vector<16x16x4xf32> to vector<256x4xf32>
    %37 = arith.truncf %36 : vector<256x4xf32> to vector<256x4xbf16>
    %c4 = arith.constant 4 : index
    %c0_38 = arith.constant 0 : index
    %c0_39 = arith.constant 0 : index
    %38 = vector.load %arg2[%c4, %c0_38, %c0_39] : memref<9x4x24xbf16, #tpu.memory_space<vmem>>, vector<1x4x24xbf16>
    %39 = vector.shape_cast %38 : vector<1x4x24xbf16> to vector<4x24xbf16>
    %cst_40 = arith.constant dense<0.000000e+00> : vector<256x24xf32>
    %40 = tpu.matmul %37, %39, %cst_40 {dimension_numbers = #tpu.dot_dimension_numbers<[1], [0], [0], [1], [0, 0, 1, 1], [], []>} : vector<256x4xbf16>, vector<4x24xbf16>, vector<256x24xf32> -> vector<256x24xf32>
    %41 = arith.addf %34, %40 : vector<256x24xf32>
    %c1_41 = arith.constant 1 : index
    %c2_42 = arith.constant 2 : index
    %c0_43 = arith.constant 0 : index
    %42 = vector.load %arg5[%c1_41, %c2_42, %c0_43] : memref<18x18x4xf32, #tpu.memory_space<vmem>>, vector<16x16x4xf32>
    %43 = vector.shape_cast %42 : vector<16x16x4xf32> to vector<256x4xf32>
    %44 = arith.truncf %43 : vector<256x4xf32> to vector<256x4xbf16>
    %c5 = arith.constant 5 : index
    %c0_44 = arith.constant 0 : index
    %c0_45 = arith.constant 0 : index
    %45 = vector.load %arg2[%c5, %c0_44, %c0_45] : memref<9x4x24xbf16, #tpu.memory_space<vmem>>, vector<1x4x24xbf16>
    %46 = vector.shape_cast %45 : vector<1x4x24xbf16> to vector<4x24xbf16>
    %cst_46 = arith.constant dense<0.000000e+00> : vector<256x24xf32>
    %47 = tpu.matmul %44, %46, %cst_46 {dimension_numbers = #tpu.dot_dimension_numbers<[1], [0], [0], [1], [0, 0, 1, 1], [], []>} : vector<256x4xbf16>, vector<4x24xbf16>, vector<256x24xf32> -> vector<256x24xf32>
    %48 = arith.addf %41, %47 : vector<256x24xf32>
    %c2_47 = arith.constant 2 : index
    %c0_48 = arith.constant 0 : index
    %c0_49 = arith.constant 0 : index
    %49 = vector.load %arg5[%c2_47, %c0_48, %c0_49] : memref<18x18x4xf32, #tpu.memory_space<vmem>>, vector<16x16x4xf32>
    %50 = vector.shape_cast %49 : vector<16x16x4xf32> to vector<256x4xf32>
    %51 = arith.truncf %50 : vector<256x4xf32> to vector<256x4xbf16>
    %c6 = arith.constant 6 : index
    %c0_50 = arith.constant 0 : index
    %c0_51 = arith.constant 0 : index
    %52 = vector.load %arg2[%c6, %c0_50, %c0_51] : memref<9x4x24xbf16, #tpu.memory_space<vmem>>, vector<1x4x24xbf16>
    %53 = vector.shape_cast %52 : vector<1x4x24xbf16> to vector<4x24xbf16>
    %cst_52 = arith.constant dense<0.000000e+00> : vector<256x24xf32>
    %54 = tpu.matmul %51, %53, %cst_52 {dimension_numbers = #tpu.dot_dimension_numbers<[1], [0], [0], [1], [0, 0, 1, 1], [], []>} : vector<256x4xbf16>, vector<4x24xbf16>, vector<256x24xf32> -> vector<256x24xf32>
    %55 = arith.addf %48, %54 : vector<256x24xf32>
    %c2_53 = arith.constant 2 : index
    %c1_54 = arith.constant 1 : index
    %c0_55 = arith.constant 0 : index
    %56 = vector.load %arg5[%c2_53, %c1_54, %c0_55] : memref<18x18x4xf32, #tpu.memory_space<vmem>>, vector<16x16x4xf32>
    %57 = vector.shape_cast %56 : vector<16x16x4xf32> to vector<256x4xf32>
    %58 = arith.truncf %57 : vector<256x4xf32> to vector<256x4xbf16>
    %c7 = arith.constant 7 : index
    %c0_56 = arith.constant 0 : index
    %c0_57 = arith.constant 0 : index
    %59 = vector.load %arg2[%c7, %c0_56, %c0_57] : memref<9x4x24xbf16, #tpu.memory_space<vmem>>, vector<1x4x24xbf16>
    %60 = vector.shape_cast %59 : vector<1x4x24xbf16> to vector<4x24xbf16>
    %cst_58 = arith.constant dense<0.000000e+00> : vector<256x24xf32>
    %61 = tpu.matmul %58, %60, %cst_58 {dimension_numbers = #tpu.dot_dimension_numbers<[1], [0], [0], [1], [0, 0, 1, 1], [], []>} : vector<256x4xbf16>, vector<4x24xbf16>, vector<256x24xf32> -> vector<256x24xf32>
    %62 = arith.addf %55, %61 : vector<256x24xf32>
    %c2_59 = arith.constant 2 : index
    %c2_60 = arith.constant 2 : index
    %c0_61 = arith.constant 0 : index
    %63 = vector.load %arg5[%c2_59, %c2_60, %c0_61] : memref<18x18x4xf32, #tpu.memory_space<vmem>>, vector<16x16x4xf32>
    %64 = vector.shape_cast %63 : vector<16x16x4xf32> to vector<256x4xf32>
    %65 = arith.truncf %64 : vector<256x4xf32> to vector<256x4xbf16>
    %c8 = arith.constant 8 : index
    %c0_62 = arith.constant 0 : index
    %c0_63 = arith.constant 0 : index
    %66 = vector.load %arg2[%c8, %c0_62, %c0_63] : memref<9x4x24xbf16, #tpu.memory_space<vmem>>, vector<1x4x24xbf16>
    %67 = vector.shape_cast %66 : vector<1x4x24xbf16> to vector<4x24xbf16>
    %cst_64 = arith.constant dense<0.000000e+00> : vector<256x24xf32>
    %68 = tpu.matmul %65, %67, %cst_64 {dimension_numbers = #tpu.dot_dimension_numbers<[1], [0], [0], [1], [0, 0, 1, 1], [], []>} : vector<256x4xbf16>, vector<4x24xbf16>, vector<256x24xf32> -> vector<256x24xf32>
    %69 = arith.addf %62, %68 : vector<256x24xf32>
    %70 = vector.shape_cast %69 : vector<256x24xf32> to vector<16x16x24xf32>
    %71 = arith.truncf %70 : vector<16x16x24xf32> to vector<16x16x24xbf16>
    %c0_65 = arith.constant 0 : index
    %c0_66 = arith.constant 0 : index
    %c0_67 = arith.constant 0 : index
    %c0_68 = arith.constant 0 : index
    %72 = vector.load %arg3[%c0_65, %c0_66, %c0_67, %c0_68] : memref<1x16x16x24xbf16, #tpu.memory_space<vmem>>, vector<1x16x16x24xbf16>
    %73 = vector.shape_cast %72 : vector<1x16x16x24xbf16> to vector<16x16x24xbf16>
    %74 = vector.shape_cast %71 : vector<16x16x24xbf16> to vector<1x16x16x24xbf16>
    tpu.vector_store %arg3[%c0_65, %c0_66, %c0_67, %c0_68], %74 {strides = array<i32>} : memref<1x16x16x24xbf16, #tpu.memory_space<vmem>>, vector<1x16x16x24xbf16>,
    %cst_69 = arith.constant dense<0.000000e+00> : vector<24xf32>
    %75 = vector.multi_reduction <add>, %69, %cst_69 [0] : vector<256x24xf32> to vector<24xf32>
    %76 = vector.shape_cast %75 : vector<24xf32> to vector<1x24xf32>
    %77 = arith.mulf %69, %69 : vector<256x24xf32>
    %cst_70 = arith.constant dense<0.000000e+00> : vector<24xf32>
    %78 = vector.multi_reduction <add>, %77, %cst_70 [0] : vector<256x24xf32> to vector<24xf32>
    %79 = vector.shape_cast %78 : vector<24xf32> to vector<1x24xf32>
    %80 = tpu.concatenate %76, %79 in 0 : vector<1x24xf32>, vector<1x24xf32> -> vector<2x24xf32>
    %c0_71 = arith.constant 0 : index
    %c0_72 = arith.constant 0 : index
    %c0_73 = arith.constant 0 : index
    %81 = vector.load %arg4[%c0_71, %c0_72, %c0_73] : memref<1x2x24xf32, #tpu.memory_space<vmem>>, vector<1x2x24xf32>
    %82 = vector.shape_cast %81 : vector<1x2x24xf32> to vector<2x24xf32>
    %83 = vector.shape_cast %80 : vector<2x24xf32> to vector<1x2x24xf32>
    tpu.vector_store %arg4[%c0_71, %c0_72, %c0_73], %83 {strides = array<i32>} : memref<1x2x24xf32, #tpu.memory_space<vmem>>, vector<1x2x24xf32>,
    return
  }
  func.func @transform_0(%arg0: i32) -> (i32, i32, i32, i32) {
    %c0_i32 = arith.constant 0 : i32
    %c0_i32_0 = arith.constant 0 : i32
    %c0_i32_1 = arith.constant 0 : i32
    %c0_i32_2 = arith.constant 0 : i32
    return %arg0, %c0_i32, %c0_i32_0, %c0_i32_1 : i32, i32, i32, i32
  }
  func.func @transform_1(%arg0: i32) -> (i32, i32, i32) {
    %c0_i32 = arith.constant 0 : i32
    %c0_i32_0 = arith.constant 0 : i32
    %c0_i32_1 = arith.constant 0 : i32
    %c0_i32_2 = arith.constant 0 : i32
    return %c0_i32, %c0_i32_0, %c0_i32_1 : i32, i32, i32
  }
  func.func @transform_2(%arg0: i32) -> (i32, i32, i32, i32) {
    %c0_i32 = arith.constant 0 : i32
    %c0_i32_0 = arith.constant 0 : i32
    %c0_i32_1 = arith.constant 0 : i32
    %c0_i32_2 = arith.constant 0 : i32
    return %arg0, %c0_i32, %c0_i32_0, %c0_i32_1 : i32, i32, i32, i32
  }
  func.func @transform_3(%arg0: i32) -> (i32, i32, i32) {
    %c0_i32 = arith.constant 0 : i32
    %c0_i32_0 = arith.constant 0 : i32
    %c0_i32_1 = arith.constant 0 : i32
    return %arg0, %c0_i32, %c0_i32_0 : i32, i32, i32
  }
}

module attributes {stable_mosaic.version = 11 : i64} {
  func.func @_bn_norm_sum_kernel(%arg0: i32, %arg1: memref<512x24xbf16, #tpu.memory_space<vmem>>, %arg2: memref<1x24xf32, #tpu.memory_space<vmem>>, %arg3: memref<1x24xf32, #tpu.memory_space<vmem>>, %arg4: memref<512x8xf32, #tpu.memory_space<vmem>>) attributes {dimension_semantics = [#tpu.dimension_semantics<parallel>], iteration_bounds = array<i64: 1>, scalar_prefetch = 0 : i64, scratch_operands = 0 : i64, tpu.core_type = #tpu.core_type<tc>, window_params = [{transform_indices = @transform_0, window_bounds = array<i64: 512, 24>}, {pipeline_mode = #tpu.pipeline_mode<synchronous>, transform_indices = @transform_1, window_bounds = array<i64: 1, 24>}, {pipeline_mode = #tpu.pipeline_mode<synchronous>, transform_indices = @transform_2, window_bounds = array<i64: 1, 24>}, {transform_indices = @transform_3, window_bounds = array<i64: 512, 8>}]} {
    %c0 = arith.constant 0 : index
    %c0_0 = arith.constant 0 : index
    %0 = vector.load %arg1[%c0, %c0_0] : memref<512x24xbf16, #tpu.memory_space<vmem>>, vector<512x24xbf16>
    %1 = arith.extf %0 : vector<512x24xbf16> to vector<512x24xf32>
    %c0_1 = arith.constant 0 : index
    %c0_2 = arith.constant 0 : index
    %2 = vector.load %arg2[%c0_1, %c0_2] : memref<1x24xf32, #tpu.memory_space<vmem>>, vector<1x24xf32>
    %3 = vector.broadcast %2 : vector<1x24xf32> to vector<512x24xf32>
    %4 = arith.subf %1, %3 : vector<512x24xf32>
    %c0_3 = arith.constant 0 : index
    %c0_4 = arith.constant 0 : index
    %5 = vector.load %arg3[%c0_3, %c0_4] : memref<1x24xf32, #tpu.memory_space<vmem>>, vector<1x24xf32>
    %6 = vector.broadcast %5 : vector<1x24xf32> to vector<512x24xf32>
    %7 = arith.mulf %4, %6 : vector<512x24xf32>
    %8 = vector.extract_strided_slice %7 {offsets = [0, 0], sizes = [512, 8], strides = [1, 1]} : vector<512x24xf32> to vector<512x8xf32>
    %9 = vector.extract_strided_slice %7 {offsets = [0, 8], sizes = [512, 8], strides = [1, 1]} : vector<512x24xf32> to vector<512x8xf32>
    %10 = arith.addf %8, %9 : vector<512x8xf32>
    %11 = vector.extract_strided_slice %7 {offsets = [0, 16], sizes = [512, 8], strides = [1, 1]} : vector<512x24xf32> to vector<512x8xf32>
    %12 = arith.addf %10, %11 : vector<512x8xf32>
    %c0_5 = arith.constant 0 : index
    %c0_6 = arith.constant 0 : index
    %13 = vector.load %arg4[%c0_5, %c0_6] : memref<512x8xf32, #tpu.memory_space<vmem>>, vector<512x8xf32>
    tpu.vector_store %arg4[%c0_5, %c0_6], %12 {strides = array<i32>} : memref<512x8xf32, #tpu.memory_space<vmem>>, vector<512x8xf32>,
    return
  }
  func.func @transform_0(%arg0: i32) -> (i32, i32) {
    %c0_i32 = arith.constant 0 : i32
    %c0_i32_0 = arith.constant 0 : i32
    return %arg0, %c0_i32 : i32, i32
  }
  func.func @transform_1(%arg0: i32) -> (i32, i32) {
    %c0_i32 = arith.constant 0 : i32
    %c0_i32_0 = arith.constant 0 : i32
    %c0_i32_1 = arith.constant 0 : i32
    return %c0_i32, %c0_i32_0 : i32, i32
  }
  func.func @transform_2(%arg0: i32) -> (i32, i32) {
    %c0_i32 = arith.constant 0 : i32
    %c0_i32_0 = arith.constant 0 : i32
    %c0_i32_1 = arith.constant 0 : i32
    return %c0_i32, %c0_i32_0 : i32, i32
  }
  func.func @transform_3(%arg0: i32) -> (i32, i32) {
    %c0_i32 = arith.constant 0 : i32
    %c0_i32_0 = arith.constant 0 : i32
    return %arg0, %c0_i32 : i32, i32
  }
}

</mosaic_0001>

<bundles_post_ra>
// kernel: asy_conv_forward.3
= control target key start
LH: loop header
LB: loop body
LE: loop exit
PB: predicated region body
PF: predicated region fallthrough
CT: control target
= control target key end

     0   :  { %s1092_s24 = smov 120   ;;  %vm860_vm0 = vcmask 64512   ;;  %s2258_s0 = inlined_call_operand.vmem [shape: bf16[512,24], index: 0, kind: input, shape index: {}]   ;;  %s2259_s1 = inlined_call_operand.vmem [shape: f32[1,24], index: 1, kind: input, shape index: {}]   ;;  %s2260_s2 = inlined_call_operand.vmem [shape: f32[1,24], index: 2, kind: input, shape index: {}]   ;;  %s2261_s3 = inlined_call_operand.vmem [shape: f32[512,8], index: 3, kind: output, shape index: {}]  }
   0x1   :  { %v1059_v0 = vld [vmem:[%s2258_s0 + $0x8] sm:$0xff]   ;;  %v1120_v1 = vld [vmem:[%s2259_s1] ss:$0 sm:$0xff]  ;;  %v1060_v5 = vld [vmem:[%s2258_s0 + $0x10] sm:$0xff]  }
   0x2   :  { %v937_v2 = vunpack.c.l.bf16 %v1059_v0  ;;  %v932_v3 = vld [vmem:[%s2258_s0] sm:$0xff]   ;;  %v938_v4 = vunpack.c.h.bf16 %v1059_v0  ;;  %v1061_v6 = vld [vmem:[%s2258_s0 + $0x18] sm:$0xff]   ;;  %v942_v12 = vunpack.c.h.bf16 %v1060_v5  ;;  %v941_v13 = vunpack.c.l.bf16 %v1060_v5  ;;  %v1063_v29 = vld [vmem:[%s2258_s0 + $0x28] sm:$0xff]  }
   0x3   :  { %v1134_v7 = vld [vmem:[%s2260_s2] ss:$0 sm:$0xff]  ;;  %v933_v8 = vunpack.c.l.bf16 %v932_v3  ;;  %v934_v9 = vunpack.c.h.bf16 %v932_v3  ;;  %v946_v16 = vunpack.c.h.bf16 %v1061_v6  ;;  %v945_v17 = vunpack.c.l.bf16 %v1061_v6  ;;  %v1064_v30 = vld [vmem:[%s2258_s0 + $0x30] sm:$0xff]   ;;  %v1065_v33 = vld [vmem:[%s2258_s0 + $0x38] sm:$0xff]  }
   0x4   :  { %v151_v10 = vsub.f32 %v937_v2, %v1120_v1  ;;  %v152_v11 = vsub.f32 %v938_v4, %v1120_v1  ;;  %v1062_v20 = vld [vmem:[%s2258_s0 + $0x20] sm:$0xff]   ;;  %v154_v22 = vsub.f32 %v942_v12, %v1120_v1  ;;  %v153_v23 = vsub.f32 %v941_v13, %v1120_v1  ;;  %v1067_v39 = vld [vmem:[%s2258_s0 + $0x48] sm:$0xff]   ;;  %v1068_v40 = vld [vmem:[%s2258_s0 + $0x50] sm:$0xff]  }
   0x5   :  { %v149_v14 = vsub.f32 %v933_v8, %v1120_v1  ;;  %v150_v15 = vsub.f32 %v934_v9, %v1120_v1  ;;  %v156_v25 = vsub.f32 %v946_v16, %v1120_v1  ;;  %v155_v26 = vsub.f32 %v945_v17, %v1120_v1  ;;  %v1066_v34 = vld [vmem:[%s2258_s0 + $0x40] sm:$0xff]   ;;  %v1069_v45 = vld [vmem:[%s2258_s0 + $0x58] sm:$0xff]   ;;  %v1248_v17 = vld [vmem:[%s2258_s0 + $0x68] sm:$0xff]  }
   0x6   :  { %v1141_v18 = vmul.f32 %v1134_v7, %v151_v10  ;;  %v1152_v21 = vmul.f32 %v1134_v7, %v152_v11  ;;  %v950_v27 = vunpack.c.h.bf16 %v1062_v20  ;;  %v949_v28 = vunpack.c.l.bf16 %v1062_v20  ;;  %v1070_v3 = vld [vmem:[%s2258_s0 + $0x60] sm:$0xff]  }
   0x7   :  { %v1144_v19 = vmul.f32 %v1134_v7, %v149_v14  ;;  %v1159_v24 = vmul.f32 %v1134_v7, %v150_v15  ;;  %v1172_v31 = vmul.f32 %v1134_v7, %v154_v22  ;;  %v1175_v32 = vmul.f32 %v1134_v7, %v153_v23 }
   0x8   :  { %352 = vrot.lane.b32.xlu1 %v1141_v18, %s1092_s24  ;;  %v1186_v35 = vmul.f32 %v1134_v7, %v156_v25  ;;  %v1189_v36 = vmul.f32 %v1134_v7, %v155_v26  ;;  %v954_v37 = vunpack.c.h.bf16 %v1063_v29  ;;  %v953_v38 = vunpack.c.l.bf16 %v1063_v29  ;;  %v1074_v26 = vld [vmem:[%s2258_s0 + $0x80] sm:$0xff]  }
   0x9   :  { %348 = vrot.lane.b32.xlu0 %v1144_v19, %s1092_s24  ;;  %v158_v41 = vsub.f32 %v950_v27, %v1120_v1  ;;  %v157_v42 = vsub.f32 %v949_v28, %v1120_v1  ;;  %v958_v43 = vunpack.c.h.bf16 %v1064_v30  ;;  %v957_v44 = vunpack.c.l.bf16 %v1064_v30 }
   0xa   :  { %v962_v46 = vunpack.c.h.bf16 %v1065_v33  ;;  %v961_v47 = vunpack.c.l.bf16 %v1065_v33  ;;  %v966_v48 = vunpack.c.h.bf16 %v1066_v34  ;;  %v965_v49 = vunpack.c.l.bf16 %v1066_v34  ;;  %v1075_v33 = vld [vmem:[%s2258_s0 + $0x88] sm:$0xff]   ;;  %v1076_v34 = vld [vmem:[%s2258_s0 + $0x90] sm:$0xff]  }
   0xb   :  { %v970_v50 = vunpack.c.h.bf16 %v1067_v39  ;;  %v969_v51 = vunpack.c.l.bf16 %v1067_v39  ;;  %v974_v52 = vunpack.c.h.bf16 %v1068_v40  ;;  %v973_v53 = vunpack.c.l.bf16 %v1068_v40 }
   0xc   :  { %354 = vrot.lane.b32.xlu1 %v1152_v21, %s1092_s24  ;;  %v160_v54 = vsub.f32 %v954_v37, %v1120_v1  ;;  %v159_v55 = vsub.f32 %v953_v38, %v1120_v1  ;;  %v978_v56 = vunpack.c.h.bf16 %v1069_v45  ;;  %v977_v57 = vunpack.c.l.bf16 %v1069_v45 }
   0xd   :  { %350 = vrot.lane.b32.xlu0 %v1159_v24, %s1092_s24  ;;  %v1209_v58 = vmul.f32 %v1134_v7, %v158_v41  ;;  %v1212_v59 = vmul.f32 %v1134_v7, %v157_v42  ;;  %v162_v60 = vsub.f32 %v958_v43, %v1120_v1  ;;  %v161_v61 = vsub.f32 %v957_v44, %v1120_v1  ;;  %v1077_v41 = vld [vmem:[%s2258_s0 + $0x98] sm:$0xff]  }
   0xe   :  { %v164_v62 = vsub.f32 %v962_v46, %v1120_v1  ;;  %v163_v63 = vsub.f32 %v961_v47, %v1120_v1  ;;  %v166_v0 = vsub.f32 %v966_v48, %v1120_v1  ;;  %v165_v2 = vsub.f32 %v965_v49, %v1120_v1 }
   0xf   :  { %2290 = vst [vmem:[#allocation2_spill] sm:$0xff] %v1212_v59  ;;  %v168_v4 = vsub.f32 %v970_v50, %v1120_v1  ;;  %v167_v5 = vsub.f32 %v969_v51, %v1120_v1  ;;  %v170_v6 = vsub.f32 %v974_v52, %v1120_v1  ;;  %v169_v8 = vsub.f32 %v973_v53, %v1120_v1 }
  0x10   :  { %358 = vrot.lane.b32.xlu1 %v1172_v31, %s1092_s24  ;;  %v1232_v9 = vmul.f32 %v1134_v7, %v160_v54  ;;  %v1235_v10 = vmul.f32 %v1134_v7, %v159_v55  ;;  %v172_v11 = vsub.f32 %v978_v56, %v1120_v1  ;;  %v171_v12 = vsub.f32 %v977_v57, %v1120_v1 }
  0x11   :  { %356 = vrot.lane.b32.xlu0 %v1175_v32, %s1092_s24  ;;  %v1240_v13 = vmul.f32 %v1134_v7, %v162_v60  ;;  %v1243_v14 = vmul.f32 %v1134_v7, %v161_v61  ;;  %v982_v15 = vunpack.c.h.bf16 %v1070_v3  ;;  %v981_v16 = vunpack.c.l.bf16 %v1070_v3  ;;  %v1078_v60 = vld [vmem:[%s2258_s0 + $0xa0] sm:$0xff]   ;;  %v1080_v3 = vld [vmem:[%s2258_s0 + $0xb0] sm:$0xff]  }
  0x12   :  { %2291 = vst [vmem:[#allocation3_spill] sm:$0xff] %v1232_v9  ;;  %2292 = vst [vmem:[#allocation4_spill] sm:$0xff] %v1235_v10  ;;  %v1251_v20 = vmul.f32 %v1134_v7, %v164_v62  ;;  %v1254_v22 = vmul.f32 %v1134_v7, %v163_v63  ;;  %v1257_v23 = vmul.f32 %v1134_v7, %v166_v0  ;;  %v998_v44 = vunpack.c.h.bf16 %v1074_v26 }
  0x13   :  { %2293 = vst [vmem:[#allocation5_spill] sm:$0xff] %v1240_v13  ;;  %2294 = vst [vmem:[#allocation6_spill] sm:$0xff] %v1243_v14  ;;  %v1260_v25 = vmul.f32 %v1134_v7, %v165_v2  ;;  %v1268_v27 = vmul.f32 %v1134_v7, %v168_v4  ;;  %v1271_v28 = vmul.f32 %v1134_v7, %v167_v5  ;;  %v997_v45 = vunpack.c.l.bf16 %v1074_v26  ;;  %v1079_v2 = vld [vmem:[%s2258_s0 + $0xa8] sm:$0xff]  }
  0x14   :  { %362 = vrot.lane.b32.xlu1 %v1186_v35, %s1092_s24  ;;  %2295 = vst [vmem:[#allocation7_spill] sm:$0xff] %v1251_v20  ;;  %2296 = vst [vmem:[#allocation8_spill] sm:$0xff] %v1254_v22  ;;  %v1274_v29 = vmul.f32 %v1134_v7, %v170_v6  ;;  %v1277_v30 = vmul.f32 %v1134_v7, %v169_v8  ;;  %v1288_v37 = vmul.f32 %v1134_v7, %v172_v11  ;;  %v1081_v11 = vld [vmem:[%s2258_s0 + $0xb8] sm:$0xff]  }
  0x15   :  { %360 = vrot.lane.b32.xlu0 %v1189_v36, %s1092_s24  ;;  %2297 = vst [vmem:[#allocation9_spill] sm:$0xff] %v1257_v23  ;;  %2298 = vst [vmem:[#allocation10_spill] sm:$0xff] %v1260_v25  ;;  %v1291_v38 = vmul.f32 %v1134_v7, %v171_v12  ;;  %v1299_v42 = vsub.f32 %v982_v15, %v1120_v1  ;;  %v1302_v43 = vsub.f32 %v981_v16, %v1120_v1 }
  0x16   :  { %2299 = vst [vmem:[#allocation11_spill] sm:$0xff] %v1268_v27  ;;  %2300 = vst [vmem:[#allocation12_spill] sm:$0xff] %v1271_v28  ;;  %v1002_v46 = vunpack.c.h.bf16 %v1075_v33  ;;  %v1001_v47 = vunpack.c.l.bf16 %v1075_v33  ;;  %v1006_v48 = vunpack.c.h.bf16 %v1076_v34  ;;  %v1005_v49 = vunpack.c.l.bf16 %v1076_v34 }
  0x17   :  { %2301 = vst [vmem:[#allocation13_spill] sm:$0xff] %v1288_v37  ;;  %2302 = vst [vmem:[#allocation14_spill] sm:$0xff] %v1291_v38  ;;  %v182_v50 = vsub.f32 %v998_v44, %v1120_v1  ;;  %v181_v51 = vsub.f32 %v997_v45, %v1120_v1  ;;  %v1010_v52 = vunpack.c.h.bf16 %v1077_v41  ;;  %v1009_v53 = vunpack.c.l.bf16 %v1077_v41 }
  0x18   :  { %366 = vrot.lane.b32.xlu1 %v1209_v58, %s1092_s24  ;;  %v184_v54 = vsub.f32 %v1002_v46, %v1120_v1  ;;  %v183_v55 = vsub.f32 %v1001_v47, %v1120_v1  ;;  %v186_v56 = vsub.f32 %v1006_v48, %v1120_v1  ;;  %v185_v57 = vsub.f32 %v1005_v49, %v1120_v1 }
  0x19   :  { %364 = vrot.lane.b32.xlu0 %v1212_v59, %s1092_s24  ;;  %v1318_v61 = vmul.f32 %v1134_v7, %v182_v50  ;;  %v1321_v62 = vmul.f32 %v1134_v7, %v181_v51  ;;  %v188_v63 = vsub.f32 %v1010_v52, %v1120_v1  ;;  %v187_v0 = vsub.f32 %v1009_v53, %v1120_v1  ;;  %v1082_v53 = vld [vmem:[%s2258_s0 + $0xc0] sm:$0xff]  }
  0x1a   :  { %v1332_v4 = vmul.f32 %v1134_v7, %v184_v54  ;;  %v1335_v5 = vmul.f32 %v1134_v7, %v183_v55  ;;  %v1338_v6 = vmul.f32 %v1134_v7, %v186_v56  ;;  %v1341_v8 = vmul.f32 %v1134_v7, %v185_v57 }
  0x1b   :  { %v1349_v12 = vmul.f32 %v1134_v7, %v188_v63  ;;  %v1352_v15 = vmul.f32 %v1134_v7, %v187_v0  ;;  %v1014_v16 = vunpack.c.h.bf16 %v1078_v60  ;;  %v1013_v26 = vunpack.c.l.bf16 %v1078_v60  ;;  %v1083_v60 = vld [vmem:[%s2258_s0 + $0xc8] sm:$0xff]   ;;  %v1084_v63 = vld [vmem:[%s2258_s0 + $0xd0] sm:$0xff]  }
  0x1c   :  { %370 = vrot.lane.b32.xlu1 %v1232_v9, %s1092_s24  ;;  %v1018_v33 = vunpack.c.h.bf16 %v1079_v2  ;;  %v1017_v34 = vunpack.c.l.bf16 %v1079_v2  ;;  %v1022_v41 = vunpack.c.h.bf16 %v1080_v3  ;;  %v1021_v44 = vunpack.c.l.bf16 %v1080_v3 }
  0x1d   :  { %368 = vrot.lane.b32.xlu0 %v1235_v10, %s1092_s24  ;;  %v190_v45 = vsub.f32 %v1014_v16, %v1120_v1  ;;  %v189_v46 = vsub.f32 %v1013_v26, %v1120_v1  ;;  %v1026_v47 = vunpack.c.h.bf16 %v1081_v11  ;;  %v1025_v48 = vunpack.c.l.bf16 %v1081_v11  ;;  %v1085_v16 = vld [vmem:[%s2258_s0 + $0xd8] sm:$0xff]  }
  0x1e   :  { %v192_v49 = vsub.f32 %v1018_v33, %v1120_v1  ;;  %v191_v50 = vsub.f32 %v1017_v34, %v1120_v1  ;;  %v194_v51 = vsub.f32 %v1022_v41, %v1120_v1  ;;  %v193_v52 = vsub.f32 %v1021_v44, %v1120_v1 }
  0x1f   :  { %v1368_v54 = vmul.f32 %v1134_v7, %v190_v45  ;;  %v1371_v55 = vmul.f32 %v1134_v7, %v189_v46  ;;  %v196_v56 = vsub.f32 %v1026_v47, %v1120_v1  ;;  %v195_v57 = vsub.f32 %v1025_v48, %v1120_v1 }
  0x20   :  { %374 = vrot.lane.b32.xlu1 %v1240_v13, %s1092_s24  ;;  %v1384_v0 = vmul.f32 %v1134_v7, %v192_v49  ;;  %v1387_v2 = vmul.f32 %v1134_v7, %v191_v50  ;;  %v1390_v3 = vmul.f32 %v1134_v7, %v194_v51  ;;  %v1393_v11 = vmul.f32 %v1134_v7, %v193_v52 }
  0x21   :  { %372 = vrot.lane.b32.xlu0 %v1243_v14, %s1092_s24  ;;  %v1399_v26 = vmul.f32 %v1134_v7, %v196_v56  ;;  %v1402_v33 = vmul.f32 %v1134_v7, %v195_v57  ;;  %v1030_v34 = vunpack.c.h.bf16 %v1082_v53  ;;  %v1029_v41 = vunpack.c.l.bf16 %v1082_v53 }
  0x22   :  { %v1034_v44 = vunpack.c.h.bf16 %v1083_v60  ;;  %v1033_v45 = vunpack.c.l.bf16 %v1083_v60  ;;  %v1038_v46 = vunpack.c.h.bf16 %v1084_v63  ;;  %v1037_v47 = vunpack.c.l.bf16 %v1084_v63  ;;  %v1086_v60 = vld [vmem:[%s2258_s0 + $0xe0] sm:$0xff]  }
  0x23   :  { %v198_v48 = vsub.f32 %v1030_v34, %v1120_v1  ;;  %v197_v49 = vsub.f32 %v1029_v41, %v1120_v1  ;;  %v1042_v50 = vunpack.c.h.bf16 %v1085_v16  ;;  %v1041_v51 = vunpack.c.l.bf16 %v1085_v16 }
  0x24   :  { %378 = vrot.lane.b32.xlu1 %v1251_v20, %s1092_s24  ;;  %v200_v52 = vsub.f32 %v1034_v44, %v1120_v1  ;;  %v199_v53 = vsub.f32 %v1033_v45, %v1120_v1  ;;  %v202_v56 = vsub.f32 %v1038_v46, %v1120_v1  ;;  %v201_v57 = vsub.f32 %v1037_v47, %v1120_v1  ;;  %v1087_v44 = vld [vmem:[%s2258_s0 + $0xe8] sm:$0xff]   ;;  %v1088_v45 = vld [vmem:[%s2258_s0 + $0xf0] sm:$0xff]  }
  0x25   :  { %376 = vrot.lane.b32.xlu0 %v1254_v22, %s1092_s24  ;;  %v1418_v63 = vmul.f32 %v1134_v7, %v198_v48  ;;  %v1421_v16 = vmul.f32 %v1134_v7, %v197_v49  ;;  %v204_v34 = vsub.f32 %v1042_v50, %v1120_v1  ;;  %v203_v41 = vsub.f32 %v1041_v51, %v1120_v1  ;;  %v1089_v50 = vld [vmem:[%s2258_s0 + $0xf8] sm:$0xff]  }
  0x26   :  { %v1432_v46 = vmul.f32 %v1134_v7, %v200_v52  ;;  %v1435_v47 = vmul.f32 %v1134_v7, %v199_v53  ;;  %v1438_v48 = vmul.f32 %v1134_v7, %v202_v56  ;;  %v1441_v49 = vmul.f32 %v1134_v7, %v201_v57 }
  0x27   :  { %v1449_v51 = vmul.f32 %v1134_v7, %v204_v34  ;;  %v1452_v52 = vmul.f32 %v1134_v7, %v203_v41  ;;  %v1046_v53 = vunpack.c.h.bf16 %v1086_v60  ;;  %v1045_v40 = vunpack.c.l.bf16 %v1086_v60 }
  0x28   :  { %382 = vrot.lane.b32.xlu1 %v1257_v23, %s1092_s24  ;;  %2303 = vst [vmem:[#allocation15_spill] sm:$0xff] %v1441_v49  ;;  %v1050_v56 = vunpack.c.h.bf16 %v1087_v44  ;;  %v1049_v57 = vunpack.c.l.bf16 %v1087_v44  ;;  %v1054_v39 = vunpack.c.h.bf16 %v1088_v45  ;;  %v1057_v20 = vunpack.c.l.bf16 %v1089_v50 }
  0x29   :  { %380 = vrot.lane.b32.xlu0 %v1260_v25, %s1092_s24  ;;  %2304 = vst [vmem:[#allocation16_spill] sm:$0xff] %v1449_v51  ;;  %2305 = vst [vmem:[#allocation17_spill] sm:$0xff] %v1452_v52  ;;  %v1053_v25 = vunpack.c.l.bf16 %v1088_v45  ;;  %v206_v23 = vsub.f32 %v1046_v53, %v1120_v1  ;;  %v205_v22 = vsub.f32 %v1045_v40, %v1120_v1 }
  0x2a   :  { %v208_v34 = vsub.f32 %v1050_v56, %v1120_v1  ;;  %v207_v41 = vsub.f32 %v1049_v57, %v1120_v1  ;;  %v210_v14 = vsub.f32 %v1054_v39, %v1120_v1  ;;  %v1499_v56 = vmul.f32 %v1134_v7, %v1299_v42  ;;  %v1073_v42 = vld [vmem:[%s2258_s0 + $0x78] sm:$0xff]  }
  0x2b   :  { %v209_v60 = vsub.f32 %v1053_v25, %v1120_v1  ;;  %v1465_v44 = vmul.f32 %v1134_v7, %v206_v23  ;;  %v1468_v45 = vmul.f32 %v1134_v7, %v205_v22  ;;  %v1072_v25 = vld [vmem:[%s2258_s0 + $0x70] sm:$0xff]   ;;  %s1093_s0 = smov 112  }
  0x2c   :  { %386 = vrot.lane.b32.xlu1 %v1268_v27, %s1092_s24  ;;  %v1058_v27 = vunpack.c.h.bf16 %v1089_v50  ;;  %v211_v50 = vsub.f32 %v1057_v20, %v1120_v1  ;;  %v1478_v39 = vmul.f32 %v1134_v7, %v208_v34  ;;  %v1481_v23 = vmul.f32 %v1134_v7, %v207_v41 }
  0x2d   :  { %384 = vrot.lane.b32.xlu0 %v1271_v28, %s1092_s24  ;;  %v1484_v22 = vmul.f32 %v1134_v7, %v210_v14  ;;  %v2308_v14 = vunpack.c.h.bf16 %v1248_v17  ;;  %v990_v34 = vunpack.c.h.bf16 %v1072_v25  ;;  %v1508_v41 = vmul.f32 %v1134_v7, %v1302_v43 }
  0x2e   :  { %v212_v40 = vsub.f32 %v1058_v27, %v1120_v1  ;;  %v1487_v27 = vmul.f32 %v1134_v7, %v209_v60  ;;  %v1493_v53 = vmul.f32 %v1134_v7, %v211_v50  ;;  %v2309_v60 = vunpack.c.l.bf16 %v1248_v17 }
  0x2f   :  { %v176_v57 = vsub.f32 %v2308_v14, %v1120_v1  ;;  %v989_v50 = vunpack.c.l.bf16 %v1072_v25  ;;  %v993_v25 = vunpack.c.l.bf16 %v1073_v42 }
  0x30   :  { %390 = vrot.lane.b32.xlu1 %v1274_v29, %s1092_s24  ;;  %2306 = vst [vmem:[#allocation18_spill] sm:$0xff] %v1487_v27  ;;  %v1490_v20 = vmul.f32 %v1134_v7, %v212_v40  ;;  %2307 = vst [vmem:[#allocation19_spill] sm:$0xff] %v1493_v53  ;;  %v175_v40 = vsub.f32 %v2309_v60, %v1120_v1 }
  0x31   :  { %388 = vrot.lane.b32.xlu0 %v1277_v30, %s1092_s24  ;;  %v1519_v14 = vmul.f32 %v1134_v7, %v176_v57  ;;  %v177_v43 = vsub.f32 %v989_v50, %v1120_v1 }
  0x32   :  { %v1525_v17 = vmul.f32 %v1134_v7, %v175_v40  ;;  %v179_v40 = vsub.f32 %v993_v25, %v1120_v1 }
  0x34   :  { %394 = vrot.lane.b32.xlu1 %v1288_v37, %s1092_s24  ;;  %v994_v37 = vunpack.c.h.bf16 %v1073_v42 }
  0x35   :  { %392 = vrot.lane.b32.xlu0 %v1291_v38, %s1092_s24  ;;  %v178_v38 = vsub.f32 %v990_v34, %v1120_v1  ;;  %v1537_v34 = vmul.f32 %v1134_v7, %v177_v43 }
  0x36   :  { %v180_v57 = vsub.f32 %v994_v37, %v1120_v1 }
  0x37   :  { %v1531_v60 = vmul.f32 %v1134_v7, %v178_v38  ;;  %v1548_v38 = vmul.f32 %v1134_v7, %v179_v40 }
  0x38   :  { %398 = vrot.lane.b32.xlu1 %v1499_v56, %s1092_s24  ;;  %v1543_v50 = vmul.f32 %v1134_v7, %v180_v57 }
  0x39   :  { %396 = vrot.lane.b32.xlu0 %v1508_v41, %s1092_s24 }
  0x3c   :  { %402 = vrot.lane.b32.xlu1 %v1519_v14, %s1092_s24 }
  0x3d   :  { %400 = vrot.lane.b32.xlu0 %v1525_v17, %s1092_s24 }
  0x40   :  { %406 = vrot.lane.b32.xlu1 %v1531_v60, %s1092_s24 }
  0x41   :  { %404 = vrot.lane.b32.xlu0 %v1537_v34, %s1092_s24 }
  0x44   :  { %410 = vrot.lane.b32.xlu1 %v1543_v50, %s1092_s24 }
  0x45   :  { %408 = vrot.lane.b32.xlu0 %v1548_v38, %s1092_s24 }
  0x48   :  { %414 = vrot.lane.b32.xlu1 %v1318_v61, %s1092_s24 }
  0x49   :  { %412 = vrot.lane.b32.xlu0 %v1321_v62, %s1092_s24 }
  0x4c   :  { %418 = vrot.lane.b32.xlu1 %v1332_v4, %s1092_s24 }
  0x4d   :  { %416 = vrot.lane.b32.xlu0 %v1335_v5, %s1092_s24 }
  0x50   :  { %422 = vrot.lane.b32.xlu1 %v1338_v6, %s1092_s24 }
  0x51   :  { %420 = vrot.lane.b32.xlu0 %v1341_v8, %s1092_s24 }
  0x54   :  { %426 = vrot.lane.b32.xlu1 %v1349_v12, %s1092_s24 }
  0x55   :  { %424 = vrot.lane.b32.xlu0 %v1352_v15, %s1092_s24 }
  0x58   :  { %430 = vrot.lane.b32.xlu1 %v1368_v54, %s1092_s24 }
  0x59   :  { %428 = vrot.lane.b32.xlu0 %v1371_v55, %s1092_s24 }
  0x5c   :  { %434 = vrot.lane.b32.xlu1 %v1384_v0, %s1092_s24 }
  0x5d   :  { %432 = vrot.lane.b32.xlu0 %v1387_v2, %s1092_s24 }
  0x60   :  { %438 = vrot.lane.b32.xlu1 %v1390_v3, %s1092_s24 }
  0x61   :  { %436 = vrot.lane.b32.xlu0 %v1393_v11, %s1092_s24 }
  0x64   :  { %442 = vrot.lane.b32.xlu1 %v1399_v26, %s1092_s24 }
  0x65   :  { %440 = vrot.lane.b32.xlu0 %v1402_v33, %s1092_s24 }
  0x68   :  { %446 = vrot.lane.b32.xlu1 %v1418_v63, %s1092_s24 }
  0x69   :  { %444 = vrot.lane.b32.xlu0 %v1421_v16, %s1092_s24 }
  0x6c   :  { %450 = vrot.lane.b32.xlu1 %v1432_v46, %s1092_s24 }
  0x6d   :  { %448 = vrot.lane.b32.xlu0 %v1435_v47, %s1092_s24 }
  0x70   :  { %454 = vrot.lane.b32.xlu1 %v1438_v48, %s1092_s24 }
  0x71   :  { %452 = vrot.lane.b32.xlu0 %v1441_v49, %s1092_s24 }
  0x74   :  { %458 = vrot.lane.b32.xlu1 %v1449_v51, %s1092_s24 }
  0x75   :  { %456 = vrot.lane.b32.xlu0 %v1452_v52, %s1092_s24 }
  0x78   :  { %462 = vrot.lane.b32.xlu1 %v1465_v44, %s1092_s24 }
  0x79   :  { %460 = vrot.lane.b32.xlu0 %v1468_v45, %s1092_s24 }
  0x7a   :  { %v1606_v1 = vpop.permute.xlu1 %352 }
  0x7b   :  { %v1608_v7 = vpop.permute.xlu0 %348 }
  0x7c   :  { %466 = vrot.lane.b32.xlu1 %v1478_v39, %s1092_s24 }
  0x7d   :  { %464 = vrot.lane.b32.xlu0 %v1481_v23, %s1092_s24 }
  0x7e   :  { %v1614_v37 = vpop.permute.xlu1 %354 }
  0x7f   :  { %v1616_v42 = vpop.permute.xlu0 %350 }
  0x80   :  { %470 = vrot.lane.b32.xlu1 %v1484_v22, %s1092_s24 }
  0x81   :  { %468 = vrot.lane.b32.xlu0 %v1487_v27, %s1092_s24 }
  0x82   :  { %v1622_v43 = vpop.permute.xlu1 %358 }
  0x83   :  { %v1624_v25 = vpop.permute.xlu0 %356 }
  0x84   :  { %2310 = vst [vmem:[#allocation20_spill] sm:$0xff] %v1624_v25  ;;  %474 = vrot.lane.b32.xlu1 %v1490_v20, %s1092_s24 }
  0x85   :  { %472 = vrot.lane.b32.xlu0 %v1493_v53, %s1092_s24 }
  0x86   :  { %v1630_v57 = vpop.permute.xlu1 %362 }
  0x87   :  { %2311 = vst [vmem:[#allocation21_spill] sm:$0xff] %v1630_v57  ;;  %v1632_v40 = vpop.permute.xlu0 %360 }
  0x88   :  { %2312 = vst [vmem:[#allocation22_spill] sm:$0xff] %v1632_v40  ;;  %606 = vrot.lane.b32.xlu1 %v1159_v24, %s1093_s0 }
  0x89   :  { %604 = vrot.lane.b32.xlu0 %v1144_v19, %s1093_s0 }
  0x8a   :  { %v1638_v27 = vpop.permute.xlu1 %366 }
  0x8b   :  { %2313 = vst [vmem:[#allocation23_spill] sm:$0xff] %v1638_v27  ;;  %v1640_v25 = vpop.permute.xlu0 %364 }
  0x8c   :  { %2314 = vst [vmem:[#allocation24_spill] sm:$0xff] %v1640_v25  ;;  %610 = vrot.lane.b32.xlu1 %v1152_v21, %s1093_s0 }
  0x8d   :  { %608 = vrot.lane.b32.xlu0 %v1141_v18, %s1093_s0 }
  0x8e   :  { %v1646_v53 = vpop.permute.xlu1 %370 }
  0x8f   :  { %2315 = vst [vmem:[#allocation25_spill] sm:$0xff] %v1646_v53  ;;  %v1648_v40 = vpop.permute.xlu0 %368 }
  0x90   :  { %2316 = vst [vmem:[#allocation26_spill] sm:$0xff] %v1648_v40  ;;  %614 = vrot.lane.b32.xlu1 %v1172_v31, %s1093_s0 }
  0x91   :  { %612 = vrot.lane.b32.xlu0 %v1175_v32, %s1093_s0 }
  0x92   :  { %v1654_v57 = vpop.permute.xlu1 %374 }
  0x93   :  { %2317 = vst [vmem:[#allocation27_spill] sm:$0xff] %v1654_v57  ;;  %v1656_v27 = vpop.permute.xlu0 %372 }
  0x94   :  { %2318 = vst [vmem:[#allocation28_spill] sm:$0xff] %v1656_v27  ;;  %618 = vrot.lane.b32.xlu1 %v1186_v35, %s1093_s0 }
  0x95   :  { %616 = vrot.lane.b32.xlu0 %v1189_v36, %s1093_s0 }
  0x96   :  { %v1662_v25 = vpop.permute.xlu1 %378 }
  0x97   :  { %2319 = vst [vmem:[#allocation29_spill] sm:$0xff] %v1662_v25  ;;  %v1664_v53 = vpop.permute.xlu0 %376 }
  0x98   :  { %2320 = vst [vmem:[#allocation30_spill] sm:$0xff] %v1664_v53  ;;  %622 = vrot.lane.b32.xlu1 %v1209_v58, %s1093_s0  ;;  %v2325_v53 = vld [vmem:[#allocation6_spill] sm:$0xff] }
  0x99   :  { %620 = vrot.lane.b32.xlu0 %v1212_v59, %s1093_s0 }
  0x9a   :  { %v1670_v40 = vpop.permute.xlu1 %382 }
  0x9b   :  { %2321 = vst [vmem:[#allocation31_spill] sm:$0xff] %v1670_v40  ;;  %v1672_v57 = vpop.permute.xlu0 %380 }
  0x9c   :  { %2322 = vst [vmem:[#allocation32_spill] sm:$0xff] %v1672_v57  ;;  %626 = vrot.lane.b32.xlu1 %v1232_v9, %s1093_s0  ;;  %v2328_v57 = vld [vmem:[#allocation7_spill] sm:$0xff]  ;;  %v2329_v9 = vld [vmem:[#allocation8_spill] sm:$0xff] }
  0x9d   :  { %624 = vrot.lane.b32.xlu0 %v1235_v10, %s1093_s0 }
  0x9e   :  { %v1678_v27 = vpop.permute.xlu1 %386 }
  0x9f   :  { %2323 = vst [vmem:[#allocation33_spill] sm:$0xff] %v1678_v27  ;;  %v1680_v25 = vpop.permute.xlu0 %384 }
  0xa0   :  { %2324 = vst [vmem:[#allocation34_spill] sm:$0xff] %v1680_v25  ;;  %630 = vrot.lane.b32.xlu1 %v1240_v13, %s1093_s0  ;;  %v2332_v25 = vld [vmem:[#allocation9_spill] sm:$0xff]  ;;  %v2333_v13 = vld [vmem:[#allocation10_spill] sm:$0xff] }
  0xa1   :  { %628 = vrot.lane.b32.xlu0 %v2325_v53, %s1093_s0 }
  0xa2   :  { %v1686_v59 = vpop.permute.xlu1 %390 }
  0xa3   :  { %2326 = vst [vmem:[#allocation35_spill] sm:$0xff] %v1686_v59  ;;  %v1688_v40 = vpop.permute.xlu0 %388 }
  0xa4   :  { %2327 = vst [vmem:[#allocation36_spill] sm:$0xff] %v1688_v40  ;;  %634 = vrot.lane.b32.xlu1 %v2328_v57, %s1093_s0  ;;  %v2336_v40 = vld [vmem:[#allocation11_spill] sm:$0xff] }
  0xa5   :  { %632 = vrot.lane.b32.xlu0 %v2329_v9, %s1093_s0 }
  0xa6   :  { %v1694_v10 = vpop.permute.xlu1 %394 }
  0xa7   :  { %2330 = vst [vmem:[#allocation7_spill] sm:$0xff] %v1694_v10  ;;  %v1696_v27 = vpop.permute.xlu0 %392 }
  0xa8   :  { %2331 = vst [vmem:[#allocation37_spill] sm:$0xff] %v1696_v27  ;;  %638 = vrot.lane.b32.xlu1 %v2332_v25, %s1093_s0 }
  0xa9   :  { %636 = vrot.lane.b32.xlu0 %v2333_v13, %s1093_s0 }
  0xaa   :  { %v1702_v53 = vpop.permute.xlu1 %398 }
  0xab   :  { %2334 = vst [vmem:[#allocation9_spill] sm:$0xff] %v1702_v53  ;;  %v1704_v59 = vpop.permute.xlu0 %396 }
  0xac   :  { %2335 = vst [vmem:[#allocation10_spill] sm:$0xff] %v1704_v59  ;;  %642 = vrot.lane.b32.xlu1 %v2336_v40, %s1093_s0  ;;  %v2341_v59 = vld [vmem:[#allocation13_spill] sm:$0xff]  ;;  %v2342_v40 = vld [vmem:[#allocation14_spill] sm:$0xff] }
  0xad   :  { %640 = vrot.lane.b32.xlu0 %v1271_v28, %s1093_s0 }
  0xae   :  { %v1710_v9 = vpop.permute.xlu1 %402 }
  0xaf   :  { %2337 = vst [vmem:[#allocation38_spill] sm:$0xff] %v1710_v9  ;;  %v1712_v10 = vpop.permute.xlu0 %400 }
  0xb0   :  { %2338 = vst [vmem:[#allocation39_spill] sm:$0xff] %v1712_v10  ;;  %646 = vrot.lane.b32.xlu1 %v1274_v29, %s1093_s0 }
  0xb1   :  { %644 = vrot.lane.b32.xlu0 %v1277_v30, %s1093_s0 }
  0xb2   :  { %v1718_v27 = vpop.permute.xlu1 %406 }
  0xb3   :  { %2339 = vst [vmem:[#allocation40_spill] sm:$0xff] %v1718_v27  ;;  %v1720_v53 = vpop.permute.xlu0 %404 }
  0xb4   :  { %2340 = vst [vmem:[#allocation41_spill] sm:$0xff] %v1720_v53  ;;  %650 = vrot.lane.b32.xlu1 %v2341_v59, %s1093_s0 }
  0xb5   :  { %648 = vrot.lane.b32.xlu0 %v2342_v40, %s1093_s0 }
  0xb6   :  { %v1726_v28 = vpop.permute.xlu1 %410 }
  0xb7   :  { %2343 = vst [vmem:[#allocation13_spill] sm:$0xff] %v1726_v28  ;;  %v1728_v9 = vpop.permute.xlu0 %408 }
  0xb8   :  { %2344 = vst [vmem:[#allocation14_spill] sm:$0xff] %v1728_v9  ;;  %654 = vrot.lane.b32.xlu1 %v1499_v56, %s1093_s0 }
  0xb9   :  { %652 = vrot.lane.b32.xlu0 %v1508_v41, %s1093_s0 }
  0xba   :  { %v1734_v10 = vpop.permute.xlu1 %414 }
  0xbb   :  { %2345 = vst [vmem:[#allocation42_spill] sm:$0xff] %v1734_v10  ;;  %v1736_v27 = vpop.permute.xlu0 %412 }
  0xbc   :  { %2346 = vst [vmem:[#allocation43_spill] sm:$0xff] %v1736_v27  ;;  %658 = vrot.lane.b32.xlu1 %v1519_v14, %s1093_s0 }
  0xbd   :  { %656 = vrot.lane.b32.xlu0 %v1525_v17, %s1093_s0 }
  0xbe   :  { %v1742_v53 = vpop.permute.xlu1 %418 }
  0xbf   :  { %2347 = vst [vmem:[#allocation44_spill] sm:$0xff] %v1742_v53  ;;  %v1744_v28 = vpop.permute.xlu0 %416 }
  0xc0   :  { %2348 = vst [vmem:[#allocation45_spill] sm:$0xff] %v1744_v28  ;;  %662 = vrot.lane.b32.xlu1 %v1531_v60, %s1093_s0 }
  0xc1   :  { %660 = vrot.lane.b32.xlu0 %v1537_v34, %s1093_s0 }
  0xc2   :  { %v1750_v9 = vpop.permute.xlu1 %422 }
  0xc3   :  { %2349 = vst [vmem:[#allocation46_spill] sm:$0xff] %v1750_v9  ;;  %v1752_v10 = vpop.permute.xlu0 %420 }
  0xc4   :  { %2350 = vst [vmem:[#allocation47_spill] sm:$0xff] %v1752_v10  ;;  %666 = vrot.lane.b32.xlu1 %v1543_v50, %s1093_s0 }
  0xc5   :  { %664 = vrot.lane.b32.xlu0 %v1548_v38, %s1093_s0 }
  0xc6   :  { %v1758_v27 = vpop.permute.xlu1 %426 }
  0xc7   :  { %2351 = vst [vmem:[#allocation48_spill] sm:$0xff] %v1758_v27  ;;  %v1760_v53 = vpop.permute.xlu0 %424 }
  0xc8   :  { %2352 = vst [vmem:[#allocation49_spill] sm:$0xff] %v1760_v53  ;;  %670 = vrot.lane.b32.xlu1 %v1318_v61, %s1093_s0 }
  0xc9   :  { %668 = vrot.lane.b32.xlu0 %v1321_v62, %s1093_s0 }
  0xca   :  { %v1766_v28 = vpop.permute.xlu1 %430 }
  0xcb   :  { %2353 = vst [vmem:[#allocation50_spill] sm:$0xff] %v1766_v28  ;;  %v1768_v9 = vpop.permute.xlu0 %428 }
  0xcc   :  { %2354 = vst [vmem:[#allocation51_spill] sm:$0xff] %v1768_v9  ;;  %674 = vrot.lane.b32.xlu1 %v1332_v4, %s1093_s0 }
  0xcd   :  { %672 = vrot.lane.b32.xlu0 %v1335_v5, %s1093_s0 }
  0xce   :  { %v1774_v10 = vpop.permute.xlu1 %434 }
  0xcf   :  { %2355 = vst [vmem:[#allocation52_spill] sm:$0xff] %v1774_v10  ;;  %v1776_v27 = vpop.permute.xlu0 %432 }
  0xd0   :  { %2356 = vst [vmem:[#allocation53_spill] sm:$0xff] %v1776_v27  ;;  %678 = vrot.lane.b32.xlu1 %v1338_v6, %s1093_s0 }
  0xd1   :  { %676 = vrot.lane.b32.xlu0 %v1341_v8, %s1093_s0 }
  0xd2   :  { %v1782_v53 = vpop.permute.xlu1 %438 }
  0xd3   :  { %2357 = vst [vmem:[#allocation54_spill] sm:$0xff] %v1782_v53  ;;  %v1784_v28 = vpop.permute.xlu0 %436 }
  0xd4   :  { %2358 = vst [vmem:[#allocation55_spill] sm:$0xff] %v1784_v28  ;;  %682 = vrot.lane.b32.xlu1 %v1349_v12, %s1093_s0 }
  0xd5   :  { %680 = vrot.lane.b32.xlu0 %v1352_v15, %s1093_s0 }
  0xd6   :  { %v1790_v9 = vpop.permute.xlu1 %442 }
  0xd7   :  { %2359 = vst [vmem:[#allocation56_spill] sm:$0xff] %v1790_v9  ;;  %v1792_v10 = vpop.permute.xlu0 %440 }
  0xd8   :  { %2360 = vst [vmem:[#allocation57_spill] sm:$0xff] %v1792_v10  ;;  %686 = vrot.lane.b32.xlu1 %v1368_v54, %s1093_s0 }
  0xd9   :  { %684 = vrot.lane.b32.xlu0 %v1371_v55, %s1093_s0 }
  0xda   :  { %v1798_v27 = vpop.permute.xlu1 %446 }
  0xdb   :  { %2361 = vst [vmem:[#allocation58_spill] sm:$0xff] %v1798_v27  ;;  %v1800_v53 = vpop.permute.xlu0 %444 }
  0xdc   :  { %2362 = vst [vmem:[#allocation59_spill] sm:$0xff] %v1800_v53  ;;  %690 = vrot.lane.b32.xlu1 %v1384_v0, %s1093_s0 }
  0xdd   :  { %688 = vrot.lane.b32.xlu0 %v1387_v2, %s1093_s0 }
  0xde   :  { %v1806_v28 = vpop.permute.xlu1 %450 }
  0xdf   :  { %2363 = vst [vmem:[#allocation60_spill] sm:$0xff] %v1806_v28  ;;  %v1808_v9 = vpop.permute.xlu0 %448 }
  0xe0   :  { %2364 = vst [vmem:[#allocation61_spill] sm:$0xff] %v1808_v9  ;;  %694 = vrot.lane.b32.xlu1 %v1390_v3, %s1093_s0 }
  0xe1   :  { %692 = vrot.lane.b32.xlu0 %v1393_v11, %s1093_s0 }
  0xe2   :  { %v1814_v10 = vpop.permute.xlu1 %454 }
  0xe3   :  { %2365 = vst [vmem:[#allocation62_spill] sm:$0xff] %v1814_v10  ;;  %v1816_v27 = vpop.permute.xlu0 %452 }
  0xe4   :  { %2366 = vst [vmem:[#allocation63_spill] sm:$0xff] %v1816_v27  ;;  %698 = vrot.lane.b32.xlu1 %v1399_v26, %s1093_s0 }
  0xe5   :  { %696 = vrot.lane.b32.xlu0 %v1402_v33, %s1093_s0 }
  0xe6   :  { %v1822_v53 = vpop.permute.xlu1 %458 }
  0xe7   :  { %2367 = vst [vmem:[#allocation64_spill] sm:$0xff] %v1822_v53  ;;  %v1824_v28 = vpop.permute.xlu0 %456 }
  0xe8   :  { %2368 = vst [vmem:[#allocation65_spill] sm:$0xff] %v1824_v28  ;;  %702 = vrot.lane.b32.xlu1 %v1418_v63, %s1093_s0 }
  0xe9   :  { %700 = vrot.lane.b32.xlu0 %v1421_v16, %s1093_s0 }
  0xea   :  { %v1830_v9 = vpop.permute.xlu1 %462 }
  0xeb   :  { %2369 = vst [vmem:[#allocation66_spill] sm:$0xff] %v1830_v9  ;;  %v1832_v10 = vpop.permute.xlu0 %460 }
  0xec   :  { %2370 = vst [vmem:[#allocation67_spill] sm:$0xff] %v1832_v10  ;;  %706 = vrot.lane.b32.xlu1 %v1432_v46, %s1093_s0 }
  0xed   :  { %704 = vrot.lane.b32.xlu0 %v1435_v47, %s1093_s0 }
  0xee   :  { %v1838_v27 = vpop.permute.xlu1 %466 }
  0xef   :  { %2371 = vst [vmem:[#allocation68_spill] sm:$0xff] %v1838_v27  ;;  %v1840_v53 = vpop.permute.xlu0 %464 }
  0xf0   :  { %2372 = vst [vmem:[#allocation69_spill] sm:$0xff] %v1840_v53  ;;  %710 = vrot.lane.b32.xlu1 %v1438_v48, %s1093_s0  ;;  %v541_v53 = vadd.f32 %v1616_v42, %v1159_v24  ;;  %v2380_v42 = vld [vmem:[#allocation22_spill] sm:$0xff] }
  0xf1   :  { %708 = vrot.lane.b32.xlu0 %v1441_v49, %s1093_s0 }
  0xf2   :  { %v1846_v28 = vpop.permute.xlu1 %470 }
  0xf3   :  { %2373 = vst [vmem:[#allocation70_spill] sm:$0xff] %v1846_v28  ;;  %v1848_v9 = vpop.permute.xlu0 %468 }
  0xf4   :  { %2374 = vst [vmem:[#allocation71_spill] sm:$0xff] %v1848_v9  ;;  %714 = vrot.lane.b32.xlu1 %v1449_v51, %s1093_s0  ;;  %v540_v9 = vadd.f32 %v1608_v7, %v1144_v19  ;;  %v542_v19 = vadd.f32 %v1606_v1, %v1141_v18  ;;  %v2376_v18 = vld [vmem:[#allocation18_spill] sm:$0xff]  ;;  %v2378_v7 = vld [vmem:[#allocation21_spill] sm:$0xff] }
  0xf5   :  { %712 = vrot.lane.b32.xlu0 %v1452_v52, %s1093_s0 }
  0xf6   :  { %v1854_v10 = vpop.permute.xlu1 %474 }
  0xf7   :  { %v1856_v27 = vpop.permute.xlu0 %472 }
  0xf8   :  { %2375 = vst [vmem:[#allocation72_spill] sm:$0xff] %v1856_v27  ;;  %718 = vrot.lane.b32.xlu1 %v1465_v44, %s1093_s0  ;;  %v543_v27 = vadd.f32 %v1614_v37, %v1152_v21  ;;  %v547_v37 = vadd.f32 %v2378_v7, %v1186_v35  ;;  %v2385_v7 = vld [vmem:[#allocation25_spill] sm:$0xff] }
  0xf9   :  { %716 = vrot.lane.b32.xlu0 %v1468_v45, %s1093_s0 }
  0xfa   :  { %v607_v28 = vpop.permute.xlu1 %606 }
  0xfb   :  { %v797_v51 = vadd.f32 %v607_v28, %v541_v53  ;;  %v605_v52 = vpop.permute.xlu0 %604 }
  0xfc   :  { %v796_v49 = vadd.f32 %v605_v52, %v540_v9  ;;  %722 = vrot.lane.b32.xlu1 %v1478_v39, %s1093_s0 }
  0xfd   :  { %862 = vst.msk [vmem:[%s2261_s3 + $0x8] sm:$0xff] %vm860_vm0, %v797_v51  ;;  %720 = vrot.lane.b32.xlu0 %v1481_v23, %s1093_s0  ;;  %v545_v51 = vadd.f32 %v1622_v43, %v1172_v31  ;;  %v546_v43 = vadd.f32 %v2380_v42, %v1189_v36  ;;  %v2387_v42 = vld [vmem:[#allocation26_spill] sm:$0xff] }
  0xfe   :  { %861 = vst.msk [vmem:[%s2261_s3] sm:$0xff] %vm860_vm0, %v796_v49  ;;  %v611_v24 = vpop.permute.xlu1 %610  ;;  %v2377_v49 = vld [vmem:[#allocation20_spill] sm:$0xff] }
  0xff   :  { %v799_v9 = vadd.f32 %v611_v24, %v543_v27  ;;  %v609_v28 = vpop.permute.xlu0 %608  ;;  %v544_v52 = vadd.f32 %v2377_v49, %v1175_v32  ;;  %v2379_v32 = vld [vmem:[#allocation19_spill] sm:$0xff]  ;;  %v2383_v49 = vld [vmem:[#allocation24_spill] sm:$0xff] }
 0x100   :  { %v798_v21 = vadd.f32 %v609_v28, %v542_v19  ;;  %726 = vrot.lane.b32.xlu1 %v1484_v22, %s1093_s0  ;;  %v2381_v28 = vld [vmem:[#allocation23_spill] sm:$0xff] }
 0x101   :  { %864 = vst.msk [vmem:[%s2261_s3 + $0x18] sm:$0xff] %vm860_vm0, %v799_v9  ;;  %724 = vrot.lane.b32.xlu0 %v2376_v18, %s1093_s0 }
 0x102   :  { %863 = vst.msk [vmem:[%s2261_s3 + $0x10] sm:$0xff] %vm860_vm0, %v798_v21  ;;  %v615_v27 = vpop.permute.xlu1 %614  ;;  %v549_v21 = vadd.f32 %v2381_v28, %v1209_v58  ;;  %v2388_v28 = vld [vmem:[#allocation5_spill] sm:$0xff] }
 0x103   :  { %v801_v53 = vadd.f32 %v615_v27, %v545_v51  ;;  %v613_v1 = vpop.permute.xlu0 %612  ;;  %v2382_v51 = vld [vmem:[#allocation2_spill] sm:$0xff] }
 0x104   :  { %v800_v31 = vadd.f32 %v613_v1, %v544_v52  ;;  %730 = vrot.lane.b32.xlu1 %v1490_v20, %s1093_s0  ;;  %v548_v36 = vadd.f32 %v2383_v49, %v2382_v51  ;;  %v2390_v49 = vld [vmem:[#allocation6_spill] sm:$0xff] }
 0x105   :  { %866 = vst.msk [vmem:[%s2261_s3 + $0x28] sm:$0xff] %vm860_vm0, %v801_v53  ;;  %728 = vrot.lane.b32.xlu0 %v2379_v32, %s1093_s0 }
 0x106   :  { %865 = vst.msk [vmem:[%s2261_s3 + $0x20] sm:$0xff] %vm860_vm0, %v800_v31  ;;  %v619_v19 = vpop.permute.xlu1 %618  ;;  %v2384_v31 = vld [vmem:[#allocation3_spill] sm:$0xff] }
 0x107   :  { %v803_v24 = vadd.f32 %v619_v19, %v547_v37  ;;  %v617_v9 = vpop.permute.xlu0 %616  ;;  %v551_v58 = vadd.f32 %v2385_v7, %v2384_v31  ;;  %v2386_v37 = vld [vmem:[#allocation4_spill] sm:$0xff]  ;;  %v2392_v7 = vld [vmem:[#allocation29_spill] sm:$0xff] }
 0x108   :  { %v802_v35 = vadd.f32 %v617_v9, %v546_v43  ;;  %v550_v43 = vadd.f32 %v2387_v42, %v2386_v37  ;;  %v2393_v37 = vld [vmem:[#allocation8_spill] sm:$0xff]  ;;  %v2394_v42 = vld [vmem:[#allocation30_spill] sm:$0xff] }
 0x109   :  { %868 = vst.msk [vmem:[%s2261_s3 + $0x38] sm:$0xff] %vm860_vm0, %v803_v24 }
 0x10a   :  { %867 = vst.msk [vmem:[%s2261_s3 + $0x30] sm:$0xff] %vm860_vm0, %v802_v35  ;;  %v623_v52 = vpop.permute.xlu1 %622 }
 0x10b   :  { %v805_v27 = vadd.f32 %v623_v52, %v549_v21  ;;  %v621_v53 = vpop.permute.xlu0 %620  ;;  %v2389_v21 = vld [vmem:[#allocation27_spill] sm:$0xff] }
 0x10c   :  { %v804_v1 = vadd.f32 %v621_v53, %v548_v36  ;;  %v553_v51 = vadd.f32 %v2389_v21, %v2388_v28  ;;  %v2391_v36 = vld [vmem:[#allocation28_spill] sm:$0xff]  ;;  %v2395_v28 = vld [vmem:[#allocation31_spill] sm:$0xff] }
 0x10d   :  { %870 = vst.msk [vmem:[%s2261_s3 + $0x48] sm:$0xff] %vm860_vm0, %v805_v27  ;;  %v552_v52 = vadd.f32 %v2391_v36, %v2390_v49  ;;  %v2396_v21 = vld [vmem:[#allocation32_spill] sm:$0xff] }
 0x10e   :  { %869 = vst.msk [vmem:[%s2261_s3 + $0x40] sm:$0xff] %vm860_vm0, %v804_v1  ;;  %v627_v19 = vpop.permute.xlu1 %626 }
 0x10f   :  { %v807_v24 = vadd.f32 %v627_v19, %v551_v58  ;;  %v625_v9 = vpop.permute.xlu0 %624  ;;  %v555_v58 = vadd.f32 %v2392_v7, %v2328_v57  ;;  %v557_v57 = vadd.f32 %v2395_v28, %v2332_v25  ;;  %v2400_v7 = vld [vmem:[#allocation34_spill] sm:$0xff] }
 0x110   :  { %v806_v35 = vadd.f32 %v625_v9, %v550_v43  ;;  %v554_v43 = vadd.f32 %v2394_v42, %v2393_v37 }
 0x111   :  { %872 = vst.msk [vmem:[%s2261_s3 + $0x58] sm:$0xff] %vm860_vm0, %v807_v24 }
 0x112   :  { %871 = vst.msk [vmem:[%s2261_s3 + $0x50] sm:$0xff] %vm860_vm0, %v806_v35  ;;  %v631_v27 = vpop.permute.xlu1 %630 }
 0x113   :  { %v809_v53 = vadd.f32 %v631_v27, %v553_v51  ;;  %v629_v1 = vpop.permute.xlu0 %628  ;;  %v556_v51 = vadd.f32 %v2396_v21, %v2333_v13 }
 0x114   :  { %v808_v31 = vadd.f32 %v629_v1, %v552_v52  ;;  %v2398_v1 = vld [vmem:[#allocation33_spill] sm:$0xff] }
 0x115   :  { %874 = vst.msk [vmem:[%s2261_s3 + $0x68] sm:$0xff] %vm860_vm0, %v809_v53  ;;  %v2397_v53 = vld [vmem:[#allocation11_spill] sm:$0xff] }
 0x116   :  { %873 = vst.msk [vmem:[%s2261_s3 + $0x60] sm:$0xff] %vm860_vm0, %v808_v31  ;;  %v635_v19 = vpop.permute.xlu1 %634  ;;  %v559_v25 = vadd.f32 %v2398_v1, %v2397_v53  ;;  %v2399_v31 = vld [vmem:[#allocation12_spill] sm:$0xff] }
 0x117   :  { %v811_v24 = vadd.f32 %v635_v19, %v555_v58  ;;  %v633_v9 = vpop.permute.xlu0 %632  ;;  %v558_v13 = vadd.f32 %v2400_v7, %v2399_v31  ;;  %v2401_v19 = vld [vmem:[#allocation35_spill] sm:$0xff]  ;;  %v2406_v31 = vld [vmem:[#allocation10_spill] sm:$0xff] }
 0x118   :  { %v810_v35 = vadd.f32 %v633_v9, %v554_v43  ;;  %v2402_v9 = vld [vmem:[#allocation36_spill] sm:$0xff] }
 0x119   :  { %876 = vst.msk [vmem:[%s2261_s3 + $0x78] sm:$0xff] %vm860_vm0, %v811_v24  ;;  %v561_v24 = vadd.f32 %v2401_v19, %v1274_v29 }
 0x11a   :  { %875 = vst.msk [vmem:[%s2261_s3 + $0x70] sm:$0xff] %vm860_vm0, %v810_v35  ;;  %v639_v49 = vpop.permute.xlu1 %638  ;;  %v560_v35 = vadd.f32 %v2402_v9, %v1277_v30 }
 0x11b   :  { %v813_v36 = vadd.f32 %v639_v49, %v557_v57  ;;  %v637_v52 = vpop.permute.xlu0 %636  ;;  %v2403_v49 = vld [vmem:[#allocation7_spill] sm:$0xff] }
 0x11c   :  { %v812_v27 = vadd.f32 %v637_v52, %v556_v51  ;;  %v563_v29 = vadd.f32 %v2403_v49, %v2341_v59 }
 0x11d   :  { %878 = vst.msk [vmem:[%s2261_s3 + $0x88] sm:$0xff] %vm860_vm0, %v813_v36  ;;  %v2404_v36 = vld [vmem:[#allocation37_spill] sm:$0xff] }
 0x11e   :  { %877 = vst.msk [vmem:[%s2261_s3 + $0x80] sm:$0xff] %vm860_vm0, %v812_v27  ;;  %v643_v58 = vpop.permute.xlu1 %642  ;;  %v562_v30 = vadd.f32 %v2404_v36, %v2342_v40  ;;  %v564_v40 = vadd.f32 %v2406_v31, %v1508_v41  ;;  %v2411_v36 = vld [vmem:[#allocation13_spill] sm:$0xff] }
 0x11f   :  { %v815_v37 = vadd.f32 %v643_v58, %v559_v25  ;;  %v641_v42 = vpop.permute.xlu0 %640  ;;  %v2405_v25 = vld [vmem:[#allocation9_spill] sm:$0xff] }
 0x120   :  { %v814_v43 = vadd.f32 %v641_v42, %v558_v13  ;;  %v565_v59 = vadd.f32 %v2405_v25, %v1499_v56  ;;  %v2407_v42 = vld [vmem:[#allocation38_spill] sm:$0xff] }
 0x121   :  { %880 = vst.msk [vmem:[%s2261_s3 + $0x98] sm:$0xff] %vm860_vm0, %v815_v37  ;;  %v567_v56 = vadd.f32 %v2407_v42, %v1519_v14  ;;  %v2413_v25 = vld [vmem:[#allocation42_spill] sm:$0xff] }
 0x122   :  { %879 = vst.msk [vmem:[%s2261_s3 + $0x90] sm:$0xff] %vm860_vm0, %v814_v43  ;;  %v647_v28 = vpop.permute.xlu1 %646  ;;  %v2408_v43 = vld [vmem:[#allocation39_spill] sm:$0xff] }
 0x123   :  { %v817_v57 = vadd.f32 %v647_v28, %v561_v24  ;;  %v645_v21 = vpop.permute.xlu0 %644  ;;  %v566_v41 = vadd.f32 %v2408_v43, %v1525_v17  ;;  %v2409_v28 = vld [vmem:[#allocation40_spill] sm:$0xff] }
 0x124   :  { %v816_v51 = vadd.f32 %v645_v21, %v560_v35  ;;  %v569_v14 = vadd.f32 %v2409_v28, %v1531_v60  ;;  %v571_v60 = vadd.f32 %v2411_v36, %v1543_v50  ;;  %v573_v50 = vadd.f32 %v2413_v25, %v1318_v61  ;;  %v2421_v36 = vld [vmem:[#allocation50_spill] sm:$0xff] }
 0x125   :  { %882 = vst.msk [vmem:[%s2261_s3 + $0xa8] sm:$0xff] %vm860_vm0, %v817_v57  ;;  %v2410_v57 = vld [vmem:[#allocation41_spill] sm:$0xff] }
 0x126   :  { %881 = vst.msk [vmem:[%s2261_s3 + $0xa0] sm:$0xff] %vm860_vm0, %v816_v51  ;;  %v651_v52 = vpop.permute.xlu1 %650  ;;  %v568_v17 = vadd.f32 %v2410_v57, %v1537_v34  ;;  %v2419_v57 = vld [vmem:[#allocation48_spill] sm:$0xff] }
 0x127   :  { %v819_v27 = vadd.f32 %v651_v52, %v563_v29  ;;  %v649_v53 = vpop.permute.xlu0 %648 }
 0x128   :  { %v818_v1 = vadd.f32 %v649_v53, %v562_v30  ;;  %v2412_v30 = vld [vmem:[#allocation14_spill] sm:$0xff] }
 0x129   :  { %884 = vst.msk [vmem:[%s2261_s3 + $0xb8] sm:$0xff] %vm860_vm0, %v819_v27  ;;  %v570_v34 = vadd.f32 %v2412_v30, %v1548_v38 }
 0x12a   :  { %883 = vst.msk [vmem:[%s2261_s3 + $0xb0] sm:$0xff] %vm860_vm0, %v818_v1  ;;  %v655_v7 = vpop.permute.xlu1 %654 }
 0x12b   :  { %v821_v13 = vadd.f32 %v655_v7, %v565_v59  ;;  %v653_v58 = vpop.permute.xlu0 %652  ;;  %v2414_v59 = vld [vmem:[#allocation43_spill] sm:$0xff] }
 0x12c   :  { %v820_v37 = vadd.f32 %v653_v58, %v564_v40  ;;  %v572_v38 = vadd.f32 %v2414_v59, %v1321_v62  ;;  %v2415_v58 = vld [vmem:[#allocation44_spill] sm:$0xff] }
 0x12d   :  { %886 = vst.msk [vmem:[%s2261_s3 + $0xc8] sm:$0xff] %vm860_vm0, %v821_v13  ;;  %v575_v61 = vadd.f32 %v2415_v58, %v1332_v4 }
 0x12e   :  { %885 = vst.msk [vmem:[%s2261_s3 + $0xc0] sm:$0xff] %vm860_vm0, %v820_v37  ;;  %v659_v19 = vpop.permute.xlu1 %658  ;;  %v2416_v37 = vld [vmem:[#allocation45_spill] sm:$0xff] }
 0x12f   :  { %v823_v24 = vadd.f32 %v659_v19, %v567_v56  ;;  %v657_v9 = vpop.permute.xlu0 %656  ;;  %v574_v62 = vadd.f32 %v2416_v37, %v1335_v5  ;;  %v2417_v19 = vld [vmem:[#allocation46_spill] sm:$0xff]  ;;  %v2427_v37 = vld [vmem:[#allocation56_spill] sm:$0xff] }
 0x130   :  { %v822_v35 = vadd.f32 %v657_v9, %v566_v41  ;;  %v577_v4 = vadd.f32 %v2417_v19, %v1338_v6  ;;  %v579_v6 = vadd.f32 %v2419_v57, %v1349_v12  ;;  %v581_v12 = vadd.f32 %v2421_v36, %v1368_v54  ;;  %v2429_v19 = vld [vmem:[#allocation58_spill] sm:$0xff] }
 0x131   :  { %888 = vst.msk [vmem:[%s2261_s3 + $0xd8] sm:$0xff] %vm860_vm0, %v823_v24  ;;  %v2418_v24 = vld [vmem:[#allocation47_spill] sm:$0xff] }
 0x132   :  { %887 = vst.msk [vmem:[%s2261_s3 + $0xd0] sm:$0xff] %vm860_vm0, %v822_v35  ;;  %v663_v21 = vpop.permute.xlu1 %662  ;;  %v576_v5 = vadd.f32 %v2418_v24, %v1341_v8 }
 0x133   :  { %v825_v51 = vadd.f32 %v663_v21, %v569_v14  ;;  %v661_v49 = vpop.permute.xlu0 %660 }
 0x134   :  { %v824_v29 = vadd.f32 %v661_v49, %v568_v17  ;;  %v2420_v17 = vld [vmem:[#allocation49_spill] sm:$0xff] }
 0x135   :  { %890 = vst.msk [vmem:[%s2261_s3 + $0xe8] sm:$0xff] %vm860_vm0, %v825_v51  ;;  %v578_v8 = vadd.f32 %v2420_v17, %v1352_v15 }
 0x136   :  { %889 = vst.msk [vmem:[%s2261_s3 + $0xe0] sm:$0xff] %vm860_vm0, %v824_v29  ;;  %v667_v52 = vpop.permute.xlu1 %666 }
 0x137   :  { %v827_v27 = vadd.f32 %v667_v52, %v571_v60  ;;  %v665_v53 = vpop.permute.xlu0 %664  ;;  %v2422_v60 = vld [vmem:[#allocation51_spill] sm:$0xff] }
 0x138   :  { %v826_v1 = vadd.f32 %v665_v53, %v570_v34  ;;  %v580_v15 = vadd.f32 %v2422_v60, %v1371_v55  ;;  %v2423_v53 = vld [vmem:[#allocation52_spill] sm:$0xff] }
 0x139   :  { %892 = vst.msk [vmem:[%s2261_s3 + $0xf8] sm:$0xff] %vm860_vm0, %v827_v27  ;;  %v583_v54 = vadd.f32 %v2423_v53, %v1384_v0 }
 0x13a   :  { %891 = vst.msk [vmem:[%s2261_s3 + $0xf0] sm:$0xff] %vm860_vm0, %v826_v1  ;;  %v671_v31 = vpop.permute.xlu1 %670  ;;  %v2424_v1 = vld [vmem:[#allocation53_spill] sm:$0xff] }
 0x13b   :  { %v829_v40 = vadd.f32 %v671_v31, %v573_v50  ;;  %v669_v7 = vpop.permute.xlu0 %668  ;;  %v582_v55 = vadd.f32 %v2424_v1, %v1387_v2  ;;  %v2425_v31 = vld [vmem:[#allocation54_spill] sm:$0xff] }
 0x13c   :  { %v828_v13 = vadd.f32 %v669_v7, %v572_v38  ;;  %v585_v0 = vadd.f32 %v2425_v31, %v1390_v3  ;;  %v587_v3 = vadd.f32 %v2427_v37, %v1399_v26  ;;  %v589_v26 = vadd.f32 %v2429_v19, %v1418_v63  ;;  %v2446_v19 = vld [vmem:[#allocation72_spill] sm:$0xff] }
 0x13d   :  { %894 = vst.msk [vmem:[%s2261_s3 + $0x108] sm:$0xff] %vm860_vm0, %v829_v40  ;;  %v2426_v40 = vld [vmem:[#allocation55_spill] sm:$0xff] }
 0x13e   :  { %893 = vst.msk [vmem:[%s2261_s3 + $0x100] sm:$0xff] %vm860_vm0, %v828_v13  ;;  %v675_v42 = vpop.permute.xlu1 %674  ;;  %v584_v2 = vadd.f32 %v2426_v40, %v1393_v11 }
 0x13f   :  { %v831_v56 = vadd.f32 %v675_v42, %v575_v61  ;;  %v673_v43 = vpop.permute.xlu0 %672 }
 0x140   :  { %v830_v41 = vadd.f32 %v673_v43, %v574_v62  ;;  %v2428_v62 = vld [vmem:[#allocation57_spill] sm:$0xff] }
 0x141   :  { %896 = vst.msk [vmem:[%s2261_s3 + $0x118] sm:$0xff] %vm860_vm0, %v831_v56  ;;  %v586_v11 = vadd.f32 %v2428_v62, %v1402_v33  ;;  %v2444_v62 = vld [vmem:[#allocation70_spill] sm:$0xff] }
 0x142   :  { %895 = vst.msk [vmem:[%s2261_s3 + $0x110] sm:$0xff] %vm860_vm0, %v830_v41  ;;  %v679_v9 = vpop.permute.xlu1 %678 }
 0x143   :  { %v833_v35 = vadd.f32 %v679_v9, %v577_v4  ;;  %v677_v28 = vpop.permute.xlu0 %676  ;;  %v2430_v4 = vld [vmem:[#allocation59_spill] sm:$0xff] }
 0x144   :  { %v832_v14 = vadd.f32 %v677_v28, %v576_v5  ;;  %v588_v33 = vadd.f32 %v2430_v4, %v1421_v16  ;;  %v2431_v28 = vld [vmem:[#allocation60_spill] sm:$0xff] }
 0x145   :  { %898 = vst.msk [vmem:[%s2261_s3 + $0x128] sm:$0xff] %vm860_vm0, %v833_v35  ;;  %v591_v63 = vadd.f32 %v2431_v28, %v1432_v46 }
 0x146   :  { %897 = vst.msk [vmem:[%s2261_s3 + $0x120] sm:$0xff] %vm860_vm0, %v832_v14  ;;  %v683_v21 = vpop.permute.xlu1 %682  ;;  %v2432_v14 = vld [vmem:[#allocation61_spill] sm:$0xff] }
 0x147   :  { %v835_v51 = vadd.f32 %v683_v21, %v579_v6  ;;  %v681_v49 = vpop.permute.xlu0 %680  ;;  %v590_v16 = vadd.f32 %v2432_v14, %v1435_v47  ;;  %v2433_v21 = vld [vmem:[#allocation62_spill] sm:$0xff] }
 0x148   :  { %v834_v29 = vadd.f32 %v681_v49, %v578_v8  ;;  %v593_v46 = vadd.f32 %v2433_v21, %v1438_v48  ;;  %v2435_v49 = vld [vmem:[#allocation63_spill] sm:$0xff] }
 0x149   :  { %900 = vst.msk [vmem:[%s2261_s3 + $0x138] sm:$0xff] %vm860_vm0, %v835_v51  ;;  %v2434_v51 = vld [vmem:[#allocation15_spill] sm:$0xff] }
 0x14a   :  { %899 = vst.msk [vmem:[%s2261_s3 + $0x130] sm:$0xff] %vm860_vm0, %v834_v29  ;;  %v687_v30 = vpop.permute.xlu1 %686  ;;  %v592_v47 = vadd.f32 %v2435_v49, %v2434_v51 }
 0x14b   :  { %v837_v34 = vadd.f32 %v687_v30, %v581_v12  ;;  %v685_v52 = vpop.permute.xlu0 %684  ;;  %v2437_v30 = vld [vmem:[#allocation64_spill] sm:$0xff] }
 0x14c   :  { %v836_v27 = vadd.f32 %v685_v52, %v580_v15  ;;  %v2436_v15 = vld [vmem:[#allocation16_spill] sm:$0xff]  ;;  %v2439_v52 = vld [vmem:[#allocation65_spill] sm:$0xff] }
 0x14d   :  { %902 = vst.msk [vmem:[%s2261_s3 + $0x148] sm:$0xff] %vm860_vm0, %v837_v34  ;;  %v595_v48 = vadd.f32 %v2437_v30, %v2436_v15  ;;  %v2438_v34 = vld [vmem:[#allocation17_spill] sm:$0xff] }
 0x14e   :  { %901 = vst.msk [vmem:[%s2261_s3 + $0x140] sm:$0xff] %vm860_vm0, %v836_v27  ;;  %v691_v25 = vpop.permute.xlu1 %690  ;;  %v594_v27 = vadd.f32 %v2439_v52, %v2438_v34 }
 0x14f   :  { %v839_v50 = vadd.f32 %v691_v25, %v583_v54  ;;  %v689_v59 = vpop.permute.xlu0 %688  ;;  %v2440_v25 = vld [vmem:[#allocation66_spill] sm:$0xff] }
 0x150   :  { %v838_v38 = vadd.f32 %v689_v59, %v582_v55  ;;  %v2441_v59 = vld [vmem:[#allocation67_spill] sm:$0xff] }
 0x151   :  { %904 = vst.msk [vmem:[%s2261_s3 + $0x158] sm:$0xff] %vm860_vm0, %v839_v50  ;;  %v597_v50 = vadd.f32 %v2440_v25, %v1465_v44 }
 0x152   :  { %903 = vst.msk [vmem:[%s2261_s3 + $0x150] sm:$0xff] %vm860_vm0, %v838_v38  ;;  %v695_v7 = vpop.permute.xlu1 %694  ;;  %v596_v38 = vadd.f32 %v2441_v59, %v1468_v45 }
 0x153   :  { %v841_v13 = vadd.f32 %v695_v7, %v585_v0  ;;  %v693_v58 = vpop.permute.xlu0 %692  ;;  %v2442_v7 = vld [vmem:[#allocation68_spill] sm:$0xff] }
 0x154   :  { %v840_v61 = vadd.f32 %v693_v58, %v584_v2  ;;  %v599_v44 = vadd.f32 %v2442_v7, %v1478_v39  ;;  %v601_v39 = vadd.f32 %v2444_v62, %v1484_v22  ;;  %v603_v22 = vadd.f32 %v1854_v10, %v1490_v20 }
 0x155   :  { %906 = vst.msk [vmem:[%s2261_s3 + $0x168] sm:$0xff] %vm860_vm0, %v841_v13  ;;  %v2443_v13 = vld [vmem:[#allocation69_spill] sm:$0xff] }
 0x156   :  { %905 = vst.msk [vmem:[%s2261_s3 + $0x160] sm:$0xff] %vm860_vm0, %v840_v61  ;;  %v699_v42 = vpop.permute.xlu1 %698  ;;  %v598_v45 = vadd.f32 %v2443_v13, %v1481_v23 }
 0x157   :  { %v843_v56 = vadd.f32 %v699_v42, %v587_v3  ;;  %v697_v43 = vpop.permute.xlu0 %696 }
 0x158   :  { %v842_v41 = vadd.f32 %v697_v43, %v586_v11  ;;  %v2445_v11 = vld [vmem:[#allocation71_spill] sm:$0xff] }
 0x159   :  { %908 = vst.msk [vmem:[%s2261_s3 + $0x178] sm:$0xff] %vm860_vm0, %v843_v56  ;;  %v600_v23 = vadd.f32 %v2445_v11, %v2376_v18  ;;  %v602_v18 = vadd.f32 %v2446_v19, %v2379_v32 }
 0x15a   :  { %907 = vst.msk [vmem:[%s2261_s3 + $0x170] sm:$0xff] %vm860_vm0, %v842_v41  ;;  %v703_v24 = vpop.permute.xlu1 %702 }
 0x15b   :  { %v845_v5 = vadd.f32 %v703_v24, %v589_v26  ;;  %v701_v9 = vpop.permute.xlu0 %700 }
 0x15c   :  { %v844_v35 = vadd.f32 %v701_v9, %v588_v33 }
 0x15d   :  { %910 = vst.msk [vmem:[%s2261_s3 + $0x188] sm:$0xff] %vm860_vm0, %v845_v5 }
 0x15e   :  { %909 = vst.msk [vmem:[%s2261_s3 + $0x180] sm:$0xff] %vm860_vm0, %v844_v35  ;;  %v707_v57 = vpop.permute.xlu1 %706 }
 0x15f   :  { %v847_v6 = vadd.f32 %v707_v57, %v591_v63  ;;  %v705_v17 = vpop.permute.xlu0 %704 }
 0x160   :  { %v846_v8 = vadd.f32 %v705_v17, %v590_v16 }
 0x161   :  { %912 = vst.msk [vmem:[%s2261_s3 + $0x198] sm:$0xff] %vm860_vm0, %v847_v6 }
 0x162   :  { %911 = vst.msk [vmem:[%s2261_s3 + $0x190] sm:$0xff] %vm860_vm0, %v846_v8  ;;  %v711_v29 = vpop.permute.xlu1 %710 }
 0x163   :  { %v849_v36 = vadd.f32 %v711_v29, %v593_v46  ;;  %v709_v12 = vpop.permute.xlu0 %708 }
 0x164   :  { %v848_v60 = vadd.f32 %v709_v12, %v592_v47 }
 0x165   :  { %914 = vst.msk [vmem:[%s2261_s3 + $0x1a8] sm:$0xff] %vm860_vm0, %v849_v36 }
 0x166   :  { %913 = vst.msk [vmem:[%s2261_s3 + $0x1a0] sm:$0xff] %vm860_vm0, %v848_v60  ;;  %v715_v53 = vpop.permute.xlu1 %714 }
 0x167   :  { %v851_v54 = vadd.f32 %v715_v53, %v595_v48  ;;  %v713_v1 = vpop.permute.xlu0 %712 }
 0x168   :  { %v850_v55 = vadd.f32 %v713_v1, %v594_v27 }
 0x169   :  { %916 = vst.msk [vmem:[%s2261_s3 + $0x1b8] sm:$0xff] %vm860_vm0, %v851_v54 }
 0x16a   :  { %915 = vst.msk [vmem:[%s2261_s3 + $0x1b0] sm:$0xff] %vm860_vm0, %v850_v55  ;;  %v719_v31 = vpop.permute.xlu1 %718 }
 0x16b   :  { %v853_v0 = vadd.f32 %v719_v31, %v597_v50  ;;  %v717_v40 = vpop.permute.xlu0 %716 }
 0x16c   :  { %v852_v2 = vadd.f32 %v717_v40, %v596_v38 }
 0x16d   :  { %918 = vst.msk [vmem:[%s2261_s3 + $0x1c8] sm:$0xff] %vm860_vm0, %v853_v0 }
 0x16e   :  { %917 = vst.msk [vmem:[%s2261_s3 + $0x1c0] sm:$0xff] %vm860_vm0, %v852_v2  ;;  %v723_v58 = vpop.permute.xlu1 %722 }
 0x16f   :  { %v855_v61 = vadd.f32 %v723_v58, %v599_v44  ;;  %v721_v37 = vpop.permute.xlu0 %720 }
 0x170   :  { %v854_v3 = vadd.f32 %v721_v37, %v598_v45 }
 0x171   :  { %920 = vst.msk [vmem:[%s2261_s3 + $0x1d8] sm:$0xff] %vm860_vm0, %v855_v61 }
 0x172   :  { %919 = vst.msk [vmem:[%s2261_s3 + $0x1d0] sm:$0xff] %vm860_vm0, %v854_v3  ;;  %v727_v42 = vpop.permute.xlu1 %726 }
 0x173   :  { %v857_v56 = vadd.f32 %v727_v42, %v601_v39  ;;  %v725_v43 = vpop.permute.xlu0 %724 }
 0x174   :  { %v856_v41 = vadd.f32 %v725_v43, %v600_v23 }
 0x175   :  { %922 = vst.msk [vmem:[%s2261_s3 + $0x1e8] sm:$0xff] %vm860_vm0, %v857_v56 }
 0x176   :  { %921 = vst.msk [vmem:[%s2261_s3 + $0x1e0] sm:$0xff] %vm860_vm0, %v856_v41  ;;  %v731_v26 = vpop.permute.xlu1 %730 }
 0x177   :  { %v859_v4 = vadd.f32 %v731_v26, %v603_v22  ;;  %v729_v33 = vpop.permute.xlu0 %728 }
 0x178   :  { %v858_v24 = vadd.f32 %v729_v33, %v602_v18 }
 0x179   :  { %924 = vst.msk [vmem:[%s2261_s3 + $0x1f8] sm:$0xff] %vm860_vm0, %v859_v4 }
 0x17a   :  { %923 = vst.msk [vmem:[%s2261_s3 + $0x1f0] sm:$0xff] %vm860_vm0, %v858_v24 }

// kernel: asy_conv_forward.2
= control target key start
LH: loop header
LB: loop body
LE: loop exit
PB: predicated region body
PF: predicated region fallthrough
CT: control target
= control target key end

     0   :  { %s4159_s12 = smov 0   ;;  %s5365_s0 = inlined_call_operand.vmem [shape: bf16[2,16,16,4], index: 0, kind: input, shape index: {}]   ;;  %s5366_s1 = inlined_call_operand.vmem [shape: bf16[9,4,24], index: 1, kind: input, shape index: {}]   ;;  %s5367_s2 = inlined_call_operand.vmem [shape: bf16[2,16,16,24], index: 2, kind: output, shape index: {0}]   ;;  %s5368_s3 = inlined_call_operand.vmem [shape: f32[2,2,24], index: 3, kind: output, shape index: {1}]  }
   0x1 LB: > { %s3341_s13 = sadd.s32 4294967295, %s4136_s12   ;;  %p3345_p0 = scmp.ge.s32.totalorder %s4136_s12, 1  ;;  %s4136_s12 = sphi %s4159_s12, %s14_s12  }
   0x2   : > { %p140_p1 = scmp.lt.s32.totalorder %s4136_s12, 3 }
   0x4   : > { %p141_p2 = pnand %p3345_p0, %p140_p1 }
   0x6   : > { %144 = sbr.rel (%p141_p2) target bundleno = 558 (0x22e), region = 28 }
   0xb   : > { %v3351_v0 = vld [vmem:[%s5366_s1 + $0x2] sm:$0x3]  ;;  %vm483_vm0 = vcmask 1041408   ;;  %vm183_vm1 = vcmask 31744   ;;  %vm186_vm2 = vcmask 25600   ;;  %v4138_v2 = vmov 0.0  }
   0xc   : > { %4111 = vmatprep.subr.msk.bf16.mxu0 %vm483_vm0, %v3351_v0  ;;  %4112 = vmatprep.subr.msk.bf16.mxu1 %vm483_vm0, %v3351_v0  ;;  %v485_v1 = vsel %vm483_vm0, %v3351_v0, 0  ;;  %184 = vst.msk [vmem:[#allocation2] sm:$0xff] %vm183_vm1, %v4138_v2  ;;  %185 = vst.msk [vmem:[#allocation2 + $0x8] sm:$0xff] %vm183_vm1, %v4138_v2  ;;  %p168_p3 = scmp.lt.s32.totalorder %s3341_s13, 1  ;;  %v4232_v3 = vld [vmem:[%s5366_s1] sm:$0x3] }
   0xd   : > { %187 = vst.msk [vmem:[#allocation2 + $0x10] sm:$0x3] %vm186_vm2, %v4138_v2  ;;  %190 = vst.msk [vmem:[#allocation2 + $0x28] sm:$0x3] %vm186_vm2, %v4138_v2  ;;  %v4237_v4 = vld [vmem:[%s5366_s1 + $0x4] sm:$0x3]  ;;  %3804 = vmatpush3.bf16.msra.mxu0 %v485_v1  ;;  %4110 = vmatpush3.bf16.msra.mxu1 %v485_v1 }
   0xe   : > { %188 = vst.msk [vmem:[#allocation2 + $0x18] sm:$0xff] %vm183_vm1, %v4138_v2  ;;  %189 = vst.msk [vmem:[#allocation2 + $0x20] sm:$0xff] %vm183_vm1, %v4138_v2  ;;  %s5438_s13 = smov (!%p168_p3, %s3341_s13), 1  ;;  %4113 = vmatprep.subr.msk.bf16.mxu1 %vm483_vm0, %v4232_v3  ;;  %4114 = vmatprep.subr.msk.bf16.mxu0 %vm483_vm0, %v4237_v4  ;;  %v959_v60 = vsel %vm483_vm0, %v4237_v4, 0  ;;  %v697_v1 = vsel %vm483_vm0, %v4232_v3, 0  ;;  %vm3047_vm3 = vcmask 191488  }
   0xf   : > { %191 = vst.msk [vmem:[#allocation2 + $0x30] sm:$0xff] %vm183_vm1, %v4138_v2  ;;  %192 = vst.msk [vmem:[#allocation2 + $0x38] sm:$0xff] %vm183_vm1, %v4138_v2  ;;  %s3537_s20 = sshll.u32 %s5438_s13, 7  ;;  %v4318_v4 = vld [vmem:[%s5366_s1 + $0x6] sm:$0x3]  ;;  %vm3080_vm4 = vcmask 195584  }
  0x10   : > { %193 = vst.msk [vmem:[#allocation2 + $0x40] sm:$0x3] %vm186_vm2, %v4138_v2  ;;  %196 = vst.msk [vmem:[#allocation2 + $0x58] sm:$0x3] %vm186_vm2, %v4138_v2  ;;  %s4253_s23 = scalar_lea.vmem %s5365_s0, %s3537_s20  ;;  %v4327_v3 = vld [vmem:[%s5366_s1 + $0x8] sm:$0x3]  ;;  %s5134_s11 = scalar_lea.vmem %s5367_s2, %s3537_s20 }
  0x11   : > { %194 = vst.msk [vmem:[#allocation2 + $0x48] sm:$0xff] %vm183_vm1, %v4138_v2  ;;  %195 = vst.msk [vmem:[#allocation2 + $0x50] sm:$0xff] %vm183_vm1, %v4138_v2  ;;  %v3572_v5 = vld [vmem:[%s4253_s23] sm:$0xff]   ;;  %v3641_v6 = vld [vmem:[%s4253_s23 + $0x38] sm:$0xff]   ;;  %s3350_s14 = sshll.u32 %s5438_s13, 1  ;;  %vm3251_vm5 = vcmask 1040384  }
  0x12   : > { %197 = vst.msk [vmem:[#allocation2 + $0x60] sm:$0xff] %vm183_vm1, %v4138_v2  ;;  %198 = vst.msk [vmem:[#allocation2 + $0x68] sm:$0xff] %vm183_vm1, %v4138_v2  ;;  %v3642_v7 = vld [vmem:[%s4253_s23 + $0x40] sm:$0xff]   ;;  %v3573_v10 = vunpack.c.l.bf16 %v3572_v5  ;;  %v3574_v11 = vunpack.c.h.bf16 %v3572_v5  ;;  %v3601_v12 = vunpack.c.l.bf16 %v3641_v6  ;;  %v3602_v13 = vunpack.c.h.bf16 %v3641_v6  ;;  %v3635_v14 = vld [vmem:[%s4253_s23 + $0x8] sm:$0xff]   ;;  %s181_s17 = scalar_lea.vmem %s5368_s3, %s3350_s14 }
  0x13   : > { %199 = vst.msk [vmem:[#allocation2 + $0x70] sm:$0x3] %vm186_vm2, %v4138_v2  ;;  %202 = vst.msk [vmem:[#allocation2 + $0x88] sm:$0x3] %vm186_vm2, %v4138_v2  ;;  %v385_v8 = vld [vmem:[#allocation2 + $0x1] sm:$0xff]  ;;  %v3605_v16 = vunpack.c.l.bf16 %v3642_v7  ;;  %v3606_v17 = vunpack.c.h.bf16 %v3642_v7  ;;  %v3577_v18 = vunpack.c.l.bf16 %v3635_v14  ;;  %v3636_v19 = vld [vmem:[%s4253_s23 + $0x10] sm:$0xff]   ;;  %v3578_v22 = vunpack.c.h.bf16 %v3635_v14 }
  0x14   : > { %200 = vst.msk [vmem:[#allocation2 + $0x78] sm:$0xff] %vm183_vm1, %v4138_v2  ;;  %201 = vst.msk [vmem:[#allocation2 + $0x80] sm:$0xff] %vm183_vm1, %v4138_v2  ;;  %v386_v9 = vld [vmem:[#allocation2 + $0x9] sm:$0xff]  ;;  %v3581_v23 = vunpack.c.l.bf16 %v3636_v19  ;;  %v3582_v24 = vunpack.c.h.bf16 %v3636_v19  ;;  %v3637_v26 = vld [vmem:[%s4253_s23 + $0x18] sm:$0xff]   ;;  %vm3253_vm6 = vcmask 189440  }
  0x15   : > { %203 = vst.msk [vmem:[#allocation2 + $0x90] sm:$0xff] %vm183_vm1, %v4138_v2  ;;  %204 = vst.msk [vmem:[#allocation2 + $0x98] sm:$0xff] %vm183_vm1, %v4138_v2  ;;  %v417_v15 = vpack.c.bf16 %v386_v9, %v385_v8  ;;  %v3643_v20 = vld [vmem:[%s4253_s23 + $0x48] sm:$0xff]   ;;  %v3644_v21 = vld [vmem:[%s4253_s23 + $0x50] sm:$0xff]   ;;  %v3585_v32 = vunpack.c.l.bf16 %v3637_v26  ;;  %v3586_v36 = vunpack.c.h.bf16 %v3637_v26 }
  0x16   : > { %205 = vst.msk [vmem:[#allocation2 + $0xa0] sm:$0x3] %vm186_vm2, %v4138_v2  ;;  %208 = vst.msk [vmem:[#allocation2 + $0xb8] sm:$0x3] %vm186_vm2, %v4138_v2  ;;  %v3609_v25 = vunpack.c.l.bf16 %v3643_v20  ;;  %v3638_v27 = vld [vmem:[%s4253_s23 + $0x20] sm:$0xff]   ;;  %v3645_v28 = vld [vmem:[%s4253_s23 + $0x58] sm:$0xff]   ;;  %v3610_v29 = vunpack.c.h.bf16 %v3643_v20  ;;  %v3613_v30 = vunpack.c.l.bf16 %v3644_v21  ;;  %v3614_v31 = vunpack.c.h.bf16 %v3644_v21 }
  0x17   : > { %206 = vst.msk [vmem:[#allocation2 + $0xa8] sm:$0xff] %vm183_vm1, %v4138_v2  ;;  %207 = vst.msk [vmem:[#allocation2 + $0xb0] sm:$0xff] %vm183_vm1, %v4138_v2  ;;  %3805 = vmatprep.mubr.msk.bf16.mxu0 %vm183_vm1, %v417_v15  ;;  %v3646_v33 = vld [vmem:[%s4253_s23 + $0x60] sm:$0xff]   ;;  %v3639_v34 = vld [vmem:[%s4253_s23 + $0x28] sm:$0xff]   ;;  %v3589_v37 = vunpack.c.l.bf16 %v3638_v27  ;;  %v3590_v38 = vunpack.c.h.bf16 %v3638_v27  ;;  %v3617_v39 = vunpack.c.l.bf16 %v3645_v28  ;;  %v3618_v42 = vunpack.c.h.bf16 %v3645_v28 }
  0x18   : > { %209 = vst.msk [vmem:[#allocation2 + $0xc0] sm:$0xff] %vm183_vm1, %v4138_v2  ;;  %210 = vst.msk [vmem:[#allocation2 + $0xc8] sm:$0xff] %vm183_vm1, %v4138_v2  ;;  %v3640_v35 = vld [vmem:[%s4253_s23 + $0x30] sm:$0xff]   ;;  %v3647_v40 = vld [vmem:[%s4253_s23 + $0x68] sm:$0xff]   ;;  %v3621_v43 = vunpack.c.l.bf16 %v3646_v33  ;;  %v3622_v44 = vunpack.c.h.bf16 %v3646_v33  ;;  %v3593_v45 = vunpack.c.l.bf16 %v3639_v34  ;;  %v3594_v46 = vunpack.c.h.bf16 %v3639_v34 }
  0x19   : > { %211 = vst.msk [vmem:[#allocation2 + $0xd0] sm:$0x3] %vm186_vm2, %v4138_v2  ;;  %214 = vst.msk [vmem:[#allocation2 + $0xe8] sm:$0x3] %vm186_vm2, %v4138_v2  ;;  %v3648_v41 = vld [vmem:[%s4253_s23 + $0x70] sm:$0xff]   ;;  %v3597_v47 = vunpack.c.l.bf16 %v3640_v35  ;;  %v3598_v48 = vunpack.c.h.bf16 %v3640_v35  ;;  %v3625_v49 = vunpack.c.l.bf16 %v3647_v40  ;;  %v3626_v50 = vunpack.c.h.bf16 %v3647_v40  ;;  %v860_v34 = vld [vmem:[#allocation2 + $0x2] sm:$0xff] }
  0x1a   : > { %212 = vst.msk [vmem:[#allocation2 + $0xd8] sm:$0xff] %vm183_vm1, %v4138_v2  ;;  %213 = vst.msk [vmem:[#allocation2 + $0xe0] sm:$0xff] %vm183_vm1, %v4138_v2  ;;  %v3629_v51 = vunpack.c.l.bf16 %v3648_v41  ;;  %v3630_v52 = vunpack.c.h.bf16 %v3648_v41  ;;  %v861_v35 = vld [vmem:[#allocation2 + $0xa] sm:$0xff] }
  0x1b   : > { %215 = vst.msk [vmem:[#allocation2 + $0xf0] sm:$0xff] %vm183_vm1, %v4138_v2  ;;  %216 = vst.msk [vmem:[#allocation2 + $0xf8] sm:$0xff] %vm183_vm1, %v4138_v2  ;;  %v337_v40 = vld [vmem:[#allocation2 + $0x8] sm:$0xff]  ;;  %v892_v41 = vpack.c.bf16 %v861_v35, %v860_v34 }
  0x1c   : > { %217 = vst.msk [vmem:[#allocation2 + $0x100] sm:$0x3] %vm186_vm2, %v4138_v2  ;;  %220 = vst.msk [vmem:[#allocation2 + $0x118] sm:$0x3] %vm186_vm2, %v4138_v2 }
  0x1d   : > { %218 = vst.msk [vmem:[#allocation2 + $0x108] sm:$0xff] %vm183_vm1, %v4138_v2  ;;  %219 = vst.msk [vmem:[#allocation2 + $0x110] sm:$0xff] %vm183_vm1, %v4138_v2 }
  0x1e   : > { %221 = vst.msk [vmem:[#allocation2 + $0x120] sm:$0xff] %vm183_vm1, %v4138_v2  ;;  %222 = vst.msk [vmem:[#allocation2 + $0x128] sm:$0xff] %vm183_vm1, %v4138_v2 }
  0x1f   : > { %223 = vst.msk [vmem:[#allocation2 + $0x130] sm:$0x3] %vm186_vm2, %v4138_v2  ;;  %226 = vst.msk [vmem:[#allocation2 + $0x148] sm:$0x3] %vm186_vm2, %v4138_v2 }
  0x20   : > { %224 = vst.msk [vmem:[#allocation2 + $0x138] sm:$0xff] %vm183_vm1, %v4138_v2  ;;  %225 = vst.msk [vmem:[#allocation2 + $0x140] sm:$0xff] %vm183_vm1, %v4138_v2 }
  0x21   : > { %227 = vst.msk [vmem:[#allocation2 + $0x150] sm:$0xff] %vm183_vm1, %v4138_v2  ;;  %228 = vst.msk [vmem:[#allocation2 + $0x158] sm:$0xff] %vm183_vm1, %v4138_v2 }
  0x22   : > { %229 = vst.msk [vmem:[#allocation2 + $0x160] sm:$0x3] %vm186_vm2, %v4138_v2  ;;  %232 = vst.msk [vmem:[#allocation2 + $0x178] sm:$0x3] %vm186_vm2, %v4138_v2 }
  0x23   : > { %230 = vst.msk [vmem:[#allocation2 + $0x168] sm:$0xff] %vm183_vm1, %v4138_v2  ;;  %231 = vst.msk [vmem:[#allocation2 + $0x170] sm:$0xff] %vm183_vm1, %v4138_v2 }
  0x24   : > { %233 = vst.msk [vmem:[#allocation2 + $0x180] sm:$0xff] %vm183_vm1, %v4138_v2  ;;  %234 = vst.msk [vmem:[#allocation2 + $0x188] sm:$0xff] %vm183_vm1, %v4138_v2 }
  0x25   : > { %235 = vst.msk [vmem:[#allocation2 + $0x190] sm:$0x3] %vm186_vm2, %v4138_v2  ;;  %238 = vst.msk [vmem:[#allocation2 + $0x1a8] sm:$0x3] %vm186_vm2, %v4138_v2 }
  0x26   : > { %236 = vst.msk [vmem:[#allocation2 + $0x198] sm:$0xff] %vm183_vm1, %v4138_v2  ;;  %237 = vst.msk [vmem:[#allocation2 + $0x1a0] sm:$0xff] %vm183_vm1, %v4138_v2 }
  0x27   : > { %304 = vst.msk [vmem:[#allocation2 + $0x19] sm:$0xff] %vm183_vm1, %v3573_v10  ;;  %305 = vst.msk [vmem:[#allocation2 + $0x21] sm:$0xff] %vm183_vm1, %v3574_v11 }
  0x28   : > { %318 = vst.msk [vmem:[#allocation2 + $0xc1] sm:$0xff] %vm183_vm1, %v3601_v12  ;;  %319 = vst.msk [vmem:[#allocation2 + $0xc9] sm:$0xff] %vm183_vm1, %v3602_v13 }
  0x29   : > { %320 = vst.msk [vmem:[#allocation2 + $0xd9] sm:$0xff] %vm183_vm1, %v3605_v16  ;;  %321 = vst.msk [vmem:[#allocation2 + $0xe1] sm:$0xff] %vm183_vm1, %v3606_v17 }
  0x2a   : > { %306 = vst.msk [vmem:[#allocation2 + $0x31] sm:$0xff] %vm183_vm1, %v3577_v18  ;;  %307 = vst.msk [vmem:[#allocation2 + $0x39] sm:$0xff] %vm183_vm1, %v3578_v22 }
  0x2b   : > { %308 = vst.msk [vmem:[#allocation2 + $0x49] sm:$0xff] %vm183_vm1, %v3581_v23  ;;  %309 = vst.msk [vmem:[#allocation2 + $0x51] sm:$0xff] %vm183_vm1, %v3582_v24 }
  0x2c   : > { %322 = vst.msk [vmem:[#allocation2 + $0xf1] sm:$0xff] %vm183_vm1, %v3609_v25  ;;  %323 = vst.msk [vmem:[#allocation2 + $0xf9] sm:$0xff] %vm183_vm1, %v3610_v29 }
  0x2d   : > { %324 = vst.msk [vmem:[#allocation2 + $0x109] sm:$0xff] %vm183_vm1, %v3613_v30  ;;  %325 = vst.msk [vmem:[#allocation2 + $0x111] sm:$0xff] %vm183_vm1, %v3614_v31 }
  0x2e   : > { %310 = vst.msk [vmem:[#allocation2 + $0x61] sm:$0xff] %vm183_vm1, %v3585_v32  ;;  %311 = vst.msk [vmem:[#allocation2 + $0x69] sm:$0xff] %vm183_vm1, %v3586_v36  ;;  %v387_v53 = vld [vmem:[#allocation2 + $0x19] sm:$0xff]  ;;  %v388_v54 = vld [vmem:[#allocation2 + $0x21] sm:$0xff] }
  0x2f   : > { %312 = vst.msk [vmem:[#allocation2 + $0x79] sm:$0xff] %vm183_vm1, %v3589_v37  ;;  %313 = vst.msk [vmem:[#allocation2 + $0x81] sm:$0xff] %vm183_vm1, %v3590_v38  ;;  %v401_v55 = vld [vmem:[#allocation2 + $0xc1] sm:$0xff]  ;;  %v4301_v56 = vpack.c.bf16 %v388_v54, %v387_v53  ;;  %v402_v57 = vld [vmem:[#allocation2 + $0xc9] sm:$0xff] }
  0x30   : > { %326 = vst.msk [vmem:[#allocation2 + $0x121] sm:$0xff] %vm183_vm1, %v3617_v39  ;;  %327 = vst.msk [vmem:[#allocation2 + $0x129] sm:$0xff] %vm183_vm1, %v3618_v42  ;;  %v403_v58 = vld [vmem:[#allocation2 + $0xd9] sm:$0xff]  ;;  %v404_v59 = vld [vmem:[#allocation2 + $0xe1] sm:$0xff]  ;;  %v4305_v61 = vpack.c.bf16 %v402_v57, %v401_v55 }
  0x31   : > { %328 = vst.msk [vmem:[#allocation2 + $0x139] sm:$0xff] %vm183_vm1, %v3621_v43  ;;  %329 = vst.msk [vmem:[#allocation2 + $0x141] sm:$0xff] %vm183_vm1, %v3622_v44  ;;  %v4307_v62 = vpack.c.bf16 %v404_v59, %v403_v58  ;;  %v389_v63 = vld [vmem:[#allocation2 + $0x31] sm:$0xff]  ;;  %v390_v0 = vld [vmem:[#allocation2 + $0x39] sm:$0xff]  ;;  %3806 = vmatmul.mubr.msk.bf16.vlgmr.msra.gmra.mxu0 %vm183_vm1, %v4301_v56  ;;  %v1547_v59 = vsel %vm483_vm0, %v4327_v3, 0 }
  0x32   : > { %314 = vst.msk [vmem:[#allocation2 + $0x91] sm:$0xff] %vm183_vm1, %v3593_v45  ;;  %315 = vst.msk [vmem:[#allocation2 + $0x99] sm:$0xff] %vm183_vm1, %v3594_v46  ;;  %v4313_v2 = vpack.c.bf16 %v390_v0, %v389_v63  ;;  %3821 = vmatprep.mubr.msk.bf16.mxu1 %vm183_vm1, %v4305_v61  ;;  %3872 = vmatpush3.bf16.msra.mxu0 %v959_v60  ;;  %v391_v7 = vld [vmem:[#allocation2 + $0x49] sm:$0xff]  ;;  %v392_v8 = vld [vmem:[#allocation2 + $0x51] sm:$0xff]  ;;  %v1253_v0 = vsel %vm483_vm0, %v4318_v4, 0 }
  0x33   : > { %316 = vst.msk [vmem:[#allocation2 + $0xa9] sm:$0xff] %vm183_vm1, %v3597_v47  ;;  %317 = vst.msk [vmem:[#allocation2 + $0xb1] sm:$0xff] %vm183_vm1, %v3598_v48  ;;  %v405_v5 = vld [vmem:[#allocation2 + $0xf1] sm:$0xff]  ;;  %v406_v6 = vld [vmem:[#allocation2 + $0xf9] sm:$0xff]  ;;  %3822 = vmatmul.mubr.msk.bf16.vlgmr.msra.gmra.mxu1 %vm183_vm1, %v4307_v62  ;;  %v4335_v14 = vpack.c.bf16 %v392_v8, %v391_v7  ;;  %4116 = vmatprep.subr.msk.bf16.mxu0 %vm483_vm0, %v4327_v3 }
  0x34   : > { %330 = vst.msk [vmem:[#allocation2 + $0x151] sm:$0xff] %vm183_vm1, %v3625_v49  ;;  %331 = vst.msk [vmem:[#allocation2 + $0x159] sm:$0xff] %vm183_vm1, %v3626_v50  ;;  %v4322_v9 = vpack.c.bf16 %v406_v6, %v405_v5  ;;  %3809 = vmatprep.mubr.msk.bf16.mxu0 %vm183_vm1, %v4313_v2  ;;  %3838 = vmatpush3.bf16.msra.mxu1 %v697_v1  ;;  %v407_v12 = vld [vmem:[#allocation2 + $0x109] sm:$0xff]  ;;  %v408_v13 = vld [vmem:[#allocation2 + $0x111] sm:$0xff] }
  0x35   : > { %332 = vst.msk [vmem:[#allocation2 + $0x169] sm:$0xff] %vm183_vm1, %v3629_v51  ;;  %333 = vst.msk [vmem:[#allocation2 + $0x171] sm:$0xff] %vm183_vm1, %v3630_v52  ;;  %v393_v10 = vld [vmem:[#allocation2 + $0x61] sm:$0xff]  ;;  %v394_v11 = vld [vmem:[#allocation2 + $0x69] sm:$0xff]  ;;  %4115 = vmatprep.subr.msk.bf16.mxu1 %vm483_vm0, %v4318_v4  ;;  %v4343_v18 = vpack.c.bf16 %v408_v13, %v407_v12 }
  0x36   : > { %3825 = vmatprep.mubr.msk.bf16.mxu1 %vm183_vm1, %v4322_v9  ;;  %v4341_v17 = vpack.c.bf16 %v394_v11, %v393_v10  ;;  %v395_v20 = vld [vmem:[#allocation2 + $0x79] sm:$0xff]  ;;  %v396_v21 = vld [vmem:[#allocation2 + $0x81] sm:$0xff]  ;;  %v340_v52 = vld [vmem:[#allocation2 + $0x30] sm:$0xff] }
  0x37   : > { %v409_v15 = vld [vmem:[#allocation2 + $0x121] sm:$0xff]  ;;  %v410_v16 = vld [vmem:[#allocation2 + $0x129] sm:$0xff]  ;;  %v4355_v26 = vpack.c.bf16 %v396_v21, %v395_v20  ;;  %v864_v46 = vld [vmem:[#allocation2 + $0x32] sm:$0xff] }
  0x38   : > { %v4345_v19 = vpack.c.bf16 %v410_v16, %v409_v15  ;;  %v411_v24 = vld [vmem:[#allocation2 + $0x139] sm:$0xff]  ;;  %v412_v25 = vld [vmem:[#allocation2 + $0x141] sm:$0xff]  ;;  %v4397_v63 = vld [vmem:[%s5366_s1 + $0xc] sm:$0x3] }
  0x39   : > { %3810 = vmatmul.mubr.msk.bf16.gmra.mxu0 %vm183_vm1, %v4335_v14  ;;  %v397_v22 = vld [vmem:[#allocation2 + $0x91] sm:$0xff]  ;;  %v398_v23 = vld [vmem:[#allocation2 + $0x99] sm:$0xff]  ;;  %v4359_v30 = vpack.c.bf16 %v412_v25, %v411_v24  ;;  %v863_v45 = vld [vmem:[#allocation2 + $0x22] sm:$0xff] }
  0x3a   : > { %3813 = vmatprep.mubr.msk.bf16.mxu0 %vm183_vm1, %v4341_v17  ;;  %v4357_v29 = vpack.c.bf16 %v398_v23, %v397_v22  ;;  %v399_v32 = vld [vmem:[#allocation2 + $0xa9] sm:$0xff]  ;;  %v400_v33 = vld [vmem:[#allocation2 + $0xb1] sm:$0xff]  ;;  %v336_v39 = vld [vmem:[#allocation2] sm:$0xff] }
  0x3b   : > { %3826 = vmatmul.mubr.msk.bf16.gmra.mxu1 %vm183_vm1, %v4343_v18  ;;  %v413_v27 = vld [vmem:[#allocation2 + $0x151] sm:$0xff]  ;;  %v414_v28 = vld [vmem:[#allocation2 + $0x159] sm:$0xff]  ;;  %v4371_v38 = vpack.c.bf16 %v400_v33, %v399_v32  ;;  %v368_v43 = vpack.c.bf16 %v337_v40, %v336_v39  ;;  %v4408_v6 = vld [vmem:[%s5366_s1 + $0xa] sm:$0x3] }
  0x3c   : > { %3829 = vmatprep.mubr.msk.bf16.mxu1 %vm183_vm1, %v4345_v19  ;;  %v4361_v31 = vpack.c.bf16 %v414_v28, %v413_v27  ;;  %v415_v36 = vld [vmem:[#allocation2 + $0x169] sm:$0xff]  ;;  %v416_v37 = vld [vmem:[#allocation2 + $0x171] sm:$0xff]  ;;  %v862_v44 = vld [vmem:[#allocation2 + $0x1a] sm:$0xff] }
  0x3d   : > { %v4373_v42 = vpack.c.bf16 %v416_v37, %v415_v36  ;;  %v865_v47 = vld [vmem:[#allocation2 + $0x3a] sm:$0xff]  ;;  %v4382_v51 = vpack.c.bf16 %v863_v45, %v862_v44  ;;  %v866_v1 = vld [vmem:[#allocation2 + $0x4a] sm:$0xff]  ;;  %v867_v5 = vld [vmem:[#allocation2 + $0x52] sm:$0xff] }
  0x3e   : > { %v338_v48 = vld [vmem:[#allocation2 + $0x18] sm:$0xff]  ;;  %v339_v49 = vld [vmem:[#allocation2 + $0x20] sm:$0xff]  ;;  %v4384_v57 = vpack.c.bf16 %v865_v47, %v864_v46  ;;  %v869_v8 = vld [vmem:[#allocation2 + $0x6a] sm:$0xff]  ;;  %v4416_v10 = vpack.c.bf16 %v867_v5, %v866_v1 }
  0x3f   : > { %v3649_v50 = vld [vmem:[%s4253_s23 + $0x78] sm:$0xff]   ;;  %v4386_v58 = vpack.c.bf16 %v339_v49, %v338_v48  ;;  %v868_v7 = vld [vmem:[#allocation2 + $0x62] sm:$0xff]  ;;  %v343_v3 = vld [vmem:[#allocation2 + $0x50] sm:$0xff] }
  0x40   : > { %v341_v53 = vld [vmem:[#allocation2 + $0x38] sm:$0xff]  ;;  %v3633_v54 = vunpack.c.l.bf16 %v3649_v50  ;;  %v3634_v55 = vunpack.c.h.bf16 %v3649_v50  ;;  %v342_v4 = vld [vmem:[#allocation2 + $0x48] sm:$0xff]  ;;  %v344_v11 = vld [vmem:[#allocation2 + $0x60] sm:$0xff]  ;;  %v4420_v13 = vpack.c.bf16 %v869_v8, %v868_v7 }
  0x41   : > { %3814 = vmatmul.mubr.msk.bf16.gmra.mxu0 %vm183_vm1, %v4355_v26  ;;  %v4392_v60 = vpack.c.bf16 %v341_v53, %v340_v52  ;;  %v345_v12 = vld [vmem:[#allocation2 + $0x68] sm:$0xff]  ;;  %v4422_v15 = vpack.c.bf16 %v343_v3, %v342_v4  ;;  %v870_v20 = vld [vmem:[#allocation2 + $0x7a] sm:$0xff]  ;;  %v872_v22 = vld [vmem:[#allocation2 + $0x92] sm:$0xff] }
  0x42   : > { %3817 = vmatprep.mubr.msk.bf16.mxu0 %vm183_vm1, %v4357_v29  ;;  %334 = vst.msk [vmem:[#allocation2 + $0x181] sm:$0xff] %vm183_vm1, %v3633_v54  ;;  %335 = vst.msk [vmem:[#allocation2 + $0x189] sm:$0xff] %vm183_vm1, %v3634_v55  ;;  %v4424_v16 = vpack.c.bf16 %v345_v12, %v344_v11  ;;  %v871_v21 = vld [vmem:[#allocation2 + $0x82] sm:$0xff]  ;;  %v873_v23 = vld [vmem:[#allocation2 + $0x9a] sm:$0xff] }
  0x43   : > { %3830 = vmatmul.mubr.msk.bf16.gmra.mxu1 %vm183_vm1, %v4359_v30  ;;  %v346_v24 = vld [vmem:[#allocation2 + $0x78] sm:$0xff]  ;;  %v347_v25 = vld [vmem:[#allocation2 + $0x80] sm:$0xff]  ;;  %v4434_v27 = vpack.c.bf16 %v871_v21, %v870_v20  ;;  %v348_v28 = vld [vmem:[#allocation2 + $0x90] sm:$0xff]  ;;  %v4436_v33 = vpack.c.bf16 %v873_v23, %v872_v22 }
  0x44   : > { %3833 = vmatprep.mubr.msk.bf16.mxu1 %vm183_vm1, %v4361_v31  ;;  %v349_v32 = vld [vmem:[#allocation2 + $0x98] sm:$0xff]  ;;  %v4438_v34 = vpack.c.bf16 %v347_v25, %v346_v24  ;;  %v874_v36 = vld [vmem:[#allocation2 + $0xaa] sm:$0xff]  ;;  %v876_v39 = vld [vmem:[#allocation2 + $0xc2] sm:$0xff] }
  0x45   : > { %v4440_v35 = vpack.c.bf16 %v349_v32, %v348_v28  ;;  %v875_v37 = vld [vmem:[#allocation2 + $0xb2] sm:$0xff]  ;;  %v877_v40 = vld [vmem:[#allocation2 + $0xca] sm:$0xff]  ;;  %v352_v45 = vld [vmem:[#allocation2 + $0xc0] sm:$0xff] }
  0x46   : > { %v4450_v44 = vpack.c.bf16 %v875_v37, %v874_v36  ;;  %v353_v46 = vld [vmem:[#allocation2 + $0xc8] sm:$0xff]  ;;  %v4452_v47 = vpack.c.bf16 %v877_v40, %v876_v39  ;;  %v878_v50 = vld [vmem:[#allocation2 + $0xda] sm:$0xff]  ;;  %v880_v53 = vld [vmem:[#allocation2 + $0xf2] sm:$0xff] }
  0x47   : > { %v4456_v49 = vpack.c.bf16 %v353_v46, %v352_v45  ;;  %v879_v52 = vld [vmem:[#allocation2 + $0xe2] sm:$0xff]  ;;  %v881_v54 = vld [vmem:[#allocation2 + $0xfa] sm:$0xff]  ;;  %v356_v1 = vld [vmem:[#allocation2 + $0xf0] sm:$0xff] }
  0x48   : > { %v354_v55 = vld [vmem:[#allocation2 + $0xd8] sm:$0xff]  ;;  %v4468_v7 = vpack.c.bf16 %v881_v54, %v880_v53  ;;  %v882_v3 = vld [vmem:[#allocation2 + $0x10a] sm:$0xff]  ;;  %v884_v12 = vld [vmem:[#allocation2 + $0x122] sm:$0xff] }
  0x49   : > { %3818 = vmatmul.mubr.msk.bf16.gmra.mxu0 %vm183_vm1, %v4371_v38  ;;  %v357_v5 = vld [vmem:[#allocation2 + $0xf8] sm:$0xff]  ;;  %v885_v20 = vld [vmem:[#allocation2 + $0x12a] sm:$0xff]  ;;  %v360_v24 = vld [vmem:[#allocation2 + $0x120] sm:$0xff] }
  0x4a   : > { %3873 = vmatprep.mubr.msk.bf16.mxu0 %vm183_vm1, %v892_v41  ;;  %v350_v41 = vld [vmem:[#allocation2 + $0xa8] sm:$0xff]  ;;  %v4472_v4 = vpack.c.bf16 %v357_v5, %v356_v1  ;;  %v883_v11 = vld [vmem:[#allocation2 + $0x112] sm:$0xff]  ;;  %v4484_v28 = vpack.c.bf16 %v885_v20, %v884_v12  ;;  %v886_v37 = vld [vmem:[#allocation2 + $0x13a] sm:$0xff]  ;;  %v2136_v20 = vsel %vm483_vm0, %v4397_v63, 0 }
  0x4b   : > { %3834 = vmatmul.mubr.msk.bf16.gmra.mxu1 %vm183_vm1, %v4373_v42  ;;  %v358_v21 = vld [vmem:[#allocation2 + $0x108] sm:$0xff]  ;;  %v359_v22 = vld [vmem:[#allocation2 + $0x110] sm:$0xff]  ;;  %v4482_v23 = vpack.c.bf16 %v883_v11, %v882_v3  ;;  %v363_v45 = vld [vmem:[#allocation2 + $0x140] sm:$0xff] }
  0x4c   : > { %3839 = vmatprep.mubr.msk.bf16.mxu1 %vm183_vm1, %v368_v43  ;;  %v351_v43 = vld [vmem:[#allocation2 + $0xb0] sm:$0xff]  ;;  %v361_v25 = vld [vmem:[#allocation2 + $0x128] sm:$0xff]  ;;  %v4486_v32 = vpack.c.bf16 %v359_v22, %v358_v21  ;;  %v1841_v22 = vsel %vm483_vm0, %v4408_v6, 0 }
  0x4d   : > { %v4454_v48 = vpack.c.bf16 %v351_v43, %v350_v41  ;;  %v4488_v36 = vpack.c.bf16 %v361_v25, %v360_v24  ;;  %v887_v39 = vld [vmem:[#allocation2 + $0x142] sm:$0xff]  ;;  %v888_v40 = vld [vmem:[#allocation2 + $0x152] sm:$0xff]  ;;  %v889_v41 = vld [vmem:[#allocation2 + $0x15a] sm:$0xff] }
  0x4e   : > { %v362_v43 = vld [vmem:[#allocation2 + $0x138] sm:$0xff]  ;;  %v4498_v46 = vpack.c.bf16 %v887_v39, %v886_v37  ;;  %v4500_v53 = vpack.c.bf16 %v889_v41, %v888_v40  ;;  %v366_v5 = vld [vmem:[#allocation2 + $0x168] sm:$0xff]  ;;  %v367_v3 = vld [vmem:[#allocation2 + $0x170] sm:$0xff] }
  0x4f   : > { %v4502_v54 = vpack.c.bf16 %v363_v45, %v362_v43  ;;  %v891_v1 = vld [vmem:[#allocation2 + $0x172] sm:$0xff]  ;;  %v4516_v12 = vpack.c.bf16 %v367_v3, %v366_v5  ;;  %v3486_v21 = vld [vmem:[%s5366_s1 + $0x10] sm:$0x3] }
  0x50   : > { %v2331_v41 = vld [vmem:[#allocation2 + $0x31] sm:$0xff]  ;;  %v2332_v43 = vld [vmem:[#allocation2 + $0x39] sm:$0xff]  ;;  %v2333_v3 = vld [vmem:[#allocation2 + $0x49] sm:$0xff] }
  0x51   : > { %3874 = vmatmul.mubr.msk.bf16.vlgmr.msra.gmra.mxu0 %vm183_vm1, %v4382_v51 }
  0x52   : > { %3940 = vmatpush3.bf16.msra.mxu0 %v1547_v59  ;;  %3877 = vmatprep.mubr.msk.bf16.mxu0 %vm183_vm1, %v4384_v57  ;;  %v355_v59 = vld [vmem:[#allocation2 + $0xe0] sm:$0xff] }
  0x53   : > { %3840 = vmatmul.mubr.msk.bf16.vlgmr.msra.gmra.mxu1 %vm183_vm1, %v4386_v58  ;;  %4118 = vmatprep.subr.msk.bf16.mxu0 %vm483_vm0, %v4397_v63  ;;  %v4470_v8 = vpack.c.bf16 %v355_v59, %v354_v55  ;;  %v890_v59 = vld [vmem:[#allocation2 + $0x16a] sm:$0xff] }
  0x54   : > { %3906 = vmatpush3.bf16.msra.mxu1 %v1253_v0  ;;  %3843 = vmatprep.mubr.msk.bf16.mxu1 %vm183_vm1, %v4392_v60  ;;  %v4466_v0 = vpack.c.bf16 %v879_v52, %v878_v50  ;;  %v364_v50 = vld [vmem:[#allocation2 + $0x150] sm:$0xff]  ;;  %v365_v52 = vld [vmem:[#allocation2 + $0x158] sm:$0xff]  ;;  %v4514_v11 = vpack.c.bf16 %v891_v1, %v890_v59 }
  0x55   : > { %4117 = vmatprep.subr.msk.bf16.mxu1 %vm483_vm0, %v4408_v6  ;;  %v4504_v55 = vpack.c.bf16 %v365_v52, %v364_v50 }
  0x59   : > { %3878 = vmatmul.mubr.msk.bf16.gmra.mxu0 %vm183_vm1, %v4416_v10 }
  0x5a   : > { %3881 = vmatprep.mubr.msk.bf16.mxu0 %vm183_vm1, %v4420_v13 }
  0x5b   : > { %3844 = vmatmul.mubr.msk.bf16.gmra.mxu1 %vm183_vm1, %v4422_v15 }
  0x5c   : > { %3847 = vmatprep.mubr.msk.bf16.mxu1 %vm183_vm1, %v4424_v16 }
  0x61   : > { %3882 = vmatmul.mubr.msk.bf16.gmra.mxu0 %vm183_vm1, %v4434_v27 }
  0x62   : > { %3885 = vmatprep.mubr.msk.bf16.mxu0 %vm183_vm1, %v4436_v33 }
  0x63   : > { %3848 = vmatmul.mubr.msk.bf16.gmra.mxu1 %vm183_vm1, %v4438_v34 }
  0x64   : > { %3851 = vmatprep.mubr.msk.bf16.mxu1 %vm183_vm1, %v4440_v35 }
  0x69   : > { %3886 = vmatmul.mubr.msk.bf16.gmra.mxu0 %vm183_vm1, %v4450_v44 }
  0x6a   : > { %3889 = vmatprep.mubr.msk.bf16.mxu0 %vm183_vm1, %v4452_v47 }
  0x6b   : > { %3852 = vmatmul.mubr.msk.bf16.gmra.mxu1 %vm183_vm1, %v4454_v48 }
  0x6c   : > { %3855 = vmatprep.mubr.msk.bf16.mxu1 %vm183_vm1, %v4456_v49 }
  0x71   : > { %3890 = vmatmul.mubr.msk.bf16.gmra.mxu0 %vm183_vm1, %v4466_v0 }
  0x72   : > { %3893 = vmatprep.mubr.msk.bf16.mxu0 %vm183_vm1, %v4468_v7 }
  0x73   : > { %3856 = vmatmul.mubr.msk.bf16.gmra.mxu1 %vm183_vm1, %v4470_v8 }
  0x74   : > { %3859 = vmatprep.mubr.msk.bf16.mxu1 %vm183_vm1, %v4472_v4 }
  0x79   : > { %3894 = vmatmul.mubr.msk.bf16.gmra.mxu0 %vm183_vm1, %v4482_v23 }
  0x7a   : > { %3897 = vmatprep.mubr.msk.bf16.mxu0 %vm183_vm1, %v4484_v28 }
  0x7b   : > { %3860 = vmatmul.mubr.msk.bf16.gmra.mxu1 %vm183_vm1, %v4486_v32 }
  0x7c   : > { %3863 = vmatprep.mubr.msk.bf16.mxu1 %vm183_vm1, %v4488_v36 }
  0x81   : > { %3898 = vmatmul.mubr.msk.bf16.gmra.mxu0 %vm183_vm1, %v4498_v46 }
  0x82   : > { %3901 = vmatprep.mubr.msk.bf16.mxu0 %vm183_vm1, %v4500_v53 }
  0x83   : > { %3864 = vmatmul.mubr.msk.bf16.gmra.mxu1 %vm183_vm1, %v4502_v54 }
  0x84   : > { %3867 = vmatprep.mubr.msk.bf16.mxu1 %vm183_vm1, %v4504_v55 }
  0x89   : > { %3902 = vmatmul.mubr.msk.bf16.gmra.mxu0 %vm183_vm1, %v4514_v11 }
  0x8a   : > { %3941 = vmatprep.mubr.msk.bf16.mxu0 %vm183_vm1, %v4301_v56  ;;  %v3469_v56 = vld [vmem:[%s5366_s1 + $0xe] sm:$0x3] }
  0x8b   : > { %3868 = vmatmul.mubr.msk.bf16.gmra.mxu1 %vm183_vm1, %v4516_v12 }
  0x8c   : > { %3907 = vmatprep.mubr.msk.bf16.mxu1 %vm183_vm1, %v4386_v58 }
  0x91   : > { %3942 = vmatmul.mubr.msk.bf16.vlgmr.msra.gmra.mxu0 %vm183_vm1, %v4313_v2  ;;  %v1184_v2 = vld [vmem:[#allocation2 + $0x180] sm:$0xff] }
  0x92   : > { %4008 = vmatpush3.bf16.msra.mxu0 %v2136_v20  ;;  %3945 = vmatprep.mubr.msk.bf16.mxu0 %vm183_vm1, %v4335_v14 }
  0x93   : > { %3908 = vmatmul.mubr.msk.bf16.vlgmr.msra.gmra.mxu1 %vm183_vm1, %v4392_v60  ;;  %4120 = vmatprep.subr.msk.bf16.mxu0 %vm483_vm0, %v3486_v21 }
  0x94   : > { %3974 = vmatpush3.bf16.msra.mxu1 %v1841_v22  ;;  %3911 = vmatprep.mubr.msk.bf16.mxu1 %vm183_vm1, %v4422_v15  ;;  %v2335_v22 = vld [vmem:[#allocation2 + $0x61] sm:$0xff] }
  0x95   : > { %4119 = vmatprep.subr.msk.bf16.mxu1 %vm483_vm0, %v3469_v56 }
  0x99   : > { %3946 = vmatmul.mubr.msk.bf16.gmra.mxu0 %vm183_vm1, %v4341_v17 }
  0x9a   : > { %3949 = vmatprep.mubr.msk.bf16.mxu0 %vm183_vm1, %v4355_v26 }
  0x9b   : > { %3912 = vmatmul.mubr.msk.bf16.gmra.mxu1 %vm183_vm1, %v4424_v16 }
  0x9c   : > { %3915 = vmatprep.mubr.msk.bf16.mxu1 %vm183_vm1, %v4438_v34 }
  0xa1   : > { %3950 = vmatmul.mubr.msk.bf16.gmra.mxu0 %vm183_vm1, %v4357_v29 }
  0xa2   : > { %3953 = vmatprep.mubr.msk.bf16.mxu0 %vm183_vm1, %v4371_v38 }
  0xa3   : > { %3916 = vmatmul.mubr.msk.bf16.gmra.mxu1 %vm183_vm1, %v4440_v35 }
  0xa4   : > { %3919 = vmatprep.mubr.msk.bf16.mxu1 %vm183_vm1, %v4454_v48 }
  0xa9   : > { %3954 = vmatmul.mubr.msk.bf16.gmra.mxu0 %vm183_vm1, %v4305_v61  ;;  %v1478_v61 = vld [vmem:[#allocation2 + $0x181] sm:$0xff] }
  0xaa   : > { %3957 = vmatprep.mubr.msk.bf16.mxu0 %vm183_vm1, %v4307_v62  ;;  %v1479_v62 = vld [vmem:[#allocation2 + $0x189] sm:$0xff] }
  0xab   : > { %3920 = vmatmul.mubr.msk.bf16.gmra.mxu1 %vm183_vm1, %v4456_v49  ;;  %v4594_v14 = vpack.c.bf16 %v1479_v62, %v1478_v61 }
  0xac   : > { %3923 = vmatprep.mubr.msk.bf16.mxu1 %vm183_vm1, %v4470_v8 }
  0xb1   : > { %3958 = vmatmul.mubr.msk.bf16.gmra.mxu0 %vm183_vm1, %v4322_v9  ;;  %v1185_v9 = vld [vmem:[#allocation2 + $0x188] sm:$0xff] }
  0xb2   : > { %3961 = vmatprep.mubr.msk.bf16.mxu0 %vm183_vm1, %v4343_v18  ;;  %v1201_v17 = vpack.c.bf16 %v1185_v9, %v1184_v2  ;;  %v2724_v18 = vsel %vm483_vm0, %v3486_v21, 0 }
  0xb3   : > { %3924 = vmatmul.mubr.msk.bf16.gmra.mxu1 %vm183_vm1, %v4472_v4 }
  0xb4   : > { %3927 = vmatprep.mubr.msk.bf16.mxu1 %vm183_vm1, %v4486_v32 }
  0xb9   : > { %3962 = vmatmul.mubr.msk.bf16.gmra.mxu0 %vm183_vm1, %v4345_v19  ;;  %v2430_v19 = vsel %vm483_vm0, %v3469_v56, 0  ;;  %v2336_v56 = vld [vmem:[#allocation2 + $0x69] sm:$0xff] }
  0xba   : > { %3965 = vmatprep.mubr.msk.bf16.mxu0 %vm183_vm1, %v4359_v30  ;;  %v2365_v2 = vpack.c.bf16 %v2336_v56, %v2335_v22 }
  0xbb   : > { %3928 = vmatmul.mubr.msk.bf16.gmra.mxu1 %vm183_vm1, %v4488_v36 }
  0xbc   : > { %3931 = vmatprep.mubr.msk.bf16.mxu1 %vm183_vm1, %v4502_v54 }
  0xc1   : > { %3966 = vmatmul.mubr.msk.bf16.gmra.mxu0 %vm183_vm1, %v4361_v31 }
  0xc2   : > { %3969 = vmatprep.mubr.msk.bf16.mxu0 %vm183_vm1, %v4373_v42 }
  0xc3   : > { %3932 = vmatmul.mubr.msk.bf16.gmra.mxu1 %vm183_vm1, %v4504_v55 }
  0xc4   : > { %3935 = vmatprep.mubr.msk.bf16.mxu1 %vm183_vm1, %v4516_v12 }
  0xc9   : > { %3970 = vmatmul.mubr.msk.bf16.gmra.mxu0 %vm183_vm1, %v4594_v14 }
  0xca   : > { %4009 = vmatprep.mubr.msk.bf16.mxu0 %vm183_vm1, %v4392_v60 }
  0xcb   : > { %3936 = vmatmul.mubr.msk.bf16.gmra.mxu1 %vm183_vm1, %v1201_v17 }
  0xcc   : > { %3975 = vmatprep.mubr.msk.bf16.mxu1 %vm183_vm1, %v4382_v51 }
  0xd1   : > { %4010 = vmatmul.mubr.msk.bf16.vlgmr.msra.gmra.mxu0 %vm183_vm1, %v4422_v15 }
  0xd2   : > { %4076 = vmatpush3.bf16.msra.mxu0 %v2724_v18  ;;  %4013 = vmatprep.mubr.msk.bf16.mxu0 %vm183_vm1, %v4424_v16 }
  0xd3   : > { %3976 = vmatmul.mubr.msk.bf16.vlgmr.msra.gmra.mxu1 %vm183_vm1, %v4384_v57 }
  0xd4   : > { %4042 = vmatpush3.bf16.msra.mxu1 %v2430_v19  ;;  %3979 = vmatprep.mubr.msk.bf16.mxu1 %vm183_vm1, %v4416_v10 }
  0xd9   : > { %4014 = vmatmul.mubr.msk.bf16.gmra.mxu0 %vm183_vm1, %v4438_v34 }
  0xda   : > { %4017 = vmatprep.mubr.msk.bf16.mxu0 %vm183_vm1, %v4440_v35 }
  0xdb   : > { %3980 = vmatmul.mubr.msk.bf16.gmra.mxu1 %vm183_vm1, %v4420_v13 }
  0xdc   : > { %3983 = vmatprep.mubr.msk.bf16.mxu1 %vm183_vm1, %v4434_v27 }
  0xe1   : > { %4018 = vmatmul.mubr.msk.bf16.gmra.mxu0 %vm183_vm1, %v4454_v48 }
  0xe2   : > { %4021 = vmatprep.mubr.msk.bf16.mxu0 %vm183_vm1, %v4456_v49 }
  0xe3   : > { %3984 = vmatmul.mubr.msk.bf16.gmra.mxu1 %vm183_vm1, %v4436_v33 }
  0xe4   : > { %3987 = vmatprep.mubr.msk.bf16.mxu1 %vm183_vm1, %v4450_v44 }
  0xe9   : > { %4022 = vmatmul.mubr.msk.bf16.gmra.mxu0 %vm183_vm1, %v4470_v8  ;;  %v2067_v8 = vld [vmem:[#allocation2 + $0x198] sm:$0xff] }
  0xea   : > { %4025 = vmatprep.mubr.msk.bf16.mxu0 %vm183_vm1, %v4472_v4  ;;  %v2068_v4 = vld [vmem:[#allocation2 + $0x1a0] sm:$0xff] }
  0xeb   : > { %3988 = vmatmul.mubr.msk.bf16.gmra.mxu1 %vm183_vm1, %v4452_v47  ;;  %v2084_v40 = vpack.c.bf16 %v2068_v4, %v2067_v8  ;;  %v2337_v4 = vld [vmem:[#allocation2 + $0x79] sm:$0xff] }
  0xec   : > { %3991 = vmatprep.mubr.msk.bf16.mxu1 %vm183_vm1, %v4466_v0 }
  0xf1   : > { %v4637_v26 = vpop.f32.mrf.mxu0  ;;  %4026 = vmatmul.mubr.msk.bf16.gmra.mxu0 %vm183_vm1, %v4486_v32  ;;  %v1772_v32 = vld [vmem:[#allocation2 + $0x182] sm:$0xff] }
  0xf2   : > { %4029 = vmatprep.mubr.msk.bf16.mxu0 %vm183_vm1, %v4488_v36  ;;  %v1773_v36 = vld [vmem:[#allocation2 + $0x18a] sm:$0xff] }
  0xf3   : > { %v4643_v29 = vpop.f32.mrf.mxu1  ;;  %3992 = vmatmul.mubr.msk.bf16.gmra.mxu1 %vm183_vm1, %v4468_v7  ;;  %v4647_v30 = vpop.f32.mrf.mxu0  ;;  %v4706_v52 = vpack.c.bf16 %v1773_v36, %v1772_v32  ;;  %v2338_v32 = vld [vmem:[#allocation2 + $0x81] sm:$0xff] }
  0xf4   : > { %3995 = vmatprep.mubr.msk.bf16.mxu1 %vm183_vm1, %v4482_v23 }
  0xf5   : > { %v4651_v31 = vpop.f32.mrf.mxu1  ;;  %v4653_v38 = vpop.f32.mrf.mxu0 }
  0xf7   : > { %v4655_v42 = vpop.f32.mrf.mxu1  ;;  %v4657_v51 = vpop.f32.mrf.mxu0 }
  0xf9   : > { %v4659_v58 = vpop.f32.mrf.mxu1  ;;  %v4661_v60 = vpop.f32.mrf.mxu0  ;;  %4030 = vmatmul.mubr.msk.bf16.gmra.mxu0 %vm183_vm1, %v4502_v54  ;;  %v2363_v54 = vpack.c.bf16 %v2332_v43, %v2331_v41  ;;  %v2339_v41 = vld [vmem:[#allocation2 + $0x91] sm:$0xff]  ;;  %v2340_v43 = vld [vmem:[#allocation2 + $0x99] sm:$0xff] }
  0xfa   : > { %4033 = vmatprep.mubr.msk.bf16.mxu0 %vm183_vm1, %v4504_v55  ;;  %v2367_v56 = vpack.c.bf16 %v2340_v43, %v2339_v41  ;;  %v2344_v41 = vld [vmem:[#allocation2 + $0xc9] sm:$0xff] }
  0xfb   : > { %v4667_v63 = vpop.f32.mrf.mxu1  ;;  %3996 = vmatmul.mubr.msk.bf16.gmra.mxu1 %vm183_vm1, %v4484_v28  ;;  %v4671_v6 = vpop.f32.mrf.mxu0 }
  0xfc   : > { %3999 = vmatprep.mubr.msk.bf16.mxu1 %vm183_vm1, %v4498_v46 }
  0xfd   : > { %v4675_v15 = vpop.f32.mrf.mxu1  ;;  %v4677_v16 = vpop.f32.mrf.mxu0 }
  0xff   : > { %v4679_v34 = vpop.f32.mrf.mxu1  ;;  %v4681_v35 = vpop.f32.mrf.mxu0 }
 0x101   : > { %v4683_v48 = vpop.f32.mrf.mxu1  ;;  %v4685_v49 = vpop.f32.mrf.mxu0  ;;  %4034 = vmatmul.mubr.msk.bf16.gmra.mxu0 %vm183_vm1, %v4516_v12  ;;  %v2334_v12 = vld [vmem:[#allocation2 + $0x51] sm:$0xff] }
 0x102   : > { %4037 = vmatprep.mubr.msk.bf16.mxu0 %vm183_vm1, %v1201_v17  ;;  %v2364_v62 = vpack.c.bf16 %v2334_v12, %v2333_v3  ;;  %v2366_v12 = vpack.c.bf16 %v2338_v32, %v2337_v4  ;;  %v2342_v4 = vld [vmem:[#allocation2 + $0xb1] sm:$0xff] }
 0x103   : > { %v4690_v24 = vpop.f32.mrf.mxu1  ;;  %4000 = vmatmul.mubr.msk.bf16.gmra.mxu1 %vm183_vm1, %v4500_v53  ;;  %v4694_v25 = vpop.f32.mrf.mxu0 }
 0x104   : > { %4003 = vmatprep.mubr.msk.bf16.mxu1 %vm183_vm1, %v4514_v11 }
 0x105   : > { %v4698_v37 = vpop.f32.mrf.mxu1  ;;  %v4700_v39 = vpop.f32.mrf.mxu0 }
 0x107   : > { %v4702_v45 = vpop.f32.mrf.mxu1  ;;  %v4704_v50 = vpop.f32.mrf.mxu0 }
 0x109   : > { %v4708_v55 = vpop.f32.mrf.mxu1  ;;  %v4710_v59 = vpop.f32.mrf.mxu0  ;;  %4038 = vmatmul.mubr.msk.bf16.gmra.mxu0 %vm183_vm1, %v2084_v40 }
 0x10a   : > { %4077 = vmatprep.mubr.msk.bf16.mxu0 %vm183_vm1, %v4384_v57 }
 0x10b   : > { %v4715_v1 = vpop.f32.mrf.mxu1  ;;  %4004 = vmatmul.mubr.msk.bf16.gmra.mxu1 %vm183_vm1, %v4706_v52  ;;  %v4719_v5 = vpop.f32.mrf.mxu0 }
 0x10c   : > { %4043 = vmatprep.mubr.msk.bf16.mxu1 %vm183_vm1, %v2363_v54 }
 0x10d   : > { %v4722_v20 = vpop.f32.mrf.mxu1  ;;  %v4724_v21 = vpop.f32.mrf.mxu0 }
 0x10f   : > { %v4726_v61 = vpop.f32.mrf.mxu1  ;;  %v4728_v57 = vpop.f32.mrf.mxu0 }
 0x111   : > { %v4730_v9 = vpop.f32.mrf.mxu1  ;;  %v3875_v17 = vpop.f32.mrf.mxu0  ;;  %4078 = vmatmul.mubr.msk.bf16.vlgmr.msra.gmra.mxu0 %vm183_vm1, %v4416_v10 }
 0x112   : > { %4081 = vmatprep.mubr.msk.bf16.mxu0 %vm183_vm1, %v4420_v13 }
 0x113   : > { %v3841_v18 = vpop.f32.mrf.mxu1  ;;  %4044 = vmatmul.mubr.msk.bf16.vlgmr.msra.gmra.mxu1 %vm183_vm1, %v2364_v62  ;;  %v995_v19 = vpop.f32.mrf.mxu0 }
 0x114   : > { %v742_v8 = vadd.f32 %v3841_v18, %v4637_v26  ;;  %4047 = vmatprep.mubr.msk.bf16.mxu1 %vm183_vm1, %v2365_v2 }
 0x115   : > { %v733_v36 = vpop.f32.mrf.mxu1  ;;  %v3876_v40 = vpop.f32.mrf.mxu0 }
 0x116   : > { %v734_v54 = vadd.f32 %v733_v36, %v4647_v30  ;;  %v4740_v10 = vadd.f32 %v3875_v17, %v742_v8 }
 0x117   : > { %v3842_v3 = vpop.f32.mrf.mxu1  ;;  %v998_v13 = vpop.f32.mrf.mxu0 }
 0x118   : > { %v745_v22 = vadd.f32 %v3842_v3, %v4653_v38  ;;  %v4743_v62 = vadd.f32 %v995_v19, %v734_v54  ;;  %v2341_v19 = vld [vmem:[#allocation2 + $0xa9] sm:$0xff] }
 0x119   : > { %v736_v26 = vpop.f32.mrf.mxu1  ;;  %v3879_v2 = vpop.f32.mrf.mxu0  ;;  %4082 = vmatmul.mubr.msk.bf16.gmra.mxu0 %vm183_vm1, %v4434_v27  ;;  %v2368_v3 = vpack.c.bf16 %v2342_v4, %v2341_v19  ;;  %v2348_v4 = vld [vmem:[#allocation2 + $0xf9] sm:$0xff] }
 0x11a   : > { %v737_v18 = vadd.f32 %v736_v26, %v4657_v51  ;;  %4085 = vmatprep.mubr.msk.bf16.mxu0 %vm183_vm1, %v4436_v33  ;;  %v4750_v30 = vadd.f32 %v3876_v40, %v745_v22  ;;  %v2343_v51 = vld [vmem:[#allocation2 + $0xc1] sm:$0xff] }
 0x11b   : > { %v3845_v17 = vpop.f32.mrf.mxu1  ;;  %4048 = vmatmul.mubr.msk.bf16.gmra.mxu1 %vm183_vm1, %v2366_v12  ;;  %v1011_v8 = vpop.f32.mrf.mxu0 }
 0x11c   : > { %v758_v38 = vadd.f32 %v3845_v17, %v4661_v60  ;;  %4051 = vmatprep.mubr.msk.bf16.mxu1 %vm183_vm1, %v2367_v56  ;;  %v4755_v32 = vadd.f32 %v998_v13, %v737_v18  ;;  %v2369_v60 = vpack.c.bf16 %v2344_v41, %v2343_v51  ;;  %v2345_v17 = vld [vmem:[#allocation2 + $0xd9] sm:$0xff] }
 0x11d   : > { %v749_v27 = vpop.f32.mrf.mxu1  ;;  %v3880_v36 = vpop.f32.mrf.mxu0 }
 0x11e   : > { %v750_v33 = vadd.f32 %v749_v27, %v4671_v6  ;;  %v4758_v40 = vadd.f32 %v3879_v2, %v758_v38 }
 0x11f   : > { %v3846_v43 = vpop.f32.mrf.mxu1  ;;  %v1014_v54 = vpop.f32.mrf.mxu0 }
 0x120   : > { %v761_v12 = vadd.f32 %v3846_v43, %v4677_v16  ;;  %v4761_v22 = vadd.f32 %v1011_v8, %v750_v33  ;;  %v2346_v8 = vld [vmem:[#allocation2 + $0xe1] sm:$0xff] }
 0x121   : > { %v752_v56 = vpop.f32.mrf.mxu1  ;;  %v3883_v26 = vpop.f32.mrf.mxu0  ;;  %4086 = vmatmul.mubr.msk.bf16.gmra.mxu0 %vm183_vm1, %v4450_v44  ;;  %v2370_v41 = vpack.c.bf16 %v2346_v8, %v2345_v17 }
 0x122   : > { %v753_v13 = vadd.f32 %v752_v56, %v4681_v35  ;;  %4089 = vmatprep.mubr.msk.bf16.mxu0 %vm183_vm1, %v4452_v47  ;;  %v4768_v6 = vadd.f32 %v3880_v36, %v761_v12  ;;  %v2347_v35 = vld [vmem:[#allocation2 + $0xf1] sm:$0xff] }
 0x123   : > { %v3849_v2 = vpop.f32.mrf.mxu1  ;;  %4052 = vmatmul.mubr.msk.bf16.gmra.mxu1 %vm183_vm1, %v2368_v3  ;;  %v1027_v18 = vpop.f32.mrf.mxu0 }
 0x124   : > { %v774_v16 = vadd.f32 %v3849_v2, %v4685_v49  ;;  %4055 = vmatprep.mubr.msk.bf16.mxu1 %vm183_vm1, %v2369_v60  ;;  %v4773_v38 = vadd.f32 %v1014_v54, %v753_v13  ;;  %v2371_v49 = vpack.c.bf16 %v2348_v4, %v2347_v35  ;;  %v2350_v13 = vld [vmem:[#allocation2 + $0x111] sm:$0xff] }
 0x125   : > { %v765_v44 = vpop.f32.mrf.mxu1  ;;  %v3884_v19 = vpop.f32.mrf.mxu0 }
 0x126   : > { %v766_v47 = vadd.f32 %v765_v44, %v4694_v25  ;;  %v4776_v27 = vadd.f32 %v3883_v26, %v774_v16  ;;  %v2349_v26 = vld [vmem:[#allocation2 + $0x109] sm:$0xff] }
 0x127   : > { %v3850_v36 = vpop.f32.mrf.mxu1  ;;  %v1030_v51 = vpop.f32.mrf.mxu0  ;;  %v2352_v16 = vld [vmem:[#allocation2 + $0x129] sm:$0xff] }
 0x128   : > { %v777_v33 = vadd.f32 %v3850_v36, %v4700_v39  ;;  %v4779_v43 = vadd.f32 %v1027_v18, %v766_v47 }
 0x129   : > { %v768_v3 = vpop.f32.mrf.mxu1  ;;  %v3887_v12 = vpop.f32.mrf.mxu0  ;;  %4090 = vmatmul.mubr.msk.bf16.gmra.mxu0 %vm183_vm1, %v4466_v0 }
 0x12a   : > { %v769_v54 = vadd.f32 %v768_v3, %v4704_v50  ;;  %4093 = vmatprep.mubr.msk.bf16.mxu0 %vm183_vm1, %v4468_v7  ;;  %v4786_v25 = vadd.f32 %v3884_v19, %v777_v33  ;;  %v2351_v50 = vld [vmem:[#allocation2 + $0x121] sm:$0xff]  ;;  %v2372_v19 = vpack.c.bf16 %v2350_v13, %v2349_v26 }
 0x12b   : > { %v3853_v60 = vpop.f32.mrf.mxu1  ;;  %4056 = vmatmul.mubr.msk.bf16.gmra.mxu1 %vm183_vm1, %v2370_v41  ;;  %v1043_v56 = vpop.f32.mrf.mxu0  ;;  %v2354_v3 = vld [vmem:[#allocation2 + $0x141] sm:$0xff] }
 0x12c   : > { %v790_v39 = vadd.f32 %v3853_v60, %v4710_v59  ;;  %4059 = vmatprep.mubr.msk.bf16.mxu1 %vm183_vm1, %v2371_v49  ;;  %v4791_v2 = vadd.f32 %v1030_v51, %v769_v54  ;;  %v2373_v59 = vpack.c.bf16 %v2352_v16, %v2351_v50  ;;  %v2353_v49 = vld [vmem:[#allocation2 + $0x139] sm:$0xff] }
 0x12d   : > { %v781_v0 = vpop.f32.mrf.mxu1  ;;  %v3888_v18 = vpop.f32.mrf.mxu0  ;;  %v2356_v60 = vld [vmem:[#allocation2 + $0x159] sm:$0xff]  ;;  %v2374_v13 = vpack.c.bf16 %v2354_v3, %v2353_v49 }
 0x12e   : > { %v782_v7 = vadd.f32 %v781_v0, %v4719_v5  ;;  %v4794_v17 = vadd.f32 %v3887_v12, %v790_v39 }
 0x12f   : > { %v3854_v8 = vpop.f32.mrf.mxu1  ;;  %v1046_v44 = vpop.f32.mrf.mxu0 }
 0x130   : > { %v793_v35 = vadd.f32 %v3854_v8, %v4724_v21  ;;  %v4797_v4 = vadd.f32 %v1043_v56, %v782_v7 }
 0x131   : > { %v784_v47 = vpop.f32.mrf.mxu1  ;;  %v3891_v36 = vpop.f32.mrf.mxu0  ;;  %4094 = vmatmul.mubr.msk.bf16.gmra.mxu0 %vm183_vm1, %v4482_v23 }
 0x132   : > { %v785_v51 = vadd.f32 %v784_v47, %v4728_v57  ;;  %4097 = vmatprep.mubr.msk.bf16.mxu0 %vm183_vm1, %v4484_v28  ;;  %v4804_v5 = vadd.f32 %v3888_v18, %v793_v35  ;;  %v2355_v57 = vld [vmem:[#allocation2 + $0x151] sm:$0xff] }
 0x133   : > { %v3857_v41 = vpop.f32.mrf.mxu1  ;;  %4060 = vmatmul.mubr.msk.bf16.gmra.mxu1 %vm183_vm1, %v2372_v19  ;;  %v1059_v33 = vpop.f32.mrf.mxu0  ;;  %v2357_v19 = vld [vmem:[#allocation2 + $0x169] sm:$0xff]  ;;  %v2358_v35 = vld [vmem:[#allocation2 + $0x171] sm:$0xff] }
 0x134   : > { %v806_v21 = vadd.f32 %v3857_v41, %v4643_v29  ;;  %4063 = vmatprep.mubr.msk.bf16.mxu1 %vm183_vm1, %v2373_v59  ;;  %v4809_v12 = vadd.f32 %v1046_v44, %v785_v51  ;;  %v2375_v29 = vpack.c.bf16 %v2356_v60, %v2355_v57  ;;  %v2376_v41 = vpack.c.bf16 %v2358_v35, %v2357_v19 }
 0x135   : > { %v797_v23 = vpop.f32.mrf.mxu1  ;;  %v3892_v54 = vpop.f32.mrf.mxu0 }
 0x136   : > { %v798_v28 = vadd.f32 %v797_v23, %v4651_v31  ;;  %v4812_v56 = vadd.f32 %v3891_v36, %v806_v21  ;;  %v2656_v23 = vld [vmem:[#allocation2 + $0x1a2] sm:$0xff] }
 0x137   : > { %v3858_v39 = vpop.f32.mrf.mxu1  ;;  %v1062_v26 = vpop.f32.mrf.mxu0 }
 0x138   : > { %v809_v0 = vadd.f32 %v3858_v39, %v4655_v42  ;;  %v4815_v18 = vadd.f32 %v1059_v33, %v798_v28  ;;  %v2361_v28 = vld [vmem:[#allocation2 + $0x199] sm:$0xff] }
 0x139   : > { %v800_v50 = vpop.f32.mrf.mxu1  ;;  %v3895_v16 = vpop.f32.mrf.mxu0  ;;  %4098 = vmatmul.mubr.msk.bf16.gmra.mxu0 %vm183_vm1, %v4498_v46 }
 0x13a   : > { %v801_v7 = vadd.f32 %v800_v50, %v4659_v58  ;;  %4101 = vmatprep.mubr.msk.bf16.mxu0 %vm183_vm1, %v4500_v53  ;;  %v4822_v31 = vadd.f32 %v3892_v54, %v809_v0 }
 0x13b   : > { %v3861_v8 = vpop.f32.mrf.mxu1  ;;  %4064 = vmatmul.mubr.msk.bf16.gmra.mxu1 %vm183_vm1, %v2374_v13  ;;  %v1075_v44 = vpop.f32.mrf.mxu0 }
 0x13c   : > { %v822_v42 = vadd.f32 %v3861_v8, %v4667_v63  ;;  %4067 = vmatprep.mubr.msk.bf16.mxu1 %vm183_vm1, %v2375_v29  ;;  %v4827_v59 = vadd.f32 %v1062_v26, %v801_v7 }
 0x13d   : > { %v813_v46 = vpop.f32.mrf.mxu1  ;;  %v3896_v47 = vpop.f32.mrf.mxu0 }
 0x13e   : > { %v814_v58 = vadd.f32 %v813_v46, %v4675_v15  ;;  %v4830_v36 = vadd.f32 %v3895_v16, %v822_v42  ;;  %v2655_v15 = vld [vmem:[#allocation2 + $0x19a] sm:$0xff] }
 0x13f   : > { %v3862_v53 = vpop.f32.mrf.mxu1  ;;  %v1078_v51 = vpop.f32.mrf.mxu0 }
 0x140   : > { %v825_v33 = vadd.f32 %v3862_v53, %v4679_v34  ;;  %v4833_v21 = vadd.f32 %v1075_v44, %v814_v58 }
 0x141   : > { %v816_v63 = vpop.f32.mrf.mxu1  ;;  %v3899_v49 = vpop.f32.mrf.mxu0  ;;  %4102 = vmatmul.mubr.msk.bf16.gmra.mxu0 %vm183_vm1, %v4514_v11  ;;  %v2362_v11 = vld [vmem:[#allocation2 + $0x1a1] sm:$0xff] }
 0x142   : > { %v817_v3 = vadd.f32 %v816_v63, %v4683_v48  ;;  %4105 = vmatprep.mubr.msk.bf16.mxu0 %vm183_vm1, %v4706_v52  ;;  %v4840_v54 = vadd.f32 %v3896_v47, %v825_v33  ;;  %v2672_v52 = vpack.c.bf16 %v2656_v23, %v2655_v15  ;;  %v2378_v16 = vpack.c.bf16 %v2362_v11, %v2361_v28 }
 0x143   : > { %v3865_v57 = vpop.f32.mrf.mxu1  ;;  %4068 = vmatmul.mubr.msk.bf16.gmra.mxu1 %vm183_vm1, %v2376_v41  ;;  %v1091_v34 = vpop.f32.mrf.mxu0 }
 0x144   : > { %v838_v60 = vadd.f32 %v3865_v57, %v4690_v24  ;;  %4071 = vmatprep.mubr.msk.bf16.mxu1 %vm183_vm1, %v4594_v14  ;;  %v4846_v39 = vadd.f32 %v1078_v51, %v817_v3 }
 0x145   : > { %v829_v48 = vpop.f32.mrf.mxu1  ;;  %v3900_v26 = vpop.f32.mrf.mxu0 }
 0x146   : > { %v830_v13 = vadd.f32 %v829_v48, %v4698_v37  ;;  %v4849_v0 = vadd.f32 %v3899_v49, %v838_v60 }
 0x147   : > { %v3866_v29 = vpop.f32.mrf.mxu1  ;;  %v1094_v50 = vpop.f32.mrf.mxu0 }
 0x148   : > { %v841_v7 = vadd.f32 %v3866_v29, %v4702_v45  ;;  %v4852_v24 = vadd.f32 %v1091_v34, %v830_v13 }
 0x149   : > { %v832_v8 = vpop.f32.mrf.mxu1  ;;  %v3903_v14 = vpop.f32.mrf.mxu0  ;;  %4106 = vmatmul.mubr.msk.bf16.gmra.mxu0 %vm183_vm1, %v2672_v52 }
 0x14a   : > { %v833_v44 = vadd.f32 %v832_v8, %v4708_v55  ;;  %v4856_v42 = vadd.f32 %v3900_v26, %v841_v7 }
 0x14b   : > { %v3869_v19 = vpop.f32.mrf.mxu1  ;;  %4072 = vmatmul.mubr.msk.bf16.gmra.mxu1 %vm183_vm1, %v2378_v16  ;;  %v1107_v37 = vpop.f32.mrf.mxu0 }
 0x14c   : > { %v854_v35 = vadd.f32 %v3869_v19, %v4715_v1  ;;  %v4860_v46 = vadd.f32 %v1094_v50, %v833_v44 }
 0x14d   : > { %v845_v47 = vpop.f32.mrf.mxu1  ;;  %v3904_v45 = vpop.f32.mrf.mxu0 }
 0x14e   : > { %v846_v58 = vadd.f32 %v845_v47, %v4722_v20  ;;  %v4863_v53 = vadd.f32 %v3903_v14, %v854_v35 }
 0x14f   : > { %v3870_v51 = vpop.f32.mrf.mxu1  ;;  %v1110_v41 = vpop.f32.mrf.mxu0 }
 0x150   : > { %v857_v55 = vadd.f32 %v3870_v51, %v4726_v61  ;;  %v4866_v33 = vadd.f32 %v1107_v37, %v846_v58 }
 0x151   : > { %v848_v63 = vpop.f32.mrf.mxu1  ;;  %v3943_v49 = vpop.f32.mrf.mxu0 }
 0x152   : > { %v849_v3 = vadd.f32 %v848_v63, %v4730_v9  ;;  %v4869_v15 = vadd.f32 %v3904_v45, %v857_v55 }
 0x153   : > { %v3909_v1 = vpop.f32.mrf.mxu1  ;;  %v1583_v23 = vpop.f32.mrf.mxu0 }
 0x154   : > { %v1418_v57 = vadd.f32 %v3909_v1, %v4740_v10  ;;  %v4872_v34 = vadd.f32 %v1110_v41, %v849_v3 }
 0x155   : > { %v1289_v20 = vpop.f32.mrf.mxu1  ;;  %v3944_v60 = vpop.f32.mrf.mxu0 }
 0x156   : > { %v1416_v28 = vadd.f32 %v1289_v20, %v4743_v62  ;;  %v4875_v11 = vadd.f32 %v3943_v49, %v1418_v57 }
 0x157   : > { %v3910_v61 = vpop.f32.mrf.mxu1  ;;  %v1586_v48 = vpop.f32.mrf.mxu0 }
 0x158   : > { %v1419_v26 = vadd.f32 %v3910_v61, %v4750_v30  ;;  %v4878_v52 = vadd.f32 %v1583_v23, %v1416_v28 }
 0x159   : > { %v1292_v9 = vpop.f32.mrf.mxu1  ;;  %v3947_v13 = vpop.f32.mrf.mxu0 }
 0x15a   : > { %v1417_v29 = vadd.f32 %v1292_v9, %v4755_v32  ;;  %v4881_v50 = vadd.f32 %v3944_v60, %v1419_v26 }
 0x15b   : > { %v3913_v10 = vpop.f32.mrf.mxu1  ;;  %v1599_v16 = vpop.f32.mrf.mxu0 }
 0x15c   : > { %v1422_v7 = vadd.f32 %v3913_v10, %v4758_v40  ;;  %v4884_v8 = vadd.f32 %v1586_v48, %v1417_v29 }
 0x15d   : > { %v1305_v62 = vpop.f32.mrf.mxu1  ;;  %v3948_v14 = vpop.f32.mrf.mxu0 }
 0x15e   : > { %v1420_v44 = vadd.f32 %v1305_v62, %v4761_v22  ;;  %v4887_v19 = vadd.f32 %v3947_v13, %v1422_v7 }
 0x15f   : > { %v3914_v30 = vpop.f32.mrf.mxu1  ;;  %v1602_v37 = vpop.f32.mrf.mxu0 }
 0x160   : > { %v1423_v35 = vadd.f32 %v3914_v30, %v4768_v6  ;;  %v4890_v47 = vadd.f32 %v1599_v16, %v1420_v44 }
 0x161   : > { %v1308_v32 = vpop.f32.mrf.mxu1  ;;  %v3951_v45 = vpop.f32.mrf.mxu0 }
 0x162   : > { %v1421_v58 = vadd.f32 %v1308_v32, %v4773_v38  ;;  %v4893_v51 = vadd.f32 %v3948_v14, %v1423_v35 }
 0x163   : > { %v3917_v40 = vpop.f32.mrf.mxu1  ;;  %v1615_v41 = vpop.f32.mrf.mxu0 }
 0x164   : > { %v1426_v55 = vadd.f32 %v3917_v40, %v4776_v27  ;;  %v4896_v63 = vadd.f32 %v1602_v37, %v1421_v58 }
 0x165   : > { %v1321_v22 = vpop.f32.mrf.mxu1  ;;  %v3952_v49 = vpop.f32.mrf.mxu0 }
 0x166   : > { %v1424_v3 = vadd.f32 %v1321_v22, %v4779_v43  ;;  %v4899_v1 = vadd.f32 %v3951_v45, %v1426_v55 }
 0x167   : > { %v3918_v6 = vpop.f32.mrf.mxu1  ;;  %v1618_v23 = vpop.f32.mrf.mxu0 }
 0x168   : > { %v1427_v57 = vadd.f32 %v3918_v6, %v4786_v25  ;;  %v4902_v20 = vadd.f32 %v1615_v41, %v1424_v3 }
 0x169   : > { %v1324_v38 = vpop.f32.mrf.mxu1  ;;  %v3955_v60 = vpop.f32.mrf.mxu0 }
 0x16a   : > { %v1425_v28 = vadd.f32 %v1324_v38, %v4791_v2  ;;  %v4905_v61 = vadd.f32 %v3952_v49, %v1427_v57 }
 0x16b   : > { %v3921_v27 = vpop.f32.mrf.mxu1  ;;  %v1631_v48 = vpop.f32.mrf.mxu0 }
 0x16c   : > { %v1430_v26 = vadd.f32 %v3921_v27, %v4794_v17  ;;  %v4908_v9 = vadd.f32 %v1618_v23, %v1425_v28 }
 0x16d   : > { %v1337_v43 = vpop.f32.mrf.mxu1  ;;  %v3956_v13 = vpop.f32.mrf.mxu0 }
 0x16e   : > { %v1428_v29 = vadd.f32 %v1337_v43, %v4797_v4  ;;  %v4911_v10 = vadd.f32 %v3955_v60, %v1430_v26 }
 0x16f   : > { %v3922_v25 = vpop.f32.mrf.mxu1  ;;  %v1634_v16 = vpop.f32.mrf.mxu0 }
 0x170   : > { %v1431_v7 = vadd.f32 %v3922_v25, %v4804_v5  ;;  %v4914_v62 = vadd.f32 %v1631_v48, %v1428_v29 }
 0x171   : > { %v1340_v2 = vpop.f32.mrf.mxu1  ;;  %v3959_v14 = vpop.f32.mrf.mxu0 }
 0x172   : > { %v1429_v44 = vadd.f32 %v1340_v2, %v4809_v12  ;;  %v4917_v30 = vadd.f32 %v3956_v13, %v1431_v7 }
 0x173   : > { %v3925_v17 = vpop.f32.mrf.mxu1  ;;  %v1647_v37 = vpop.f32.mrf.mxu0 }
 0x174   : > { %v1434_v35 = vadd.f32 %v3925_v17, %v4812_v56  ;;  %v4920_v32 = vadd.f32 %v1634_v16, %v1429_v44 }
 0x175   : > { %v1353_v4 = vpop.f32.mrf.mxu1  ;;  %v3960_v45 = vpop.f32.mrf.mxu0 }
 0x176   : > { %v1432_v58 = vadd.f32 %v1353_v4, %v4815_v18  ;;  %v4923_v40 = vadd.f32 %v3959_v14, %v1434_v35 }
 0x177   : > { %v3926_v5 = vpop.f32.mrf.mxu1  ;;  %v1650_v41 = vpop.f32.mrf.mxu0 }
 0x178   : > { %v1435_v55 = vadd.f32 %v3926_v5, %v4822_v31  ;;  %v4926_v22 = vadd.f32 %v1647_v37, %v1432_v58 }
 0x179   : > { %v1356_v12 = vpop.f32.mrf.mxu1  ;;  %v3963_v49 = vpop.f32.mrf.mxu0 }
 0x17a   : > { %v1433_v3 = vadd.f32 %v1356_v12, %v4827_v59  ;;  %v4929_v6 = vadd.f32 %v3960_v45, %v1435_v55 }
 0x17b   : > { %v3929_v56 = vpop.f32.mrf.mxu1  ;;  %v1663_v23 = vpop.f32.mrf.mxu0 }
 0x17c   : > { %v1438_v57 = vadd.f32 %v3929_v56, %v4830_v36  ;;  %v4932_v38 = vadd.f32 %v1650_v41, %v1433_v3 }
 0x17d   : > { %v1369_v18 = vpop.f32.mrf.mxu1  ;;  %v3964_v60 = vpop.f32.mrf.mxu0 }
 0x17e   : > { %5369 = vst [vmem:[#allocation3_spill] sm:$0xff] %v4932_v38  ;;  %v1436_v28 = vadd.f32 %v1369_v18, %v4833_v21  ;;  %v4935_v27 = vadd.f32 %v3963_v49, %v1438_v57 }
 0x17f   : > { %v3930_v31 = vpop.f32.mrf.mxu1  ;;  %v1666_v48 = vpop.f32.mrf.mxu0 }
 0x180   : > { %5370 = vst [vmem:[#allocation4_spill] sm:$0xff] %v4935_v27  ;;  %v1439_v26 = vadd.f32 %v3930_v31, %v4840_v54  ;;  %v4938_v43 = vadd.f32 %v1663_v23, %v1436_v28 }
 0x181   : > { %v1372_v59 = vpop.f32.mrf.mxu1  ;;  %v3967_v13 = vpop.f32.mrf.mxu0 }
 0x182   : > { %5371 = vst [vmem:[#allocation5_spill] sm:$0xff] %v4938_v43  ;;  %v1437_v29 = vadd.f32 %v1372_v59, %v4846_v39  ;;  %v4941_v25 = vadd.f32 %v3964_v60, %v1439_v26 }
 0x183   : > { %v3933_v36 = vpop.f32.mrf.mxu1  ;;  %v1679_v16 = vpop.f32.mrf.mxu0 }
 0x184   : > { %5372 = vst [vmem:[#allocation6_spill] sm:$0xff] %v4941_v25  ;;  %v1442_v7 = vadd.f32 %v3933_v36, %v4849_v0  ;;  %v4944_v2 = vadd.f32 %v1666_v48, %v1437_v29 }
 0x185   : > { %v1385_v21 = vpop.f32.mrf.mxu1  ;;  %v3968_v14 = vpop.f32.mrf.mxu0 }
 0x186   : > { %5373 = vst [vmem:[#allocation7_spill] sm:$0xff] %v4944_v2  ;;  %v1440_v44 = vadd.f32 %v1385_v21, %v4852_v24  ;;  %v4947_v17 = vadd.f32 %v3967_v13, %v1442_v7 }
 0x187   : > { %v3934_v54 = vpop.f32.mrf.mxu1  ;;  %v1682_v37 = vpop.f32.mrf.mxu0 }
 0x188   : > { %5374 = vst [vmem:[#allocation8_spill] sm:$0xff] %v4947_v17  ;;  %v1443_v35 = vadd.f32 %v3934_v54, %v4856_v42  ;;  %v4950_v4 = vadd.f32 %v1679_v16, %v1440_v44 }
 0x189   : > { %v1388_v39 = vpop.f32.mrf.mxu1  ;;  %v3971_v45 = vpop.f32.mrf.mxu0 }
 0x18a   : > { %5375 = vst [vmem:[#allocation9_spill] sm:$0xff] %v4950_v4  ;;  %v1441_v58 = vadd.f32 %v1388_v39, %v4860_v46  ;;  %v4953_v5 = vadd.f32 %v3968_v14, %v1443_v35 }
 0x18b   : > { %v3937_v0 = vpop.f32.mrf.mxu1  ;;  %v1695_v41 = vpop.f32.mrf.mxu0 }
 0x18c   : > { %5376 = vst [vmem:[#allocation10_spill] sm:$0xff] %v4953_v5  ;;  %v1446_v55 = vadd.f32 %v3937_v0, %v4863_v53  ;;  %v4956_v12 = vadd.f32 %v1682_v37, %v1441_v58 }
 0x18d   : > { %v1401_v24 = vpop.f32.mrf.mxu1  ;;  %v3972_v49 = vpop.f32.mrf.mxu0 }
 0x18e   : > { %5377 = vst [vmem:[#allocation11_spill] sm:$0xff] %v4956_v12  ;;  %v1444_v3 = vadd.f32 %v1401_v24, %v4866_v33  ;;  %v4959_v56 = vadd.f32 %v3971_v45, %v1446_v55 }
 0x18f   : > { %v3938_v42 = vpop.f32.mrf.mxu1  ;;  %v1698_v23 = vpop.f32.mrf.mxu0 }
 0x190   : > { %5378 = vst [vmem:[#allocation12_spill] sm:$0xff] %v4959_v56  ;;  %v1447_v57 = vadd.f32 %v3938_v42, %v4869_v15  ;;  %v4962_v18 = vadd.f32 %v1695_v41, %v1444_v3 }
 0x191   : > { %v1404_v46 = vpop.f32.mrf.mxu1  ;;  %v4964_v60 = vpop.f32.mrf.mxu0 }
 0x192   : > { %5379 = vst [vmem:[#allocation13_spill] sm:$0xff] %v4962_v18  ;;  %v1445_v28 = vadd.f32 %v1404_v46, %v4872_v34  ;;  %v4967_v53 = vadd.f32 %v3972_v49, %v1447_v57 }
 0x193   : > { %v3977_v31 = vpop.f32.mrf.mxu1  ;;  %v4969_v48 = vpop.f32.mrf.mxu0 }
 0x194   : > { %5380 = vst [vmem:[#allocation14_spill] sm:$0xff] %v4967_v53  ;;  %v4971_v26 = vadd.f32 %v1698_v23, %v1445_v28 }
 0x195   : > { %v1877_v33 = vpop.f32.mrf.mxu1  ;;  %v4973_v59 = vpop.f32.mrf.mxu0 }
 0x196   : > { %5381 = vst [vmem:[#allocation15_spill] sm:$0xff] %v4971_v26 }
 0x197   : > { %v3978_v13 = vpop.f32.mrf.mxu1  ;;  %v4975_v29 = vpop.f32.mrf.mxu0 }
 0x199   : > { %v1880_v15 = vpop.f32.mrf.mxu1  ;;  %v4977_v36 = vpop.f32.mrf.mxu0 }
 0x19b   : > { %v3981_v16 = vpop.f32.mrf.mxu1  ;;  %v4979_v7 = vpop.f32.mrf.mxu0 }
 0x19d   : > { %v1893_v34 = vpop.f32.mrf.mxu1  ;;  %v4981_v21 = vpop.f32.mrf.mxu0 }
 0x19f   : > { %v3982_v14 = vpop.f32.mrf.mxu1  ;;  %v4983_v44 = vpop.f32.mrf.mxu0 }
 0x1a1   : > { %v1896_v54 = vpop.f32.mrf.mxu1  ;;  %v4985_v37 = vpop.f32.mrf.mxu0 }
 0x1a3   : > { %v3985_v35 = vpop.f32.mrf.mxu1  ;;  %v4987_v39 = vpop.f32.mrf.mxu0 }
 0x1a5   : > { %v1909_v45 = vpop.f32.mrf.mxu1  ;;  %v4989_v58 = vpop.f32.mrf.mxu0 }
 0x1a7   : > { %v3986_v0 = vpop.f32.mrf.mxu1  ;;  %v4991_v41 = vpop.f32.mrf.mxu0 }
 0x1a9   : > { %v1912_v55 = vpop.f32.mrf.mxu1  ;;  %v4993_v24 = vpop.f32.mrf.mxu0 }
 0x1ab   : > { %v3989_v49 = vpop.f32.mrf.mxu1  ;;  %v4995_v3 = vpop.f32.mrf.mxu0 }
 0x1ad   : > { %v1925_v42 = vpop.f32.mrf.mxu1  ;;  %v4997_v23 = vpop.f32.mrf.mxu0 }
 0x1af   : > { %v3990_v57 = vpop.f32.mrf.mxu1  ;;  %v4999_v46 = vpop.f32.mrf.mxu0 }
 0x1b0   : > { %5382 = vst [vmem:[#allocation16_spill] sm:$0xff] %v4999_v46 }
 0x1b1   : > { %v1928_v28 = vpop.f32.mrf.mxu1  ;;  %v5001_v26 = vpop.f32.mrf.mxu0 }
 0x1b2   : > { %5383 = vst [vmem:[#allocation17_spill] sm:$0xff] %v5001_v26 }
 0x1b3   : > { %v3993_v53 = vpop.f32.mrf.mxu1  ;;  %v5003_v18 = vpop.f32.mrf.mxu0 }
 0x1b4   : > { %5384 = vst [vmem:[#allocation18_spill] sm:$0xff] %v5003_v18 }
 0x1b5   : > { %v1941_v56 = vpop.f32.mrf.mxu1  ;;  %v5005_v12 = vpop.f32.mrf.mxu0 }
 0x1b6   : > { %5385 = vst [vmem:[#allocation19_spill] sm:$0xff] %v5005_v12 }
 0x1b7   : > { %v3994_v5 = vpop.f32.mrf.mxu1  ;;  %v5007_v4 = vpop.f32.mrf.mxu0 }
 0x1b8   : > { %5386 = vst [vmem:[#allocation20_spill] sm:$0xff] %v5007_v4 }
 0x1b9   : > { %v5009_v17 = vpop.f32.mrf.mxu1  ;;  %v5011_v2 = vpop.f32.mrf.mxu0 }
 0x1ba   : > { %5387 = vst [vmem:[#allocation21_spill] sm:$0xff] %v5009_v17  ;;  %5388 = vst [vmem:[#allocation22_spill] sm:$0xff] %v5011_v2 }
 0x1bb   : > { %v5013_v25 = vpop.f32.mrf.mxu1  ;;  %v5015_v43 = vpop.f32.mrf.mxu0 }
 0x1bc   : > { %5389 = vst [vmem:[#allocation23_spill] sm:$0xff] %v5013_v25  ;;  %5390 = vst [vmem:[#allocation24_spill] sm:$0xff] %v5015_v43 }
 0x1bd   : > { %v5017_v27 = vpop.f32.mrf.mxu1  ;;  %v5019_v26 = vpop.f32.mrf.mxu0 }
 0x1be   : > { %5391 = vst [vmem:[#allocation25_spill] sm:$0xff] %v5017_v27  ;;  %5392 = vst [vmem:[#allocation26_spill] sm:$0xff] %v5019_v26  ;;  %v2006_v26 = vadd.f32 %v3977_v31, %v4875_v11  ;;  %v2011_v11 = vadd.f32 %v3982_v14, %v4893_v51 }
 0x1bf   : > { %v5021_v38 = vpop.f32.mrf.mxu1  ;;  %v5023_v18 = vpop.f32.mrf.mxu0 }
 0x1c0   : > { %5393 = vst [vmem:[#allocation27_spill] sm:$0xff] %v5021_v38  ;;  %5394 = vst [vmem:[#allocation28_spill] sm:$0xff] %v5023_v18 }
 0x1c1   : > { %v5025_v12 = vpop.f32.mrf.mxu1  ;;  %v5027_v46 = vpop.f32.mrf.mxu0 }
 0x1c2   : > { %5395 = vst [vmem:[#allocation29_spill] sm:$0xff] %v5025_v12  ;;  %5396 = vst [vmem:[#allocation30_spill] sm:$0xff] %v5027_v46  ;;  %v2004_v46 = vadd.f32 %v1877_v33, %v4878_v52  ;;  %v2301_v52 = vadd.f32 %v4964_v60, %v2006_v26  ;;  %v2014_v33 = vadd.f32 %v3985_v35, %v4899_v1  ;;  %v5408_v35 = vld [vmem:[#allocation5_spill] sm:$0xff] }
 0x1c3   : > { %v5029_v4 = vpop.f32.mrf.mxu1  ;;  %v5031_v17 = vpop.f32.mrf.mxu0  ;;  %v2019_v1 = vadd.f32 %v3990_v57, %v4917_v30 }
 0x1c4   : > { %5397 = vst [vmem:[#allocation31_spill] sm:$0xff] %v5029_v4  ;;  %5398 = vst [vmem:[#allocation32_spill] sm:$0xff] %v5031_v17  ;;  %v2007_v4 = vadd.f32 %v3978_v13, %v4881_v50  ;;  %v2009_v50 = vadd.f32 %v1896_v54, %v4896_v63  ;;  %v2012_v13 = vadd.f32 %v1909_v45, %v4902_v20  ;;  %v5407_v54 = vld [vmem:[#allocation23_spill] sm:$0xff] }
 0x1c5   : > { %v5033_v2 = vpop.f32.mrf.mxu1  ;;  %v5035_v25 = vpop.f32.mrf.mxu0  ;;  %v2016_v63 = vadd.f32 %v1925_v42, %v4914_v62  ;;  %v2017_v20 = vadd.f32 %v1928_v28, %v4920_v32  ;;  %v5091_v30 = vadd.f32 %v4985_v37, %v2014_v33  ;;  %v5413_v42 = vld [vmem:[#allocation7_spill] sm:$0xff]  ;;  %v5417_v33 = vld [vmem:[#allocation9_spill] sm:$0xff] }
 0x1c6   : > { %5399 = vst [vmem:[#allocation33_spill] sm:$0xff] %v5035_v25  ;;  %v2005_v25 = vadd.f32 %v1880_v15, %v4884_v8  ;;  %v2015_v8 = vadd.f32 %v3986_v0, %v4905_v61  ;;  %v2302_v60 = vadd.f32 %v4973_v59, %v2007_v4  ;;  %v5085_v4 = vadd.f32 %v4981_v21, %v2011_v11  ;;  %v5403_v21 = vld [vmem:[#allocation16_spill] sm:$0xff] }
 0x1c7   : > { %v5037_v43 = vpop.f32.mrf.mxu1  ;;  %v5039_v27 = vpop.f32.mrf.mxu0  ;;  %v5088_v62 = vadd.f32 %v4983_v44, %v2009_v50  ;;  %v5094_v32 = vadd.f32 %v4987_v39, %v2012_v13  ;;  %v5406_v44 = vld [vmem:[#allocation4_spill] sm:$0xff]  ;;  %v5409_v39 = vld [vmem:[#allocation25_spill] sm:$0xff]  ;;  %v2028_v13 = vadd.f32 %v5033_v2, %v5417_v33 }
 0x1c8   : > { %5400 = vst [vmem:[#allocation34_spill] sm:$0xff] %v5037_v43  ;;  %5401 = vst [vmem:[#allocation35_spill] sm:$0xff] %v5039_v27  ;;  %v2010_v43 = vadd.f32 %v3981_v16, %v4887_v19  ;;  %v2008_v27 = vadd.f32 %v1893_v34, %v4890_v47  ;;  %v2013_v19 = vadd.f32 %v1912_v55, %v4908_v9  ;;  %v5415_v11 = vld [vmem:[#allocation8_spill] sm:$0xff] }
 0x1c9   : > { %v5042_v38 = vpop.f32.mrf.mxu1  ;;  %v5044_v18 = vpop.f32.mrf.mxu0  ;;  %v2018_v47 = vadd.f32 %v3989_v49, %v4911_v10  ;;  %v2299_v16 = vadd.f32 %v4969_v48, %v2004_v46  ;;  %v2300_v61 = vadd.f32 %v4975_v29, %v2005_v25  ;;  %v2022_v9 = vadd.f32 %v3993_v53, %v4923_v40  ;;  %v5412_v49 = vld [vmem:[#allocation27_spill] sm:$0xff]  ;;  %v5430_v33 = vld [vmem:[#allocation30_spill] sm:$0xff] }
 0x1ca   : > { %5402 = vst [vmem:[#allocation36_spill] sm:$0xff] %v5042_v38  ;;  %v2305_v34 = vadd.f32 %v4977_v36, %v2010_v43  ;;  %v5082_v14 = vadd.f32 %v4979_v7, %v2008_v27  ;;  %v5097_v40 = vadd.f32 %v4989_v58, %v2015_v8  ;;  %v2020_v43 = vadd.f32 %v1941_v56, %v4926_v22 }
 0x1cb   : > { %v5048_v12 = vpop.f32.mrf.mxu1  ;;  %v5050_v17 = vpop.f32.mrf.mxu0  ;;  %v2023_v27 = vadd.f32 %v3994_v5, %v4929_v6  ;;  %v5102_v48 = vadd.f32 %v4991_v41, %v2013_v19  ;;  %v5105_v59 = vadd.f32 %v4993_v24, %v2018_v47  ;;  %v5108_v36 = vadd.f32 %v4995_v3, %v2016_v63  ;;  %v5404_v6 = vld [vmem:[#allocation3_spill] sm:$0xff]  ;;  %v5405_v5 = vld [vmem:[#allocation21_spill] sm:$0xff]  ;;  %v5411_v24 = vld [vmem:[#allocation6_spill] sm:$0xff] }
 0x1cc   : > { %v5111_v7 = vadd.f32 %v4997_v23, %v2019_v1  ;;  %v5114_v22 = vadd.f32 %v5403_v21, %v2017_v20  ;;  %v2021_v56 = vadd.f32 %v5405_v5, %v5404_v6  ;;  %v2026_v37 = vadd.f32 %v5407_v54, %v5406_v44  ;;  %v5410_v41 = vld [vmem:[#allocation17_spill] sm:$0xff]  ;;  %v5418_v47 = vld [vmem:[#allocation18_spill] sm:$0xff]  ;;  %v5419_v1 = vld [vmem:[#allocation19_spill] sm:$0xff] }
 0x1cd   : > { %v5056_v31 = vpop.f32.mrf.mxu1  ;;  %v5058_v38 = vpop.f32.mrf.mxu0  ;;  %v2024_v45 = vadd.f32 %v5409_v39, %v5408_v35  ;;  %v5123_v55 = vadd.f32 %v5410_v41, %v2022_v9  ;;  %v2027_v3 = vadd.f32 %v5412_v49, %v5411_v24  ;;  %v5414_v23 = vld [vmem:[#allocation29_spill] sm:$0xff]  ;;  %v5141_v63 = vadd.f32 %v5418_v47, %v2020_v43  ;;  %v5420_v20 = vld [vmem:[#allocation10_spill] sm:$0xff]  ;;  %v5424_v44 = vld [vmem:[#allocation12_spill] sm:$0xff] }
 0x1ce   : > { %v2025_v57 = vadd.f32 %v5414_v23, %v5413_v42  ;;  %v2034_v54 = vadd.f32 %v5048_v12, %v5424_v44  ;;  %v5425_v43 = vld [vmem:[#allocation20_spill] sm:$0xff]  ;;  %v5435_v44 = vld [vmem:[#allocation14_spill] sm:$0xff] }
 0x1cf   : > { %v5067_v15 = vpop.f32.mrf.mxu1  ;;  %v5069_v51 = vpop.f32.mrf.mxu0  ;;  %v5421_v9 = vld [vmem:[#allocation34_spill] sm:$0xff]  ;;  %v5427_v49 = vld [vmem:[#allocation24_spill] sm:$0xff] }
 0x1d0   : > { %v5161_v42 = vadd.f32 %v5427_v49, %v2024_v45  ;;  %v5429_v12 = vld [vmem:[#allocation28_spill] sm:$0xff] }
 0x1d1   : > { %v5078_v10 = vpop.f32.mrf.mxu1  ;;  %v4079_v26 = vpop.f32.mrf.mxu0 }
 0x1d3   : > { %v4045_v25 = vpop.f32.mrf.mxu1  ;;  %v2760_v53 = vpop.f32.mrf.mxu0 }
 0x1d4   : > { %v2595_v29 = vadd.f32 %v4045_v25, %v2301_v52  ;;  %v5416_v52 = vld [vmem:[#allocation31_spill] sm:$0xff] }
 0x1d5   : > { %v2466_v58 = vpop.f32.mrf.mxu1  ;;  %v4080_v0 = vpop.f32.mrf.mxu0  ;;  %v2030_v50 = vadd.f32 %v5416_v52, %v5415_v11  ;;  %v5422_v25 = vld [vmem:[#allocation11_spill] sm:$0xff] }
 0x1d6   : > { %v2889_v46 = vadd.f32 %v4079_v26, %v2595_v29  ;;  %v2593_v28 = vadd.f32 %v2466_v58, %v2299_v16  ;;  %v5144_v16 = vadd.f32 %v5419_v1, %v2023_v27  ;;  %v2031_v26 = vadd.f32 %v5421_v9, %v5420_v20  ;;  %v5423_v29 = vld [vmem:[#allocation36_spill] sm:$0xff]  ;;  %v5426_v27 = vld [vmem:[#allocation22_spill] sm:$0xff] }
 0x1d7   : > { %v4046_v8 = vpop.f32.mrf.mxu1  ;;  %v2763_v19 = vpop.f32.mrf.mxu0  ;;  %v2029_v21 = vadd.f32 %v5423_v29, %v5422_v25  ;;  %v5153_v58 = vadd.f32 %v5425_v43, %v2021_v56  ;;  %v5156_v41 = vadd.f32 %v5426_v27, %v2026_v37  ;;  %v5431_v37 = vld [vmem:[#allocation32_spill] sm:$0xff] }
 0x1d8   : > { %v3541_v6 = vpack.c.bf16 %v2889_v46, %v2889_v46  ;;  %v2887_v5 = vadd.f32 %v2760_v53, %v2593_v28  ;;  %v2596_v2 = vadd.f32 %v4046_v8, %v2302_v60  ;;  %v5428_v53 = vld [vmem:[#allocation26_spill] sm:$0xff]  ;;  %v5167_v60 = vadd.f32 %v5429_v12, %v2025_v57  ;;  %v5433_v57 = vld [vmem:[#allocation35_spill] sm:$0xff] }
 0x1d9   : > { %v2469_v35 = vpop.f32.mrf.mxu1  ;;  %v4083_v39 = vpop.f32.mrf.mxu0  ;;  %v5164_v23 = vadd.f32 %v5428_v53, %v2027_v3  ;;  %v5170_v8 = vadd.f32 %v5430_v33, %v2030_v50  ;;  %v5173_v47 = vadd.f32 %v5431_v37, %v2028_v13  ;;  %v5432_v3 = vld [vmem:[#allocation33_spill] sm:$0xff]  ;;  %v5181_v9 = vadd.f32 %v5433_v57, %v2029_v21 }
 0x1da   : > { %3050 = vst.msk [vmem:[%s5134_s11 + $0x8] sm:$0xf] %vm3047_vm3, %v3541_v6  ;;  %v3539_v24 = vpack.c.bf16 %v2887_v5, %v2887_v5  ;;  %v2890_v28 = vadd.f32 %v4080_v0, %v2596_v2  ;;  %v2594_v11 = vadd.f32 %v2469_v35, %v2300_v61  ;;  %v3150_v45 = vmul.f32 %v2887_v5, %v2887_v5  ;;  %v5434_v61 = vld [vmem:[#allocation13_spill] sm:$0xff] }
 0x1db   : > { %v4049_v52 = vpop.f32.mrf.mxu1  ;;  %v2776_v56 = vpop.f32.mrf.mxu0  ;;  %v5178_v20 = vadd.f32 %v5432_v3, %v2031_v26  ;;  %v5185_v0 = vadd.f32 %v5056_v31, %v5434_v61  ;;  %v5188_v6 = vadd.f32 %v5044_v18, %v2034_v54  ;;  %v3152_v26 = vmul.f32 %v2889_v46, %v2889_v46 }
 0x1dc   : > { %3048 = vst.msk [vmem:[%s5134_s11] sm:$0xf] %vm3047_vm3, %v3539_v24  ;;  %v2599_v1 = vadd.f32 %v4049_v52, %v2305_v34  ;;  %v3542_v50 = vpack.c.bf16 %v2890_v28, %v2890_v28  ;;  %v2888_v25 = vadd.f32 %v2763_v19, %v2594_v11  ;;  %v5192_v34 = vadd.f32 %v5067_v15, %v5435_v44 }
 0x1dd   : > { %v2482_v29 = vpop.f32.mrf.mxu1  ;;  %v4084_v13 = vpop.f32.mrf.mxu0  ;;  %v3081_v35 = vsel %vm3080_vm4, %v2887_v5, 0.0  ;;  %v3084_v54 = vsel %vm3080_vm4, %v2889_v46, 0.0  ;;  %v3182_v15 = vsel %vm3080_vm4, %v3150_v45, 0.0  ;;  %v3185_v52 = vsel %vm3080_vm4, %v3152_v26, 0.0 }
 0x1de   : > { %v2893_v2 = vadd.f32 %v4083_v39, %v2599_v1  ;;  %v2597_v21 = vadd.f32 %v2482_v29, %v5082_v14  ;;  %3051 = vst.msk [vmem:[%s5134_s11 + $0xc] sm:$0xf] %vm3047_vm3, %v3542_v50  ;;  %v3540_v31 = vpack.c.bf16 %v2888_v25, %v2888_v25  ;;  %v3082_v19 = vsel %vm3080_vm4, %v2888_v25, 0.0 }
 0x1df   : > { %v3151_v43 = vmul.f32 %v2888_v25, %v2888_v25  ;;  %v4050_v27 = vpop.f32.mrf.mxu1  ;;  %v2779_v18 = vpop.f32.mrf.mxu0  ;;  %v3083_v24 = vadd.f32 %v3082_v19, %v3081_v35  ;;  %v3153_v39 = vmul.f32 %v2890_v28, %v2890_v28  ;;  %v3086_v45 = vsel %vm3080_vm4, %v2890_v28, 0.0 }
 0x1e0   : > { %v3545_v49 = vpack.c.bf16 %v2893_v2, %v2893_v2  ;;  %3049 = vst.msk [vmem:[%s5134_s11 + $0x4] sm:$0xf] %vm3047_vm3, %v3540_v31  ;;  %v2891_v5 = vadd.f32 %v2776_v56, %v2597_v21  ;;  %v2600_v53 = vadd.f32 %v4050_v27, %v5085_v4  ;;  %v3156_v26 = vmul.f32 %v2893_v2, %v2893_v2 }
 0x1e1   : > { %v3183_v14 = vsel %vm3080_vm4, %v3151_v43, 0.0  ;;  %v2485_v12 = vpop.f32.mrf.mxu1  ;;  %v4087_v11 = vpop.f32.mrf.mxu0  ;;  %v3085_v33 = vadd.f32 %v3084_v54, %v3083_v24  ;;  %v3187_v44 = vsel %vm3080_vm4, %v3153_v39, 0.0 }
 0x1e2   : > { %v3184_v37 = vadd.f32 %v3183_v14, %v3182_v15  ;;  %3054 = vst.msk [vmem:[%s5134_s11 + $0x18] sm:$0xf] %vm3047_vm3, %v3545_v49  ;;  %v2598_v46 = vadd.f32 %v2485_v12, %v5088_v62  ;;  %v3543_v1 = vpack.c.bf16 %v2891_v5, %v2891_v5  ;;  %v3154_v3 = vmul.f32 %v2891_v5, %v2891_v5 }
 0x1e3   : > { %v2894_v57 = vadd.f32 %v4084_v13, %v2600_v53  ;;  %v4053_v61 = vpop.f32.mrf.mxu1  ;;  %v2792_v56 = vpop.f32.mrf.mxu0  ;;  %v3087_v4 = vadd.f32 %v3086_v45, %v3085_v33  ;;  %v3088_v62 = vsel %vm3080_vm4, %v2891_v5, 0.0  ;;  %v5225_v5 = vadd.f32 %v5050_v17, %v5185_v0 }
 0x1e4   : > { %v3186_v50 = vadd.f32 %v3185_v52, %v3184_v37  ;;  %v2892_v25 = vadd.f32 %v2779_v18, %v2598_v46  ;;  %v2603_v29 = vadd.f32 %v4053_v61, %v5091_v30  ;;  %3052 = vst.msk [vmem:[%s5134_s11 + $0x10] sm:$0xf] %vm3047_vm3, %v3543_v1  ;;  %v3189_v27 = vsel %vm3080_vm4, %v3154_v3, 0.0  ;;  %v5436_v3 = vld [vmem:[#allocation15_spill] sm:$0xff] }
 0x1e5   : > { %v3546_v28 = vpack.c.bf16 %v2894_v57, %v2894_v57  ;;  %v2498_v21 = vpop.f32.mrf.mxu1  ;;  %v4088_v35 = vpop.f32.mrf.mxu0  ;;  %v3089_v13 = vadd.f32 %v3088_v62, %v3087_v4  ;;  %v3092_v53 = vsel %vm3080_vm4, %v2893_v2, 0.0  ;;  %v3157_v12 = vmul.f32 %v2894_v57, %v2894_v57 }
 0x1e6   : > { %v3188_v31 = vadd.f32 %v3187_v44, %v3186_v50  ;;  %v3544_v19 = vpack.c.bf16 %v2892_v25, %v2892_v25  ;;  %v3090_v43 = vsel %vm3080_vm4, %v2892_v25, 0.0  ;;  %v3155_v30 = vmul.f32 %v2892_v25, %v2892_v25 }
 0x1e7   : > { %3055 = vst.msk [vmem:[%s5134_s11 + $0x1c] sm:$0xf] %vm3047_vm3, %v3546_v28  ;;  %v2897_v18 = vadd.f32 %v4087_v11, %v2603_v29  ;;  %v2601_v54 = vadd.f32 %v2498_v21, %v5094_v32  ;;  %v4054_v15 = vpop.f32.mrf.mxu1  ;;  %v2795_v24 = vpop.f32.mrf.mxu0  ;;  %v3091_v39 = vadd.f32 %v3090_v43, %v3089_v13  ;;  %v2033_v61 = vadd.f32 %v5078_v10, %v5436_v3 }
 0x1e8   : > { %v3190_v49 = vadd.f32 %v3189_v27, %v3188_v31  ;;  %3053 = vst.msk [vmem:[%s5134_s11 + $0x14] sm:$0xf] %vm3047_vm3, %v3544_v19  ;;  %v2604_v14 = vadd.f32 %v4054_v15, %v5097_v40  ;;  %v3191_v11 = vsel %vm3080_vm4, %v3155_v30, 0.0  ;;  %v3193_v40 = vsel %vm3080_vm4, %v3156_v26, 0.0 }
 0x1e9   : > { %v3549_v52 = vpack.c.bf16 %v2897_v18, %v2897_v18  ;;  %v2501_v32 = vpop.f32.mrf.mxu1  ;;  %v4091_v33 = vpop.f32.mrf.mxu0  ;;  %v3093_v37 = vadd.f32 %v3092_v53, %v3091_v39  ;;  %v2895_v45 = vadd.f32 %v2792_v56, %v2601_v54  ;;  %v3094_v17 = vsel %vm3080_vm4, %v2894_v57, 0.0 }
 0x1ea   : > { %v3192_v46 = vadd.f32 %v3191_v11, %v3190_v49  ;;  %v2898_v1 = vadd.f32 %v4088_v35, %v2604_v14  ;;  %v2602_v0 = vadd.f32 %v2501_v32, %v5102_v48  ;;  %v5238_v56 = vadd.f32 %v5058_v38, %v5192_v34 }
 0x1eb   : > { %3058 = vst.msk [vmem:[%s5134_s11 + $0x28] sm:$0xf] %vm3047_vm3, %v3549_v52  ;;  %v4057_v2 = vpop.f32.mrf.mxu1  ;;  %v2808_v50 = vpop.f32.mrf.mxu0  ;;  %v3547_v25 = vpack.c.bf16 %v2895_v45, %v2895_v45  ;;  %v3095_v29 = vadd.f32 %v3094_v17, %v3093_v37  ;;  %v3195_v10 = vsel %vm3080_vm4, %v3157_v12, 0.0  ;;  %v3096_v44 = vsel %vm3080_vm4, %v2895_v45, 0.0 }
 0x1ec   : > { %v3194_v4 = vadd.f32 %v3193_v40, %v3192_v46  ;;  %v3158_v26 = vmul.f32 %v2895_v45, %v2895_v45  ;;  %v3550_v57 = vpack.c.bf16 %v2898_v1, %v2898_v1  ;;  %v2896_v35 = vadd.f32 %v2795_v24, %v2602_v0 }
 0x1ed   : > { %v2514_v62 = vpop.f32.mrf.mxu1  ;;  %v4092_v28 = vpop.f32.mrf.mxu0  ;;  %3056 = vst.msk [vmem:[%s5134_s11 + $0x20] sm:$0xf] %vm3047_vm3, %v3547_v25  ;;  %v3097_v48 = vadd.f32 %v3096_v44, %v3095_v29  ;;  %v2607_v13 = vadd.f32 %v4057_v2, %v5105_v59  ;;  %v3160_v31 = vmul.f32 %v2897_v18, %v2897_v18  ;;  %v3161_v38 = vmul.f32 %v2898_v1, %v2898_v1 }
 0x1ee   : > { %v3196_v21 = vadd.f32 %v3195_v10, %v3194_v4  ;;  %v3197_v19 = vsel %vm3080_vm4, %v3158_v26, 0.0  ;;  %3059 = vst.msk [vmem:[%s5134_s11 + $0x2c] sm:$0xf] %vm3047_vm3, %v3550_v57  ;;  %v2605_v34 = vadd.f32 %v2514_v62, %v5108_v36  ;;  %v3548_v54 = vpack.c.bf16 %v2896_v35, %v2896_v35 }
 0x1ef   : > { %v4058_v43 = vpop.f32.mrf.mxu1  ;;  %v2811_v27 = vpop.f32.mrf.mxu0  ;;  %v3098_v15 = vsel %vm3080_vm4, %v2896_v35, 0.0  ;;  %v3159_v49 = vmul.f32 %v2896_v35, %v2896_v35  ;;  %v2901_v24 = vadd.f32 %v4091_v33, %v2607_v13  ;;  %v3100_v11 = vsel %vm3080_vm4, %v2897_v18, 0.0 }
 0x1f0   : > { %v3198_v30 = vadd.f32 %v3197_v19, %v3196_v21  ;;  %v3099_v39 = vadd.f32 %v3098_v15, %v3097_v48  ;;  %v2899_v14 = vadd.f32 %v2808_v50, %v2605_v34  ;;  %v2608_v59 = vadd.f32 %v4058_v43, %v5111_v7  ;;  %3057 = vst.msk [vmem:[%s5134_s11 + $0x24] sm:$0xf] %vm3047_vm3, %v3548_v54 }
 0x1f1   : > { %v2517_v53 = vpop.f32.mrf.mxu1  ;;  %v4095_v12 = vpop.f32.mrf.mxu0  ;;  %v3199_v36 = vsel %vm3080_vm4, %v3159_v49, 0.0  ;;  %v5257_v32 = vadd.f32 %v5069_v51, %v2033_v61  ;;  %v3201_v37 = vsel %vm3080_vm4, %v3160_v31, 0.0  ;;  %v3553_v7 = vpack.c.bf16 %v2901_v24, %v2901_v24 }
 0x1f2   : > { %v2606_v52 = vadd.f32 %v2517_v53, %v5114_v22  ;;  %v3101_v33 = vadd.f32 %v3100_v11, %v3099_v39  ;;  %v3200_v46 = vadd.f32 %v3199_v36, %v3198_v30  ;;  %v3102_v18 = vsel %vm3080_vm4, %v2898_v1, 0.0 }
 0x1f3   : > { %v4061_v45 = vpop.f32.mrf.mxu1  ;;  %v2824_v3 = vpop.f32.mrf.mxu0  ;;  %v3203_v40 = vsel %vm3080_vm4, %v3161_v38, 0.0  ;;  %v3551_v17 = vpack.c.bf16 %v2899_v14, %v2899_v14  ;;  %v3162_v0 = vmul.f32 %v2899_v14, %v2899_v14  ;;  %3062 = vst.msk [vmem:[%s5134_s11 + $0x38] sm:$0xf] %vm3047_vm3, %v3553_v7  ;;  %v2902_v51 = vadd.f32 %v4092_v28, %v2608_v59 }
 0x1f4   : > { %v3202_v2 = vadd.f32 %v3201_v37, %v3200_v46  ;;  %v3103_v22 = vadd.f32 %v3102_v18, %v3101_v33  ;;  %v2900_v61 = vadd.f32 %v2811_v27, %v2606_v52  ;;  %v3164_v25 = vmul.f32 %v2901_v24, %v2901_v24 }
 0x1f5   : > { %v2530_v50 = vpop.f32.mrf.mxu1  ;;  %v4096_v4 = vpop.f32.mrf.mxu0  ;;  %3060 = vst.msk [vmem:[%s5134_s11 + $0x30] sm:$0xf] %vm3047_vm3, %v3551_v17  ;;  %v3104_v29 = vsel %vm3080_vm4, %v2899_v14, 0.0  ;;  %v2611_v1 = vadd.f32 %v4061_v45, %v5123_v55  ;;  %v3205_v57 = vsel %vm3080_vm4, %v3162_v0, 0.0  ;;  %v3554_v62 = vpack.c.bf16 %v2902_v51, %v2902_v51 }
 0x1f6   : > { %v2609_v10 = vadd.f32 %v2530_v50, %v5141_v63  ;;  %v3105_v44 = vadd.f32 %v3104_v29, %v3103_v22  ;;  %v3204_v26 = vadd.f32 %v3203_v40, %v3202_v2  ;;  %v3165_v21 = vmul.f32 %v2902_v51, %v2902_v51 }
 0x1f7   : > { %v4062_v28 = vpop.f32.mrf.mxu1  ;;  %v2827_v48 = vpop.f32.mrf.mxu0  ;;  %v3552_v35 = vpack.c.bf16 %v2900_v61, %v2900_v61  ;;  %v3106_v13 = vsel %vm3080_vm4, %v2900_v61, 0.0  ;;  %v3163_v31 = vmul.f32 %v2900_v61, %v2900_v61  ;;  %3063 = vst.msk [vmem:[%s5134_s11 + $0x3c] sm:$0xf] %vm3047_vm3, %v3554_v62  ;;  %v2905_v55 = vadd.f32 %v4095_v12, %v2611_v1 }
 0x1f8   : > { %v3206_v19 = vadd.f32 %v3205_v57, %v3204_v26  ;;  %v3107_v38 = vadd.f32 %v3106_v13, %v3105_v44  ;;  %v2903_v34 = vadd.f32 %v2824_v3, %v2609_v10  ;;  %v3108_v27 = vsel %vm3080_vm4, %v2901_v24, 0.0 }
 0x1f9   : > { %v2533_v63 = vpop.f32.mrf.mxu1  ;;  %v4099_v43 = vpop.f32.mrf.mxu0  ;;  %3061 = vst.msk [vmem:[%s5134_s11 + $0x34] sm:$0xf] %vm3047_vm3, %v3552_v35  ;;  %v3207_v30 = vsel %vm3080_vm4, %v3163_v31, 0.0  ;;  %v2612_v54 = vadd.f32 %v4062_v28, %v5144_v16  ;;  %v3209_v49 = vsel %vm3080_vm4, %v3164_v25, 0.0  ;;  %v3557_v59 = vpack.c.bf16 %v2905_v55, %v2905_v55 }
 0x1fa   : > { %v2610_v15 = vadd.f32 %v2533_v63, %v5153_v58  ;;  %v3109_v39 = vadd.f32 %v3108_v27, %v3107_v38  ;;  %v3208_v14 = vadd.f32 %v3207_v30, %v3206_v19  ;;  %v3110_v11 = vsel %vm3080_vm4, %v2902_v51, 0.0 }
 0x1fb   : > { %v4065_v53 = vpop.f32.mrf.mxu1  ;;  %v2840_v12 = vpop.f32.mrf.mxu0  ;;  %v3211_v24 = vsel %vm3080_vm4, %v3165_v21, 0.0  ;;  %v3555_v36 = vpack.c.bf16 %v2903_v34, %v2903_v34  ;;  %v3166_v52 = vmul.f32 %v2903_v34, %v2903_v34  ;;  %3066 = vst.msk [vmem:[%s5134_s11 + $0x48] sm:$0xf] %vm3047_vm3, %v3557_v59  ;;  %v2906_v33 = vadd.f32 %v4096_v4, %v2612_v54 }
 0x1fc   : > { %v3210_v37 = vadd.f32 %v3209_v49, %v3208_v14  ;;  %v3111_v16 = vadd.f32 %v3110_v11, %v3109_v39  ;;  %v2904_v58 = vadd.f32 %v2827_v48, %v2610_v15  ;;  %v3168_v45 = vmul.f32 %v2905_v55, %v2905_v55 }
 0x1fd   : > { %v2546_v46 = vpop.f32.mrf.mxu1  ;;  %v4100_v7 = vpop.f32.mrf.mxu0  ;;  %3064 = vst.msk [vmem:[%s5134_s11 + $0x40] sm:$0xf] %vm3047_vm3, %v3555_v36  ;;  %v3112_v3 = vsel %vm3080_vm4, %v2903_v34, 0.0  ;;  %v2615_v18 = vadd.f32 %v4065_v53, %v5156_v41  ;;  %v3213_v2 = vsel %vm3080_vm4, %v3166_v52, 0.0  ;;  %v3558_v22 = vpack.c.bf16 %v2906_v33, %v2906_v33 }
 0x1fe   : > { %v2613_v40 = vadd.f32 %v2546_v46, %v5161_v42  ;;  %v3113_v17 = vadd.f32 %v3112_v3, %v3111_v16  ;;  %v3212_v0 = vadd.f32 %v3211_v24, %v3210_v37  ;;  %v3169_v50 = vmul.f32 %v2906_v33, %v2906_v33 }
 0x1ff   : > { %v4066_v51 = vpop.f32.mrf.mxu1  ;;  %v2843_v61 = vpop.f32.mrf.mxu0  ;;  %v3556_v4 = vpack.c.bf16 %v2904_v58, %v2904_v58  ;;  %v3114_v25 = vsel %vm3080_vm4, %v2904_v58, 0.0  ;;  %v3167_v29 = vmul.f32 %v2904_v58, %v2904_v58  ;;  %3067 = vst.msk [vmem:[%s5134_s11 + $0x4c] sm:$0xf] %vm3047_vm3, %v3558_v22  ;;  %v2909_v41 = vadd.f32 %v4099_v43, %v2615_v18 }
 0x200   : > { %v3214_v1 = vadd.f32 %v3213_v2, %v3212_v0  ;;  %v3115_v10 = vadd.f32 %v3114_v25, %v3113_v17  ;;  %v2907_v44 = vadd.f32 %v2840_v12, %v2613_v40  ;;  %v3116_v57 = vsel %vm3080_vm4, %v2905_v55, 0.0 }
 0x201   : > { %v2549_v42 = vpop.f32.mrf.mxu1  ;;  %v4103_v26 = vpop.f32.mrf.mxu0  ;;  %3065 = vst.msk [vmem:[%s5134_s11 + $0x44] sm:$0xf] %vm3047_vm3, %v3556_v4  ;;  %v3215_v62 = vsel %vm3080_vm4, %v3167_v29, 0.0  ;;  %v2616_v28 = vadd.f32 %v4066_v51, %v5164_v23  ;;  %v3217_v21 = vsel %vm3080_vm4, %v3168_v45, 0.0  ;;  %v3561_v31 = vpack.c.bf16 %v2909_v41, %v2909_v41 }
 0x202   : > { %v2614_v48 = vadd.f32 %v2549_v42, %v5167_v60  ;;  %v3117_v35 = vadd.f32 %v3116_v57, %v3115_v10  ;;  %v3216_v13 = vadd.f32 %v3215_v62, %v3214_v1  ;;  %v3118_v34 = vsel %vm3080_vm4, %v2906_v33, 0.0 }
 0x203   : > { %v4069_v19 = vpop.f32.mrf.mxu1  ;;  %v2856_v38 = vpop.f32.mrf.mxu0  ;;  %v3219_v55 = vsel %vm3080_vm4, %v3169_v50, 0.0  ;;  %v3559_v63 = vpack.c.bf16 %v2907_v44, %v2907_v44  ;;  %v3170_v43 = vmul.f32 %v2907_v44, %v2907_v44  ;;  %3070 = vst.msk [vmem:[%s5134_s11 + $0x58] sm:$0xf] %vm3047_vm3, %v3561_v31  ;;  %v2910_v30 = vadd.f32 %v4100_v7, %v2616_v28 }
 0x204   : > { %v3218_v27 = vadd.f32 %v3217_v21, %v3216_v13  ;;  %v3119_v23 = vadd.f32 %v3118_v34, %v3117_v35  ;;  %v2908_v60 = vadd.f32 %v2843_v61, %v2614_v48  ;;  %v3172_v49 = vmul.f32 %v2909_v41, %v2909_v41 }
 0x205   : > { %v2562_v54 = vpop.f32.mrf.mxu1  ;;  %v4104_v15 = vpop.f32.mrf.mxu0  ;;  %3068 = vst.msk [vmem:[%s5134_s11 + $0x50] sm:$0xf] %vm3047_vm3, %v3559_v63  ;;  %v3120_v39 = vsel %vm3080_vm4, %v2907_v44, 0.0  ;;  %v2619_v14 = vadd.f32 %v4069_v19, %v5170_v8  ;;  %v3221_v11 = vsel %vm3080_vm4, %v3170_v43, 0.0  ;;  %v3562_v24 = vpack.c.bf16 %v2910_v30, %v2910_v30 }
 0x206   : > { %v2617_v59 = vadd.f32 %v2562_v54, %v5173_v47  ;;  %v3121_v53 = vadd.f32 %v3120_v39, %v3119_v23  ;;  %v3220_v12 = vadd.f32 %v3219_v55, %v3218_v27  ;;  %v3173_v37 = vmul.f32 %v2910_v30, %v2910_v30 }
 0x207   : > { %v4070_v36 = vpop.f32.mrf.mxu1  ;;  %v2859_v52 = vpop.f32.mrf.mxu0  ;;  %v3560_v16 = vpack.c.bf16 %v2908_v60, %v2908_v60  ;;  %v3122_v33 = vsel %vm3080_vm4, %v2908_v60, 0.0  ;;  %v3171_v58 = vmul.f32 %v2908_v60, %v2908_v60  ;;  %3071 = vst.msk [vmem:[%s5134_s11 + $0x5c] sm:$0xf] %vm3047_vm3, %v3562_v24  ;;  %v2913_v8 = vadd.f32 %v4103_v26, %v2619_v14 }
 0x208   : > { %v3222_v46 = vadd.f32 %v3221_v11, %v3220_v12  ;;  %v3123_v7 = vadd.f32 %v3122_v33, %v3121_v53  ;;  %v2911_v45 = vadd.f32 %v2856_v38, %v2617_v59  ;;  %v3124_v18 = vsel %vm3080_vm4, %v2909_v41, 0.0 }
 0x209   : > { %v2565_v47 = vpop.f32.mrf.mxu1  ;;  %v4107_v3 = vpop.f32.mrf.mxu0  ;;  %3069 = vst.msk [vmem:[%s5134_s11 + $0x54] sm:$0xf] %vm3047_vm3, %v3560_v16  ;;  %v3223_v40 = vsel %vm3080_vm4, %v3171_v58, 0.0  ;;  %v2620_v17 = vadd.f32 %v4070_v36, %v5178_v20  ;;  %v3225_v2 = vsel %vm3080_vm4, %v3172_v49, 0.0  ;;  %v3565_v61 = vpack.c.bf16 %v2913_v8, %v2913_v8 }
 0x20a   : > { %v2618_v0 = vadd.f32 %v2565_v47, %v5181_v9  ;;  %v3125_v22 = vadd.f32 %v3124_v18, %v3123_v7  ;;  %v3224_v51 = vadd.f32 %v3223_v40, %v3222_v46  ;;  %v3126_v4 = vsel %vm3080_vm4, %v2910_v30, 0.0 }
 0x20b   : > { %v4073_v50 = vpop.f32.mrf.mxu1  ;;  %v3227_v25 = vsel %vm3080_vm4, %v3173_v37, 0.0  ;;  %v3563_v29 = vpack.c.bf16 %v2911_v45, %v2911_v45  ;;  %v3174_v1 = vmul.f32 %v2911_v45, %v2911_v45  ;;  %v2872_v10 = vpop.f32.mrf.mxu0  ;;  %3074 = vst.msk [vmem:[%s5134_s11 + $0x68] sm:$0xf] %vm3047_vm3, %v3565_v61  ;;  %v2914_v44 = vadd.f32 %v4104_v15, %v2620_v17 }
 0x20c   : > { %v3226_v41 = vadd.f32 %v3225_v2, %v3224_v51  ;;  %v3127_v20 = vadd.f32 %v3126_v4, %v3125_v22  ;;  %v2912_v9 = vadd.f32 %v2859_v52, %v2618_v0  ;;  %v3132_v26 = vsel %vm3080_vm4, %v2913_v8, 0.0 }
 0x20d   : > { %v2578_v42 = vpop.f32.mrf.mxu1  ;;  %3072 = vst.msk [vmem:[%s5134_s11 + $0x60] sm:$0xf] %vm3047_vm3, %v3563_v29  ;;  %v3128_v57 = vsel %vm3080_vm4, %v2911_v45, 0.0  ;;  %v2623_v62 = vadd.f32 %v4073_v50, %v5188_v6  ;;  %v3176_v48 = vmul.f32 %v2913_v8, %v2913_v8  ;;  %v3566_v13 = vpack.c.bf16 %v2914_v44, %v2914_v44  ;;  %v4108_v63 = vpop.f32.mrf.mxu0 }
 0x20e   : > { %v2621_v28 = vadd.f32 %v2578_v42, %v5225_v5  ;;  %v3129_v21 = vadd.f32 %v3128_v57, %v3127_v20  ;;  %v3228_v35 = vadd.f32 %v3227_v25, %v3226_v41  ;;  %v3229_v19 = vsel %vm3080_vm4, %v3174_v1, 0.0 }
 0x20f   : > { %v4074_v31 = vpop.f32.mrf.mxu1  ;;  %v3564_v38 = vpack.c.bf16 %v2912_v9, %v2912_v9  ;;  %v3130_v34 = vsel %vm3080_vm4, %v2912_v9, 0.0  ;;  %v3175_v55 = vmul.f32 %v2912_v9, %v2912_v9  ;;  %3075 = vst.msk [vmem:[%s5134_s11 + $0x6c] sm:$0xf] %vm3047_vm3, %v3566_v13  ;;  %v2917_v6 = vadd.f32 %v4107_v3, %v2623_v62  ;;  %v2875_v24 = vpop.f32.mrf.mxu0 }
 0x210   : > { %v3230_v43 = vadd.f32 %v3229_v19, %v3228_v35  ;;  %v3131_v27 = vadd.f32 %v3130_v34, %v3129_v21  ;;  %v2915_v23 = vadd.f32 %v2872_v10, %v2621_v28  ;;  %v3177_v30 = vmul.f32 %v2914_v44, %v2914_v44 }
 0x211   : > { %v2581_v5 = vpop.f32.mrf.mxu1  ;;  %3073 = vst.msk [vmem:[%s5134_s11 + $0x64] sm:$0xf] %vm3047_vm3, %v3564_v38  ;;  %v3231_v60 = vsel %vm3080_vm4, %v3175_v55, 0.0  ;;  %v2624_v54 = vadd.f32 %v4074_v31, %v5238_v56  ;;  %v3569_v14 = vpack.c.bf16 %v2917_v6, %v2917_v6  ;;  %v3233_v59 = vsel %vm3080_vm4, %v3176_v48, 0.0 }
 0x212   : > { %v2622_v15 = vadd.f32 %v2581_v5, %v5257_v32  ;;  %v3133_v49 = vadd.f32 %v3132_v26, %v3131_v27  ;;  %v3232_v39 = vadd.f32 %v3231_v60, %v3230_v43  ;;  %v3134_v53 = vsel %vm3080_vm4, %v2914_v44, 0.0 }
 0x213   : > { %v3567_v12 = vpack.c.bf16 %v2915_v23, %v2915_v23  ;;  %v3178_v11 = vmul.f32 %v2915_v23, %v2915_v23  ;;  %3078 = vst.msk [vmem:[%s5134_s11 + $0x78] sm:$0xf] %vm3047_vm3, %v3569_v14  ;;  %v2918_v37 = vadd.f32 %v4108_v63, %v2624_v54  ;;  %v3235_v16 = vsel %vm3080_vm4, %v3177_v30, 0.0 }
 0x214   : > { %v3234_v36 = vadd.f32 %v3233_v59, %v3232_v39  ;;  %v3135_v52 = vadd.f32 %v3134_v53, %v3133_v49  ;;  %v2916_v56 = vadd.f32 %v2875_v24, %v2622_v15  ;;  %v3136_v32 = vsel %vm3080_vm4, %v2915_v23, 0.0 }
 0x215   : > { %3076 = vst.msk [vmem:[%s5134_s11 + $0x70] sm:$0xf] %vm3047_vm3, %v3567_v12  ;;  %v3180_v33 = vmul.f32 %v2917_v6, %v2917_v6  ;;  %v3570_v7 = vpack.c.bf16 %v2918_v37, %v2918_v37  ;;  %v3237_v8 = vsel %vm3080_vm4, %v3178_v11, 0.0  ;;  %v3140_v17 = vsel %vm3080_vm4, %v2917_v6, 0.0 }
 0x216   : > { %v3137_v58 = vadd.f32 %v3136_v32, %v3135_v52  ;;  %v3236_v46 = vadd.f32 %v3235_v16, %v3234_v36  ;;  %v3568_v45 = vpack.c.bf16 %v2916_v56, %v2916_v56  ;;  %v3138_v47 = vsel %vm3080_vm4, %v2916_v56, 0.0 }
 0x217   : > { %v3179_v3 = vmul.f32 %v2916_v56, %v2916_v56  ;;  %3079 = vst.msk [vmem:[%s5134_s11 + $0x7c] sm:$0xf] %vm3047_vm3, %v3570_v7  ;;  %v3181_v0 = vmul.f32 %v2918_v37, %v2918_v37  ;;  %v3241_v61 = vsel %vm3080_vm4, %v3180_v33, 0.0  ;;  %v3142_v50 = vsel %vm3080_vm4, %v2918_v37, 0.0 }
 0x218   : > { %v3238_v18 = vadd.f32 %v3237_v8, %v3236_v46  ;;  %v3139_v40 = vadd.f32 %v3138_v47, %v3137_v58  ;;  %3077 = vst.msk [vmem:[%s5134_s11 + $0x74] sm:$0xf] %vm3047_vm3, %v3568_v45 }
 0x219   : > { %v3239_v2 = vsel %vm3080_vm4, %v3179_v3, 0.0  ;;  %v3243_v29 = vsel %vm3080_vm4, %v3181_v0, 0.0 }
 0x21a   : > { %v3141_v22 = vadd.f32 %v3140_v17, %v3139_v40  ;;  %v3240_v51 = vadd.f32 %v3239_v2, %v3238_v18 }
 0x21c   : > { %v3143_v4 = vadd.f32 %v3142_v50, %v3141_v22  ;;  %v3242_v25 = vadd.f32 %v3241_v61, %v3240_v51 }
 0x21e   : > { %v3144_v1 = vrot.slane %v3143_v4, 4  ;;  %v3244_v10 = vadd.f32 %v3243_v29, %v3242_v25 }
 0x220   : > { %v3145_v41 = vadd.f32 %v3144_v1, %v3143_v4  ;;  %v3245_v20 = vrot.slane %v3244_v10, 4 }
 0x222   : > { %v3146_v44 = vrot.slane %v3145_v41, 2  ;;  %v3246_v9 = vadd.f32 %v3245_v20, %v3244_v10 }
 0x224   : > { %v3147_v42 = vadd.f32 %v3146_v44, %v3145_v41  ;;  %v3247_v26 = vrot.slane %v3246_v9, 2 }
 0x226   : > { %v3148_v57 = vrot.slane %v3147_v42, 1  ;;  %v3248_v62 = vadd.f32 %v3247_v26, %v3246_v9 }
 0x228   : > { %v3249_v28 = vrot.slane %v3248_v62, 1  ;;  %v3149_v48 = vadd.f32 %v3148_v57, %v3147_v42 }
 0x22a   : > { %v3250_v21 = vadd.f32 %v3249_v28, %v3248_v62 }
 0x22c   : > { %v3252_v35 = vsel %vm3251_vm5, %v3149_v48, %v3250_v21 }
 0x22d   : > { %3254 = vst.msk [vmem:[%s181_s17] sm:$0x3] %vm3253_vm6, %v3252_v35 }
 0x22e PF: > { %s14_s12 = sadd.s32 1, %s4136_s12  }
 0x22f   : > { %p11_p4 = scmp.ge.s32.totalorder %s14_s12, 4  }
 0x231   :  { %13 = sbr.rel (!%p11_p4) target bundleno = 1 (0x1), region = 80 }

</bundles_post_ra>
